<compile_context>
chip_gen: v7x
topology: tpu7x:2x2x1
jax: 0.10.0
libtpu: 0.0.40
codegen_flags: <defaults>
</compile_context>

<pallas_src>
import functools
import math

import jax
import jax.numpy as jnp
from jax import lax
from jax.experimental import pallas as pl
from jax.experimental.pallas import tpu as pltpu


# ----------------------------- hyper-params ---------------------------------
VOCAB_SIZE = 50
EMBEDDING_DIM = 32          # H
NUM_HEADS = 2
FFN_HIDDEN = 64
NUM_LAYERS = 2
MLM_HIDDEN = 32
NSP_HIDDEN = 32
MAX_LEN = 16
LN_EPS = 1e-5               # PyTorch nn.LayerNorm default
LANE = 128                  # pad narrow output lane dims to this (dense vst)

# head-weight slabs are stacked together, so the two hidden sizes must match
assert MLM_HIDDEN == NSP_HIDDEN


# ------------------------------ kernel utils --------------------------------
def _bf(x):
    return x.astype(jnp.bfloat16)


def _dot(a_bf, b_bf):
    """MXU matmul: bf16 inputs, f32 accumulation."""
    return jnp.dot(a_bf, b_bf, preferred_element_type=jnp.float32)


def _layer_norm(x, gamma, beta, eps=LN_EPS):
    mu = jnp.mean(x, axis=-1, keepdims=True)
    var = jnp.mean((x - mu) ** 2, axis=-1, keepdims=True)
    return (x - mu) * lax.rsqrt(var + eps) * gamma + beta


# contract last dims of both operands: q @ k^T without an explicit transpose
_TRANS_B = (((1,), (1,)), ((), ()))


# --------------------------- fully fused kernel ------------------------------
def bert_fused_kernel(
        valid_lens_ref,                               # SMEM (B,) int32
        pos_ref,                                      # VMEM (n_pred, 1) int32
        x_ref,                                        # VMEM (B*S, H) f32
        wqkv_ref, bqkv_ref, wo_ref,                   # per-head attention weights
        wf1_ref, bf1_ref, wf2_ref,                    # FFN weights
        hvec_ref,                                     # (L*6, 1, H) f32: bo,g1,be1,bf2,g2,be2
        wh1_ref, wh2_ref, hv32_ref, hv128_ref,        # MLM / NSP head weights
        enc_ref, mlm_ref, nsp_ref,                    # outputs
        *, batch, seq, num_heads, num_layers, num_pred):
    H = x_ref.shape[-1]
    BS = batch * seq

    x = x_ref[...]                                    # (B*S, H) f32

    # key j is valid iff j < valid_len[b]  (d2l masked_softmax semantics);
    # hoisted out of the layer loop (depends only on b).
    key_col = lax.broadcasted_iota(jnp.int32, (seq, seq), 1)
    valid = [key_col < valid_lens_ref[b] for b in range(batch)]

    # ---------------- transformer encoder: all layers fused -----------------
    for l in range(num_layers):                       # static unroll
        attn_rows = []
        for b in range(batch):
            r0 = b * seq
            xb = _bf(x[r0:r0 + seq, :])               # vreg-aligned sublane slice
            acc_b = None                              # per-sequence attn output (f32)
            for h in range(num_heads):
                base = (l * num_heads + h) * 3
                # lane-0-aligned per-head projections (scale baked into Q)
                q = _dot(xb, wqkv_ref[base + 0]) + bqkv_ref[base + 0]
                k = _dot(xb, wqkv_ref[base + 1]) + bqkv_ref[base + 1]
                v = _dot(xb, wqkv_ref[base + 2]) + bqkv_ref[base + 2]
                # scores: transposed-B dot (no XLU transpose of k)
                s = lax.dot_general(_bf(q), _bf(k), _TRANS_B,
                                    preferred_element_type=jnp.float32)
                s = jnp.where(valid[b], s, -1e6)
                p = jnp.exp(s - jnp.max(s, axis=-1, keepdims=True))
                p = p * pl.reciprocal(jnp.sum(p, axis=-1, keepdims=True),
                                      approx=True)
                o = _dot(_bf(p), _bf(v))              # (S, dh) head context
                # fold the head concat into the output projection
                proj = _dot(_bf(o), wo_ref[l * num_heads + h])   # (S, H)
                acc_b = proj if acc_b is None else acc_b + proj
            attn_rows.append(acc_b)
        attn = jnp.concatenate(attn_rows, axis=0)     # (B*S, H), sublane concat

        y = _layer_norm(x + attn + hvec_ref[l * 6 + 0],           # + b_o, AddNorm1
                        hvec_ref[l * 6 + 1], hvec_ref[l * 6 + 2])
        f = jnp.maximum(_dot(_bf(y), wf1_ref[l]) + bf1_ref[l], 0.0)   # FFN ReLU
        f = _dot(_bf(f), wf2_ref[l]) + hvec_ref[l * 6 + 3]
        x = _layer_norm(y + f, hvec_ref[l * 6 + 4], hvec_ref[l * 6 + 5])  # AddNorm2

    enc_ref[...] = x                                  # encoded output
    x_bf = _bf(x)                                     # cast once for both heads

    # ------------------------------- MLM head --------------------------------
    # one-hot matmul gather of prediction rows (rides the idle MXU slot)
    pred_col = lax.broadcasted_iota(jnp.int32, (num_pred, BS), 1)
    onehot = jnp.where(pred_col == pos_ref[...], 1.0, 0.0)
    gathered = _dot(_bf(onehot), x_bf)                # (n_pred, H)
    hm = jnp.maximum(_dot(_bf(gathered), wh1_ref[0]) + hv32_ref[0], 0.0)
    hm = _layer_norm(hm, hv32_ref[1], hv32_ref[2])
    mlm_ref[...] = _dot(_bf(hm), wh2_ref[0]) + hv128_ref[0]   # (n_pred, 128) lane-dense

    # ------------------------------- NSP head --------------------------------
    # CLS (token 0 of each sequence) extracted via one-hot matmul
    cls_col = lax.broadcasted_iota(jnp.int32, (batch, BS), 1)
    cls_row = lax.broadcasted_iota(jnp.int32, (batch, BS), 0)
    cls_oh = jnp.where(cls_col == cls_row * seq, 1.0, 0.0)
    cls = _dot(_bf(cls_oh), x_bf)                     # (B, H)
    hn = jnp.tanh(_dot(_bf(cls), wh1_ref[1]) + hv32_ref[3])
    nsp_ref[...] = _dot(_bf(hn), wh2_ref[1]) + hv128_ref[1]   # (B, 128) lane-dense


# ------------------------------ parameter init -------------------------------
def init_params(key):
    std = 0.02
    ks = iter(jax.random.split(key, 128))
    nrm = lambda shp: (std * jax.random.normal(next(ks), shp)).astype(jnp.float32)
    ones = lambda shp: jnp.ones(shp, jnp.float32)
    zeros = lambda shp: jnp.zeros(shp, jnp.float32)
    H = EMBEDDING_DIM

    params = {
        "tok_emb": nrm((VOCAB_SIZE, H)),
        "seg_emb": nrm((2, H)),
        "pos_emb": nrm((MAX_LEN, H)),
        "blocks": [],
        # MLM: Linear(H, MLM_HIDDEN) -> ReLU -> LayerNorm -> Linear(MLM_HIDDEN, VOCAB)
        "mlm": [nrm((H, MLM_HIDDEN)), zeros((1, MLM_HIDDEN)),
                ones((1, MLM_HIDDEN)), zeros((1, MLM_HIDDEN)),
                nrm((MLM_HIDDEN, VOCAB_SIZE)), zeros((1, VOCAB_SIZE))],
        # NSP: Linear(H, NSP_HIDDEN) -> Tanh -> Linear(NSP_HIDDEN, 2)
        "nsp": [nrm((H, NSP_HIDDEN)), zeros((1, NSP_HIDDEN)),
                nrm((NSP_HIDDEN, 2)), zeros((1, 2))],
    }
    for _ in range(NUM_LAYERS):
        blk = [
            nrm((H, H)), zeros((1, H)),          # W_q, b_q
            nrm((H, H)), zeros((1, H)),          # W_k, b_k
            nrm((H, H)), zeros((1, H)),          # W_v, b_v
            nrm((H, H)), zeros((1, H)),          # W_o, b_o
            ones((1, H)), zeros((1, H)),         # LN1 gamma, beta
            nrm((H, FFN_HIDDEN)), zeros((1, FFN_HIDDEN)),   # FFN W1, b1
            nrm((FFN_HIDDEN, H)), zeros((1, H)),            # FFN W2, b2
            ones((1, H)), zeros((1, H)),         # LN2 gamma, beta
        ]
        params["blocks"].append(blk)
    return params


# --------------------------- parameter packing --------------------------------
def _pad_lanes(w, width=LANE):
    pad = width - w.shape[-1]
    return jnp.pad(w, [(0, 0)] * (w.ndim - 1) + [(0, pad)])


def pack_params(params):
    """Repack per-head (lane-0-aligned) attention weights, stack layers,
    bake the 1/sqrt(dh) scale into Q, coalesce small f32 vectors into slabs,
    bf16 matmul weights, lane-pad the MLM/NSP output projections."""
    nh = NUM_HEADS
    dh = EMBEDDING_DIM // nh
    scale = 1.0 / math.sqrt(dh)

    wqkv, bqkv, wo_h, wf1, bf1, wf2, hvec = [], [], [], [], [], [], []
    for blk in params["blocks"]:
        (wq, bq, wk, bk, wv, bv, wo, bo, g1, be1,
         w1, b1, w2, b2, g2, be2) = blk
        for h in range(nh):
            c = slice(h * dh, (h + 1) * dh)
            # per-head Q/K/V columns; 1/sqrt(dh) baked into Q
            wqkv += [wq[:, c] * scale, wk[:, c], wv[:, c]]
            bqkv += [bq[:, c] * scale, bk[:, c], bv[:, c]]
            # per-head rows of the output projection (head-concat folded away)
            wo_h.append(wo[c, :])
        wf1.append(w1); bf1.append(b1); wf2.append(w2)
        hvec += [bo, g1, be1, b2, g2, be2]

    wm1, bm1, gm, bem, wm2, bm2 = params["mlm"]
    wn1, bn1, wn2, bn2 = params["nsp"]

    return dict(
        wqkv=jnp.stack(wqkv).astype(jnp.bfloat16),          # (L*nh*3, H, dh)
        bqkv=jnp.stack(bqkv).astype(jnp.float32),           # (L*nh*3, 1, dh)
        wo=jnp.stack(wo_h).astype(jnp.bfloat16),            # (L*nh, dh, H)
        wf1=jnp.stack(wf1).astype(jnp.bfloat16),            # (L, H, F)
        bf1=jnp.stack(bf1).astype(jnp.float32),             # (L, 1, F)
        wf2=jnp.stack(wf2).astype(jnp.bfloat16),            # (L, F, H)
        hvec=jnp.stack(hvec).astype(jnp.float32),           # (L*6, 1, H)
        wh1=jnp.stack([wm1, wn1]).astype(jnp.bfloat16),     # (2, H, 32)
        wh2=jnp.stack([_pad_lanes(wm2),
                       _pad_lanes(wn2)]).astype(jnp.bfloat16),   # (2, 32, 128)
        hv32=jnp.stack([bm1, gm, bem, bn1]).astype(jnp.float32),       # (4, 1, 32)
        hv128=jnp.stack([_pad_lanes(bm2),
                         _pad_lanes(bn2)]).astype(jnp.float32),  # (2, 1, 128)
    )


_WEIGHT_ORDER = ("wqkv", "bqkv", "wo", "wf1", "bf1", "wf2", "hvec",
                 "wh1", "wh2", "hv32", "hv128")


# ------------------------------ full forward ---------------------------------
def bert_forward(params, tokens, segments, valid_lens=None, positions=None):
    B, S = tokens.shape
    H = EMBEDDING_DIM
    packed = pack_params(params)

    # --- embeddings (glue: gathers in plain JAX) ---
    x = params["tok_emb"][tokens] + params["seg_emb"][segments]
    x = x + params["pos_emb"][:S][None, :, :]
    x = x.astype(jnp.float32).reshape(B * S, H)

    if valid_lens is None:
        vlens = jnp.full((B,), S, jnp.int32)
    else:
        vlens = valid_lens.astype(jnp.int32)

    has_positions = positions is not None
    if has_positions:
        P = positions.shape[1]
        flat_pos = (positions.astype(jnp.int32)
                    + jnp.arange(B, dtype=jnp.int32)[:, None] * S).reshape(-1, 1)
    else:
        # TODO(synk): build a second kernel variant that skips the MLM head
        # entirely when positions is None (currently tiny dummy work).
        P = 1
        flat_pos = jnp.zeros((B, 1), jnp.int32)
    n_pred = B * P

    smem = pl.BlockSpec(memory_space=pltpu.MemorySpace.SMEM)
    vmem = pl.BlockSpec(memory_space=pltpu.MemorySpace.VMEM)
    weights = [packed[k] for k in _WEIGHT_ORDER]

    kernel = functools.partial(
        bert_fused_kernel, batch=B, seq=S, num_heads=NUM_HEADS,
        num_layers=NUM_LAYERS, num_pred=n_pred)

    # TODO(synk): on v7x, reinstate a leading "parallel" batch grid (or a
    # core_map over the 2-TC mesh) to use the second TensorCore.
    enc, mlm_pad, nsp_pad = pl.pallas_call(
        kernel,
        out_shape=(
            jax.ShapeDtypeStruct((B * S, H), jnp.float32),
            jax.ShapeDtypeStruct((n_pred, LANE), jnp.float32),
            jax.ShapeDtypeStruct((B, LANE), jnp.float32),
        ),
        in_specs=[smem, vmem, vmem] + [vmem] * len(weights),
        out_specs=(vmem, vmem, vmem),
    )(vlens, flat_pos, x, *weights)

    encoded_x = enc.reshape(B, S, H)
    mlm_y_hat = (mlm_pad[:, :VOCAB_SIZE].reshape(B, P, VOCAB_SIZE)
                 if has_positions else None)
    nsp_y_hat = nsp_pad[:, :2]
    return encoded_x, mlm_y_hat, nsp_y_hat


# ---------------------------------- main -------------------------------------
if __name__ == "__main__":
    B, S = 2, 8
    key = jax.random.PRNGKey(0)
    k_param, k_tok, k_seg = jax.random.split(key, 3)

    params = init_params(k_param)

    tokens = jax.random.randint(k_tok, (B, S), 0, VOCAB_SIZE, dtype=jnp.int32)
    segments = jnp.concatenate(
        [jnp.zeros((B, S // 2), jnp.int32), jnp.ones((B, S // 2), jnp.int32)], axis=1)
    valid_lens = jnp.array([8, 5], jnp.int32)
    positions = jnp.array([[1, 2, 3], [0, 4, 6]], jnp.int32)

    forward = jax.jit(bert_forward)
    encoded_x, mlm_y_hat, nsp_y_hat = forward(
        params, tokens, segments, valid_lens, positions)

    jax.block_until_ready((encoded_x, mlm_y_hat, nsp_y_hat))
    assert encoded_x.shape == (B, S, EMBEDDING_DIM)
    assert mlm_y_hat.shape == (B, 3, VOCAB_SIZE)
    assert nsp_y_hat.shape == (B, 2)
    print("KERNEL_OK")
</pallas_src>

<mosaic_0001>
module attributes {stable_mosaic.version = 11 : i64} {
  func.func @bert_fused_kernel(%arg0: memref<2xi32, #tpu.memory_space<smem>>, %arg1: memref<6x1xi32, #tpu.memory_space<vmem>>, %arg2: memref<16x32xf32, #tpu.memory_space<vmem>>, %arg3: memref<12x32x16xbf16, #tpu.memory_space<vmem>>, %arg4: memref<12x1x16xf32, #tpu.memory_space<vmem>>, %arg5: memref<4x16x32xbf16, #tpu.memory_space<vmem>>, %arg6: memref<2x32x64xbf16, #tpu.memory_space<vmem>>, %arg7: memref<2x1x64xf32, #tpu.memory_space<vmem>>, %arg8: memref<2x64x32xbf16, #tpu.memory_space<vmem>>, %arg9: memref<12x1x32xf32, #tpu.memory_space<vmem>>, %arg10: memref<2x32x32xbf16, #tpu.memory_space<vmem>>, %arg11: memref<2x32x128xbf16, #tpu.memory_space<vmem>>, %arg12: memref<4x1x32xf32, #tpu.memory_space<vmem>>, %arg13: memref<2x1x128xf32, #tpu.memory_space<vmem>>, %arg14: memref<16x32xf32, #tpu.memory_space<vmem>>, %arg15: memref<6x128xf32, #tpu.memory_space<vmem>>, %arg16: memref<2x128xf32, #tpu.memory_space<vmem>>) attributes {dimension_semantics = [], scalar_prefetch = 0 : i64, scratch_operands = 0 : i64, tpu.core_type = #tpu.core_type<tc>} {
    %c0 = arith.constant 0 : index
    %c0_0 = arith.constant 0 : index
    %0 = vector.load %arg2[%c0, %c0_0] : memref<16x32xf32, #tpu.memory_space<vmem>>, vector<16x32xf32>
    %1 = tpu.iota {dimensions = array<i32: 1>} : vector<8x8xi32>
    %c0_1 = arith.constant 0 : index
    %2 = memref.load %arg0[%c0_1] : memref<2xi32, #tpu.memory_space<smem>>
    %3 = vector.broadcast %2 : i32 to vector<8x8xi32>
    %4 = arith.cmpi slt, %1, %3 : vector<8x8xi32>
    %c1 = arith.constant 1 : index
    %5 = memref.load %arg0[%c1] : memref<2xi32, #tpu.memory_space<smem>>
    %6 = vector.broadcast %5 : i32 to vector<8x8xi32>
    %7 = arith.cmpi slt, %1, %6 : vector<8x8xi32>
    %8 = vector.extract_strided_slice %0 {offsets = [0, 0], sizes = [8, 32], strides = [1, 1]} : vector<16x32xf32> to vector<8x32xf32>
    %9 = arith.truncf %8 : vector<8x32xf32> to vector<8x32xbf16>
    %c0_2 = arith.constant 0 : index
    %c0_3 = arith.constant 0 : index
    %c0_4 = arith.constant 0 : index
    %10 = vector.load %arg3[%c0_2, %c0_3, %c0_4] : memref<12x32x16xbf16, #tpu.memory_space<vmem>>, vector<1x32x16xbf16>
    %11 = vector.shape_cast %10 : vector<1x32x16xbf16> to vector<32x16xbf16>
    %cst = arith.constant dense<0.000000e+00> : vector<8x16xf32>
    %12 = tpu.matmul %9, %11, %cst {dimension_numbers = #tpu.dot_dimension_numbers<[1], [0], [0], [1], [0, 0, 1, 1], [], []>} : vector<8x32xbf16>, vector<32x16xbf16>, vector<8x16xf32> -> vector<8x16xf32>
    %c0_5 = arith.constant 0 : index
    %c0_6 = arith.constant 0 : index
    %c0_7 = arith.constant 0 : index
    %13 = vector.load %arg4[%c0_5, %c0_6, %c0_7] : memref<12x1x16xf32, #tpu.memory_space<vmem>>, vector<1x1x16xf32>
    %14 = vector.shape_cast %13 : vector<1x1x16xf32> to vector<1x16xf32>
    %15 = vector.broadcast %14 : vector<1x16xf32> to vector<8x16xf32>
    %16 = arith.addf %12, %15 : vector<8x16xf32>
    %c1_8 = arith.constant 1 : index
    %c0_9 = arith.constant 0 : index
    %c0_10 = arith.constant 0 : index
    %17 = vector.load %arg3[%c1_8, %c0_9, %c0_10] : memref<12x32x16xbf16, #tpu.memory_space<vmem>>, vector<1x32x16xbf16>
    %18 = vector.shape_cast %17 : vector<1x32x16xbf16> to vector<32x16xbf16>
    %cst_11 = arith.constant dense<0.000000e+00> : vector<8x16xf32>
    %19 = tpu.matmul %9, %18, %cst_11 {dimension_numbers = #tpu.dot_dimension_numbers<[1], [0], [0], [1], [0, 0, 1, 1], [], []>} : vector<8x32xbf16>, vector<32x16xbf16>, vector<8x16xf32> -> vector<8x16xf32>
    %c1_12 = arith.constant 1 : index
    %c0_13 = arith.constant 0 : index
    %c0_14 = arith.constant 0 : index
    %20 = vector.load %arg4[%c1_12, %c0_13, %c0_14] : memref<12x1x16xf32, #tpu.memory_space<vmem>>, vector<1x1x16xf32>
    %21 = vector.shape_cast %20 : vector<1x1x16xf32> to vector<1x16xf32>
    %22 = vector.broadcast %21 : vector<1x16xf32> to vector<8x16xf32>
    %23 = arith.addf %19, %22 : vector<8x16xf32>
    %c2 = arith.constant 2 : index
    %c0_15 = arith.constant 0 : index
    %c0_16 = arith.constant 0 : index
    %24 = vector.load %arg3[%c2, %c0_15, %c0_16] : memref<12x32x16xbf16, #tpu.memory_space<vmem>>, vector<1x32x16xbf16>
    %25 = vector.shape_cast %24 : vector<1x32x16xbf16> to vector<32x16xbf16>
    %cst_17 = arith.constant dense<0.000000e+00> : vector<8x16xf32>
    %26 = tpu.matmul %9, %25, %cst_17 {dimension_numbers = #tpu.dot_dimension_numbers<[1], [0], [0], [1], [0, 0, 1, 1], [], []>} : vector<8x32xbf16>, vector<32x16xbf16>, vector<8x16xf32> -> vector<8x16xf32>
    %c2_18 = arith.constant 2 : index
    %c0_19 = arith.constant 0 : index
    %c0_20 = arith.constant 0 : index
    %27 = vector.load %arg4[%c2_18, %c0_19, %c0_20] : memref<12x1x16xf32, #tpu.memory_space<vmem>>, vector<1x1x16xf32>
    %28 = vector.shape_cast %27 : vector<1x1x16xf32> to vector<1x16xf32>
    %29 = vector.broadcast %28 : vector<1x16xf32> to vector<8x16xf32>
    %30 = arith.addf %26, %29 : vector<8x16xf32>
    %31 = arith.truncf %16 : vector<8x16xf32> to vector<8x16xbf16>
    %32 = arith.truncf %23 : vector<8x16xf32> to vector<8x16xbf16>
    %cst_21 = arith.constant dense<0.000000e+00> : vector<8x8xf32>
    %33 = tpu.matmul %31, %32, %cst_21 {dimension_numbers = #tpu.dot_dimension_numbers<[1], [1], [0], [0], [0, 0, 1, 0], [], []>} : vector<8x16xbf16>, vector<8x16xbf16>, vector<8x8xf32> -> vector<8x8xf32>
    %cst_22 = arith.constant -1.000000e+06 : f32
    %34 = vector.broadcast %cst_22 : f32 to vector<8x8xf32>
    %35 = arith.select %4, %33, %34 : vector<8x8xi1>, vector<8x8xf32>
    %cst_23 = arith.constant dense<0xFF800000> : vector<8xf32>
    %36 = vector.multi_reduction <maximumf>, %35, %cst_23 [1] : vector<8x8xf32> to vector<8xf32>
    %37 = vector.shape_cast %36 : vector<8xf32> to vector<8x1xf32>
    %38 = vector.broadcast %37 : vector<8x1xf32> to vector<8x8xf32>
    %39 = arith.subf %35, %38 : vector<8x8xf32>
    %40 = math.exp %39 : vector<8x8xf32>
    %cst_24 = arith.constant dense<0.000000e+00> : vector<8xf32>
    %41 = vector.multi_reduction <add>, %40, %cst_24 [1] : vector<8x8xf32> to vector<8xf32>
    %42 = vector.shape_cast %41 : vector<8xf32> to vector<8x1xf32>
    %43 = tpu.reciprocal %42 {approx = true} : vector<8x1xf32> -> vector<8x1xf32>
    %44 = vector.broadcast %43 : vector<8x1xf32> to vector<8x8xf32>
    %45 = arith.mulf %40, %44 : vector<8x8xf32>
    %46 = arith.truncf %45 : vector<8x8xf32> to vector<8x8xbf16>
    %47 = arith.truncf %30 : vector<8x16xf32> to vector<8x16xbf16>
    %cst_25 = arith.constant dense<0.000000e+00> : vector<8x16xf32>
    %48 = tpu.matmul %46, %47, %cst_25 {dimension_numbers = #tpu.dot_dimension_numbers<[1], [0], [0], [1], [0, 0, 1, 1], [], []>} : vector<8x8xbf16>, vector<8x16xbf16>, vector<8x16xf32> -> vector<8x16xf32>
    %49 = arith.truncf %48 : vector<8x16xf32> to vector<8x16xbf16>
    %c0_26 = arith.constant 0 : index
    %c0_27 = arith.constant 0 : index
    %c0_28 = arith.constant 0 : index
    %50 = vector.load %arg5[%c0_26, %c0_27, %c0_28] : memref<4x16x32xbf16, #tpu.memory_space<vmem>>, vector<1x16x32xbf16>
    %51 = vector.shape_cast %50 : vector<1x16x32xbf16> to vector<16x32xbf16>
    %cst_29 = arith.constant dense<0.000000e+00> : vector<8x32xf32>
    %52 = tpu.matmul %49, %51, %cst_29 {dimension_numbers = #tpu.dot_dimension_numbers<[1], [0], [0], [1], [0, 0, 1, 1], [], []>} : vector<8x16xbf16>, vector<16x32xbf16>, vector<8x32xf32> -> vector<8x32xf32>
    %c3 = arith.constant 3 : index
    %c0_30 = arith.constant 0 : index
    %c0_31 = arith.constant 0 : index
    %53 = vector.load %arg3[%c3, %c0_30, %c0_31] : memref<12x32x16xbf16, #tpu.memory_space<vmem>>, vector<1x32x16xbf16>
    %54 = vector.shape_cast %53 : vector<1x32x16xbf16> to vector<32x16xbf16>
    %cst_32 = arith.constant dense<0.000000e+00> : vector<8x16xf32>
    %55 = tpu.matmul %9, %54, %cst_32 {dimension_numbers = #tpu.dot_dimension_numbers<[1], [0], [0], [1], [0, 0, 1, 1], [], []>} : vector<8x32xbf16>, vector<32x16xbf16>, vector<8x16xf32> -> vector<8x16xf32>
    %c3_33 = arith.constant 3 : index
    %c0_34 = arith.constant 0 : index
    %c0_35 = arith.constant 0 : index
    %56 = vector.load %arg4[%c3_33, %c0_34, %c0_35] : memref<12x1x16xf32, #tpu.memory_space<vmem>>, vector<1x1x16xf32>
    %57 = vector.shape_cast %56 : vector<1x1x16xf32> to vector<1x16xf32>
    %58 = vector.broadcast %57 : vector<1x16xf32> to vector<8x16xf32>
    %59 = arith.addf %55, %58 : vector<8x16xf32>
    %c4 = arith.constant 4 : index
    %c0_36 = arith.constant 0 : index
    %c0_37 = arith.constant 0 : index
    %60 = vector.load %arg3[%c4, %c0_36, %c0_37] : memref<12x32x16xbf16, #tpu.memory_space<vmem>>, vector<1x32x16xbf16>
    %61 = vector.shape_cast %60 : vector<1x32x16xbf16> to vector<32x16xbf16>
    %cst_38 = arith.constant dense<0.000000e+00> : vector<8x16xf32>
    %62 = tpu.matmul %9, %61, %cst_38 {dimension_numbers = #tpu.dot_dimension_numbers<[1], [0], [0], [1], [0, 0, 1, 1], [], []>} : vector<8x32xbf16>, vector<32x16xbf16>, vector<8x16xf32> -> vector<8x16xf32>
    %c4_39 = arith.constant 4 : index
    %c0_40 = arith.constant 0 : index
    %c0_41 = arith.constant 0 : index
    %63 = vector.load %arg4[%c4_39, %c0_40, %c0_41] : memref<12x1x16xf32, #tpu.memory_space<vmem>>, vector<1x1x16xf32>
    %64 = vector.shape_cast %63 : vector<1x1x16xf32> to vector<1x16xf32>
    %65 = vector.broadcast %64 : vector<1x16xf32> to vector<8x16xf32>
    %66 = arith.addf %62, %65 : vector<8x16xf32>
    %c5 = arith.constant 5 : index
    %c0_42 = arith.constant 0 : index
    %c0_43 = arith.constant 0 : index
    %67 = vector.load %arg3[%c5, %c0_42, %c0_43] : memref<12x32x16xbf16, #tpu.memory_space<vmem>>, vector<1x32x16xbf16>
    %68 = vector.shape_cast %67 : vector<1x32x16xbf16> to vector<32x16xbf16>
    %cst_44 = arith.constant dense<0.000000e+00> : vector<8x16xf32>
    %69 = tpu.matmul %9, %68, %cst_44 {dimension_numbers = #tpu.dot_dimension_numbers<[1], [0], [0], [1], [0, 0, 1, 1], [], []>} : vector<8x32xbf16>, vector<32x16xbf16>, vector<8x16xf32> -> vector<8x16xf32>
    %c5_45 = arith.constant 5 : index
    %c0_46 = arith.constant 0 : index
    %c0_47 = arith.constant 0 : index
    %70 = vector.load %arg4[%c5_45, %c0_46, %c0_47] : memref<12x1x16xf32, #tpu.memory_space<vmem>>, vector<1x1x16xf32>
    %71 = vector.shape_cast %70 : vector<1x1x16xf32> to vector<1x16xf32>
    %72 = vector.broadcast %71 : vector<1x16xf32> to vector<8x16xf32>
    %73 = arith.addf %69, %72 : vector<8x16xf32>
    %74 = arith.truncf %59 : vector<8x16xf32> to vector<8x16xbf16>
    %75 = arith.truncf %66 : vector<8x16xf32> to vector<8x16xbf16>
    %cst_48 = arith.constant dense<0.000000e+00> : vector<8x8xf32>
    %76 = tpu.matmul %74, %75, %cst_48 {dimension_numbers = #tpu.dot_dimension_numbers<[1], [1], [0], [0], [0, 0, 1, 0], [], []>} : vector<8x16xbf16>, vector<8x16xbf16>, vector<8x8xf32> -> vector<8x8xf32>
    %cst_49 = arith.constant -1.000000e+06 : f32
    %77 = vector.broadcast %cst_49 : f32 to vector<8x8xf32>
    %78 = arith.select %4, %76, %77 : vector<8x8xi1>, vector<8x8xf32>
    %cst_50 = arith.constant dense<0xFF800000> : vector<8xf32>
    %79 = vector.multi_reduction <maximumf>, %78, %cst_50 [1] : vector<8x8xf32> to vector<8xf32>
    %80 = vector.shape_cast %79 : vector<8xf32> to vector<8x1xf32>
    %81 = vector.broadcast %80 : vector<8x1xf32> to vector<8x8xf32>
    %82 = arith.subf %78, %81 : vector<8x8xf32>
    %83 = math.exp %82 : vector<8x8xf32>
    %cst_51 = arith.constant dense<0.000000e+00> : vector<8xf32>
    %84 = vector.multi_reduction <add>, %83, %cst_51 [1] : vector<8x8xf32> to vector<8xf32>
    %85 = vector.shape_cast %84 : vector<8xf32> to vector<8x1xf32>
    %86 = tpu.reciprocal %85 {approx = true} : vector<8x1xf32> -> vector<8x1xf32>
    %87 = vector.broadcast %86 : vector<8x1xf32> to vector<8x8xf32>
    %88 = arith.mulf %83, %87 : vector<8x8xf32>
    %89 = arith.truncf %88 : vector<8x8xf32> to vector<8x8xbf16>
    %90 = arith.truncf %73 : vector<8x16xf32> to vector<8x16xbf16>
    %cst_52 = arith.constant dense<0.000000e+00> : vector<8x16xf32>
    %91 = tpu.matmul %89, %90, %cst_52 {dimension_numbers = #tpu.dot_dimension_numbers<[1], [0], [0], [1], [0, 0, 1, 1], [], []>} : vector<8x8xbf16>, vector<8x16xbf16>, vector<8x16xf32> -> vector<8x16xf32>
    %92 = arith.truncf %91 : vector<8x16xf32> to vector<8x16xbf16>
    %c1_53 = arith.constant 1 : index
    %c0_54 = arith.constant 0 : index
    %c0_55 = arith.constant 0 : index
    %93 = vector.load %arg5[%c1_53, %c0_54, %c0_55] : memref<4x16x32xbf16, #tpu.memory_space<vmem>>, vector<1x16x32xbf16>
    %94 = vector.shape_cast %93 : vector<1x16x32xbf16> to vector<16x32xbf16>
    %cst_56 = arith.constant dense<0.000000e+00> : vector<8x32xf32>
    %95 = tpu.matmul %92, %94, %cst_56 {dimension_numbers = #tpu.dot_dimension_numbers<[1], [0], [0], [1], [0, 0, 1, 1], [], []>} : vector<8x16xbf16>, vector<16x32xbf16>, vector<8x32xf32> -> vector<8x32xf32>
    %96 = arith.addf %52, %95 : vector<8x32xf32>
    %97 = vector.extract_strided_slice %0 {offsets = [8, 0], sizes = [8, 32], strides = [1, 1]} : vector<16x32xf32> to vector<8x32xf32>
    %98 = arith.truncf %97 : vector<8x32xf32> to vector<8x32xbf16>
    %c0_57 = arith.constant 0 : index
    %c0_58 = arith.constant 0 : index
    %c0_59 = arith.constant 0 : index
    %99 = vector.load %arg3[%c0_57, %c0_58, %c0_59] : memref<12x32x16xbf16, #tpu.memory_space<vmem>>, vector<1x32x16xbf16>
    %100 = vector.shape_cast %99 : vector<1x32x16xbf16> to vector<32x16xbf16>
    %cst_60 = arith.constant dense<0.000000e+00> : vector<8x16xf32>
    %101 = tpu.matmul %98, %100, %cst_60 {dimension_numbers = #tpu.dot_dimension_numbers<[1], [0], [0], [1], [0, 0, 1, 1], [], []>} : vector<8x32xbf16>, vector<32x16xbf16>, vector<8x16xf32> -> vector<8x16xf32>
    %c0_61 = arith.constant 0 : index
    %c0_62 = arith.constant 0 : index
    %c0_63 = arith.constant 0 : index
    %102 = vector.load %arg4[%c0_61, %c0_62, %c0_63] : memref<12x1x16xf32, #tpu.memory_space<vmem>>, vector<1x1x16xf32>
    %103 = vector.shape_cast %102 : vector<1x1x16xf32> to vector<1x16xf32>
    %104 = vector.broadcast %103 : vector<1x16xf32> to vector<8x16xf32>
    %105 = arith.addf %101, %104 : vector<8x16xf32>
    %c1_64 = arith.constant 1 : index
    %c0_65 = arith.constant 0 : index
    %c0_66 = arith.constant 0 : index
    %106 = vector.load %arg3[%c1_64, %c0_65, %c0_66] : memref<12x32x16xbf16, #tpu.memory_space<vmem>>, vector<1x32x16xbf16>
    %107 = vector.shape_cast %106 : vector<1x32x16xbf16> to vector<32x16xbf16>
    %cst_67 = arith.constant dense<0.000000e+00> : vector<8x16xf32>
    %108 = tpu.matmul %98, %107, %cst_67 {dimension_numbers = #tpu.dot_dimension_numbers<[1], [0], [0], [1], [0, 0, 1, 1], [], []>} : vector<8x32xbf16>, vector<32x16xbf16>, vector<8x16xf32> -> vector<8x16xf32>
    %c1_68 = arith.constant 1 : index
    %c0_69 = arith.constant 0 : index
    %c0_70 = arith.constant 0 : index
    %109 = vector.load %arg4[%c1_68, %c0_69, %c0_70] : memref<12x1x16xf32, #tpu.memory_space<vmem>>, vector<1x1x16xf32>
    %110 = vector.shape_cast %109 : vector<1x1x16xf32> to vector<1x16xf32>
    %111 = vector.broadcast %110 : vector<1x16xf32> to vector<8x16xf32>
    %112 = arith.addf %108, %111 : vector<8x16xf32>
    %c2_71 = arith.constant 2 : index
    %c0_72 = arith.constant 0 : index
    %c0_73 = arith.constant 0 : index
    %113 = vector.load %arg3[%c2_71, %c0_72, %c0_73] : memref<12x32x16xbf16, #tpu.memory_space<vmem>>, vector<1x32x16xbf16>
    %114 = vector.shape_cast %113 : vector<1x32x16xbf16> to vector<32x16xbf16>
    %cst_74 = arith.constant dense<0.000000e+00> : vector<8x16xf32>
    %115 = tpu.matmul %98, %114, %cst_74 {dimension_numbers = #tpu.dot_dimension_numbers<[1], [0], [0], [1], [0, 0, 1, 1], [], []>} : vector<8x32xbf16>, vector<32x16xbf16>, vector<8x16xf32> -> vector<8x16xf32>
    %c2_75 = arith.constant 2 : index
    %c0_76 = arith.constant 0 : index
    %c0_77 = arith.constant 0 : index
    %116 = vector.load %arg4[%c2_75, %c0_76, %c0_77] : memref<12x1x16xf32, #tpu.memory_space<vmem>>, vector<1x1x16xf32>
    %117 = vector.shape_cast %116 : vector<1x1x16xf32> to vector<1x16xf32>
    %118 = vector.broadcast %117 : vector<1x16xf32> to vector<8x16xf32>
    %119 = arith.addf %115, %118 : vector<8x16xf32>
    %120 = arith.truncf %105 : vector<8x16xf32> to vector<8x16xbf16>
    %121 = arith.truncf %112 : vector<8x16xf32> to vector<8x16xbf16>
    %cst_78 = arith.constant dense<0.000000e+00> : vector<8x8xf32>
    %122 = tpu.matmul %120, %121, %cst_78 {dimension_numbers = #tpu.dot_dimension_numbers<[1], [1], [0], [0], [0, 0, 1, 0], [], []>} : vector<8x16xbf16>, vector<8x16xbf16>, vector<8x8xf32> -> vector<8x8xf32>
    %cst_79 = arith.constant -1.000000e+06 : f32
    %123 = vector.broadcast %cst_79 : f32 to vector<8x8xf32>
    %124 = arith.select %7, %122, %123 : vector<8x8xi1>, vector<8x8xf32>
    %cst_80 = arith.constant dense<0xFF800000> : vector<8xf32>
    %125 = vector.multi_reduction <maximumf>, %124, %cst_80 [1] : vector<8x8xf32> to vector<8xf32>
    %126 = vector.shape_cast %125 : vector<8xf32> to vector<8x1xf32>
    %127 = vector.broadcast %126 : vector<8x1xf32> to vector<8x8xf32>
    %128 = arith.subf %124, %127 : vector<8x8xf32>
    %129 = math.exp %128 : vector<8x8xf32>
    %cst_81 = arith.constant dense<0.000000e+00> : vector<8xf32>
    %130 = vector.multi_reduction <add>, %129, %cst_81 [1] : vector<8x8xf32> to vector<8xf32>
    %131 = vector.shape_cast %130 : vector<8xf32> to vector<8x1xf32>
    %132 = tpu.reciprocal %131 {approx = true} : vector<8x1xf32> -> vector<8x1xf32>
    %133 = vector.broadcast %132 : vector<8x1xf32> to vector<8x8xf32>
    %134 = arith.mulf %129, %133 : vector<8x8xf32>
    %135 = arith.truncf %134 : vector<8x8xf32> to vector<8x8xbf16>
    %136 = arith.truncf %119 : vector<8x16xf32> to vector<8x16xbf16>
    %cst_82 = arith.constant dense<0.000000e+00> : vector<8x16xf32>
    %137 = tpu.matmul %135, %136, %cst_82 {dimension_numbers = #tpu.dot_dimension_numbers<[1], [0], [0], [1], [0, 0, 1, 1], [], []>} : vector<8x8xbf16>, vector<8x16xbf16>, vector<8x16xf32> -> vector<8x16xf32>
    %138 = arith.truncf %137 : vector<8x16xf32> to vector<8x16xbf16>
    %c0_83 = arith.constant 0 : index
    %c0_84 = arith.constant 0 : index
    %c0_85 = arith.constant 0 : index
    %139 = vector.load %arg5[%c0_83, %c0_84, %c0_85] : memref<4x16x32xbf16, #tpu.memory_space<vmem>>, vector<1x16x32xbf16>
    %140 = vector.shape_cast %139 : vector<1x16x32xbf16> to vector<16x32xbf16>
    %cst_86 = arith.constant dense<0.000000e+00> : vector<8x32xf32>
    %141 = tpu.matmul %138, %140, %cst_86 {dimension_numbers = #tpu.dot_dimension_numbers<[1], [0], [0], [1], [0, 0, 1, 1], [], []>} : vector<8x16xbf16>, vector<16x32xbf16>, vector<8x32xf32> -> vector<8x32xf32>
    %c3_87 = arith.constant 3 : index
    %c0_88 = arith.constant 0 : index
    %c0_89 = arith.constant 0 : index
    %142 = vector.load %arg3[%c3_87, %c0_88, %c0_89] : memref<12x32x16xbf16, #tpu.memory_space<vmem>>, vector<1x32x16xbf16>
    %143 = vector.shape_cast %142 : vector<1x32x16xbf16> to vector<32x16xbf16>
    %cst_90 = arith.constant dense<0.000000e+00> : vector<8x16xf32>
    %144 = tpu.matmul %98, %143, %cst_90 {dimension_numbers = #tpu.dot_dimension_numbers<[1], [0], [0], [1], [0, 0, 1, 1], [], []>} : vector<8x32xbf16>, vector<32x16xbf16>, vector<8x16xf32> -> vector<8x16xf32>
    %c3_91 = arith.constant 3 : index
    %c0_92 = arith.constant 0 : index
    %c0_93 = arith.constant 0 : index
    %145 = vector.load %arg4[%c3_91, %c0_92, %c0_93] : memref<12x1x16xf32, #tpu.memory_space<vmem>>, vector<1x1x16xf32>
    %146 = vector.shape_cast %145 : vector<1x1x16xf32> to vector<1x16xf32>
    %147 = vector.broadcast %146 : vector<1x16xf32> to vector<8x16xf32>
    %148 = arith.addf %144, %147 : vector<8x16xf32>
    %c4_94 = arith.constant 4 : index
    %c0_95 = arith.constant 0 : index
    %c0_96 = arith.constant 0 : index
    %149 = vector.load %arg3[%c4_94, %c0_95, %c0_96] : memref<12x32x16xbf16, #tpu.memory_space<vmem>>, vector<1x32x16xbf16>
    %150 = vector.shape_cast %149 : vector<1x32x16xbf16> to vector<32x16xbf16>
    %cst_97 = arith.constant dense<0.000000e+00> : vector<8x16xf32>
    %151 = tpu.matmul %98, %150, %cst_97 {dimension_numbers = #tpu.dot_dimension_numbers<[1], [0], [0], [1], [0, 0, 1, 1], [], []>} : vector<8x32xbf16>, vector<32x16xbf16>, vector<8x16xf32> -> vector<8x16xf32>
    %c4_98 = arith.constant 4 : index
    %c0_99 = arith.constant 0 : index
    %c0_100 = arith.constant 0 : index
    %152 = vector.load %arg4[%c4_98, %c0_99, %c0_100] : memref<12x1x16xf32, #tpu.memory_space<vmem>>, vector<1x1x16xf32>
    %153 = vector.shape_cast %152 : vector<1x1x16xf32> to vector<1x16xf32>
    %154 = vector.broadcast %153 : vector<1x16xf32> to vector<8x16xf32>
    %155 = arith.addf %151, %154 : vector<8x16xf32>
    %c5_101 = arith.constant 5 : index
    %c0_102 = arith.constant 0 : index
    %c0_103 = arith.constant 0 : index
    %156 = vector.load %arg3[%c5_101, %c0_102, %c0_103] : memref<12x32x16xbf16, #tpu.memory_space<vmem>>, vector<1x32x16xbf16>
    %157 = vector.shape_cast %156 : vector<1x32x16xbf16> to vector<32x16xbf16>
    %cst_104 = arith.constant dense<0.000000e+00> : vector<8x16xf32>
    %158 = tpu.matmul %98, %157, %cst_104 {dimension_numbers = #tpu.dot_dimension_numbers<[1], [0], [0], [1], [0, 0, 1, 1], [], []>} : vector<8x32xbf16>, vector<32x16xbf16>, vector<8x16xf32> -> vector<8x16xf32>
    %c5_105 = arith.constant 5 : index
    %c0_106 = arith.constant 0 : index
    %c0_107 = arith.constant 0 : index
    %159 = vector.load %arg4[%c5_105, %c0_106, %c0_107] : memref<12x1x16xf32, #tpu.memory_space<vmem>>, vector<1x1x16xf32>
    %160 = vector.shape_cast %159 : vector<1x1x16xf32> to vector<1x16xf32>
    %161 = vector.broadcast %160 : vector<1x16xf32> to vector<8x16xf32>
    %162 = arith.addf %158, %161 : vector<8x16xf32>
    %163 = arith.truncf %148 : vector<8x16xf32> to vector<8x16xbf16>
    %164 = arith.truncf %155 : vector<8x16xf32> to vector<8x16xbf16>
    %cst_108 = arith.constant dense<0.000000e+00> : vector<8x8xf32>
    %165 = tpu.matmul %163, %164, %cst_108 {dimension_numbers = #tpu.dot_dimension_numbers<[1], [1], [0], [0], [0, 0, 1, 0], [], []>} : vector<8x16xbf16>, vector<8x16xbf16>, vector<8x8xf32> -> vector<8x8xf32>
    %cst_109 = arith.constant -1.000000e+06 : f32
    %166 = vector.broadcast %cst_109 : f32 to vector<8x8xf32>
    %167 = arith.select %7, %165, %166 : vector<8x8xi1>, vector<8x8xf32>
    %cst_110 = arith.constant dense<0xFF800000> : vector<8xf32>
    %168 = vector.multi_reduction <maximumf>, %167, %cst_110 [1] : vector<8x8xf32> to vector<8xf32>
    %169 = vector.shape_cast %168 : vector<8xf32> to vector<8x1xf32>
    %170 = vector.broadcast %169 : vector<8x1xf32> to vector<8x8xf32>
    %171 = arith.subf %167, %170 : vector<8x8xf32>
    %172 = math.exp %171 : vector<8x8xf32>
    %cst_111 = arith.constant dense<0.000000e+00> : vector<8xf32>
    %173 = vector.multi_reduction <add>, %172, %cst_111 [1] : vector<8x8xf32> to vector<8xf32>
    %174 = vector.shape_cast %173 : vector<8xf32> to vector<8x1xf32>
    %175 = tpu.reciprocal %174 {approx = true} : vector<8x1xf32> -> vector<8x1xf32>
    %176 = vector.broadcast %175 : vector<8x1xf32> to vector<8x8xf32>
    %177 = arith.mulf %172, %176 : vector<8x8xf32>
    %178 = arith.truncf %177 : vector<8x8xf32> to vector<8x8xbf16>
    %179 = arith.truncf %162 : vector<8x16xf32> to vector<8x16xbf16>
    %cst_112 = arith.constant dense<0.000000e+00> : vector<8x16xf32>
    %180 = tpu.matmul %178, %179, %cst_112 {dimension_numbers = #tpu.dot_dimension_numbers<[1], [0], [0], [1], [0, 0, 1, 1], [], []>} : vector<8x8xbf16>, vector<8x16xbf16>, vector<8x16xf32> -> vector<8x16xf32>
    %181 = arith.truncf %180 : vector<8x16xf32> to vector<8x16xbf16>
    %c1_113 = arith.constant 1 : index
    %c0_114 = arith.constant 0 : index
    %c0_115 = arith.constant 0 : index
    %182 = vector.load %arg5[%c1_113, %c0_114, %c0_115] : memref<4x16x32xbf16, #tpu.memory_space<vmem>>, vector<1x16x32xbf16>
    %183 = vector.shape_cast %182 : vector<1x16x32xbf16> to vector<16x32xbf16>
    %cst_116 = arith.constant dense<0.000000e+00> : vector<8x32xf32>
    %184 = tpu.matmul %181, %183, %cst_116 {dimension_numbers = #tpu.dot_dimension_numbers<[1], [0], [0], [1], [0, 0, 1, 1], [], []>} : vector<8x16xbf16>, vector<16x32xbf16>, vector<8x32xf32> -> vector<8x32xf32>
    %185 = arith.addf %141, %184 : vector<8x32xf32>
    %186 = tpu.concatenate %96, %185 in 0 : vector<8x32xf32>, vector<8x32xf32> -> vector<16x32xf32>
    %187 = arith.addf %0, %186 : vector<16x32xf32>
    %c0_117 = arith.constant 0 : index
    %c0_118 = arith.constant 0 : index
    %c0_119 = arith.constant 0 : index
    %188 = vector.load %arg9[%c0_117, %c0_118, %c0_119] : memref<12x1x32xf32, #tpu.memory_space<vmem>>, vector<1x1x32xf32>
    %189 = vector.shape_cast %188 : vector<1x1x32xf32> to vector<1x32xf32>
    %190 = vector.broadcast %189 : vector<1x32xf32> to vector<16x32xf32>
    %191 = arith.addf %187, %190 : vector<16x32xf32>
    %c1_120 = arith.constant 1 : index
    %c0_121 = arith.constant 0 : index
    %c0_122 = arith.constant 0 : index
    %192 = vector.load %arg9[%c1_120, %c0_121, %c0_122] : memref<12x1x32xf32, #tpu.memory_space<vmem>>, vector<1x1x32xf32>
    %193 = vector.shape_cast %192 : vector<1x1x32xf32> to vector<1x32xf32>
    %c2_123 = arith.constant 2 : index
    %c0_124 = arith.constant 0 : index
    %c0_125 = arith.constant 0 : index
    %194 = vector.load %arg9[%c2_123, %c0_124, %c0_125] : memref<12x1x32xf32, #tpu.memory_space<vmem>>, vector<1x1x32xf32>
    %195 = vector.shape_cast %194 : vector<1x1x32xf32> to vector<1x32xf32>
    %cst_126 = arith.constant dense<0.000000e+00> : vector<16xf32>
    %196 = vector.multi_reduction <add>, %191, %cst_126 [1] : vector<16x32xf32> to vector<16xf32>
    %197 = vector.shape_cast %196 : vector<16xf32> to vector<16x1xf32>
    %cst_127 = arith.constant 3.200000e+01 : f32
    %198 = vector.broadcast %cst_127 : f32 to vector<16x1xf32>
    %199 = arith.divf %197, %198 : vector<16x1xf32>
    %200 = vector.broadcast %199 : vector<16x1xf32> to vector<16x32xf32>
    %201 = arith.subf %191, %200 : vector<16x32xf32>
    %202 = arith.mulf %201, %201 : vector<16x32xf32>
    %cst_128 = arith.constant dense<0.000000e+00> : vector<16xf32>
    %203 = vector.multi_reduction <add>, %202, %cst_128 [1] : vector<16x32xf32> to vector<16xf32>
    %204 = vector.shape_cast %203 : vector<16xf32> to vector<16x1xf32>
    %cst_129 = arith.constant 3.200000e+01 : f32
    %205 = vector.broadcast %cst_129 : f32 to vector<16x1xf32>
    %206 = arith.divf %204, %205 : vector<16x1xf32>
    %207 = vector.broadcast %199 : vector<16x1xf32> to vector<16x32xf32>
    %208 = arith.subf %191, %207 : vector<16x32xf32>
    %cst_130 = arith.constant 9.99999974E-6 : f32
    %209 = vector.broadcast %cst_130 : f32 to vector<16x1xf32>
    %210 = arith.addf %206, %209 : vector<16x1xf32>
    %211 = math.rsqrt %210 : vector<16x1xf32>
    %212 = vector.broadcast %211 : vector<16x1xf32> to vector<16x32xf32>
    %213 = arith.mulf %208, %212 : vector<16x32xf32>
    %214 = vector.broadcast %193 : vector<1x32xf32> to vector<16x32xf32>
    %215 = arith.mulf %213, %214 : vector<16x32xf32>
    %216 = vector.broadcast %195 : vector<1x32xf32> to vector<16x32xf32>
    %217 = arith.addf %215, %216 : vector<16x32xf32>
    %218 = arith.truncf %217 : vector<16x32xf32> to vector<16x32xbf16>
    %c0_131 = arith.constant 0 : index
    %c0_132 = arith.constant 0 : index
    %c0_133 = arith.constant 0 : index
    %219 = vector.load %arg6[%c0_131, %c0_132, %c0_133] : memref<2x32x64xbf16, #tpu.memory_space<vmem>>, vector<1x32x64xbf16>
    %220 = vector.shape_cast %219 : vector<1x32x64xbf16> to vector<32x64xbf16>
    %cst_134 = arith.constant dense<0.000000e+00> : vector<16x64xf32>
    %221 = tpu.matmul %218, %220, %cst_134 {dimension_numbers = #tpu.dot_dimension_numbers<[1], [0], [0], [1], [0, 0, 1, 1], [], []>} : vector<16x32xbf16>, vector<32x64xbf16>, vector<16x64xf32> -> vector<16x64xf32>
    %c0_135 = arith.constant 0 : index
    %c0_136 = arith.constant 0 : index
    %c0_137 = arith.constant 0 : index
    %222 = vector.load %arg7[%c0_135, %c0_136, %c0_137] : memref<2x1x64xf32, #tpu.memory_space<vmem>>, vector<1x1x64xf32>
    %223 = vector.shape_cast %222 : vector<1x1x64xf32> to vector<1x64xf32>
    %224 = vector.broadcast %223 : vector<1x64xf32> to vector<16x64xf32>
    %225 = arith.addf %221, %224 : vector<16x64xf32>
    %cst_138 = arith.constant 0.000000e+00 : f32
    %226 = vector.broadcast %cst_138 : f32 to vector<16x64xf32>
    %227 = arith.maximumf %225, %226 : vector<16x64xf32>
    %228 = arith.truncf %227 : vector<16x64xf32> to vector<16x64xbf16>
    %c0_139 = arith.constant 0 : index
    %c0_140 = arith.constant 0 : index
    %c0_141 = arith.constant 0 : index
    %229 = vector.load %arg8[%c0_139, %c0_140, %c0_141] : memref<2x64x32xbf16, #tpu.memory_space<vmem>>, vector<1x64x32xbf16>
    %230 = vector.shape_cast %229 : vector<1x64x32xbf16> to vector<64x32xbf16>
    %cst_142 = arith.constant dense<0.000000e+00> : vector<16x32xf32>
    %231 = tpu.matmul %228, %230, %cst_142 {dimension_numbers = #tpu.dot_dimension_numbers<[1], [0], [0], [1], [0, 0, 1, 1], [], []>} : vector<16x64xbf16>, vector<64x32xbf16>, vector<16x32xf32> -> vector<16x32xf32>
    %c3_143 = arith.constant 3 : index
    %c0_144 = arith.constant 0 : index
    %c0_145 = arith.constant 0 : index
    %232 = vector.load %arg9[%c3_143, %c0_144, %c0_145] : memref<12x1x32xf32, #tpu.memory_space<vmem>>, vector<1x1x32xf32>
    %233 = vector.shape_cast %232 : vector<1x1x32xf32> to vector<1x32xf32>
    %234 = vector.broadcast %233 : vector<1x32xf32> to vector<16x32xf32>
    %235 = arith.addf %231, %234 : vector<16x32xf32>
    %236 = arith.addf %217, %235 : vector<16x32xf32>
    %c4_146 = arith.constant 4 : index
    %c0_147 = arith.constant 0 : index
    %c0_148 = arith.constant 0 : index
    %237 = vector.load %arg9[%c4_146, %c0_147, %c0_148] : memref<12x1x32xf32, #tpu.memory_space<vmem>>, vector<1x1x32xf32>
    %238 = vector.shape_cast %237 : vector<1x1x32xf32> to vector<1x32xf32>
    %c5_149 = arith.constant 5 : index
    %c0_150 = arith.constant 0 : index
    %c0_151 = arith.constant 0 : index
    %239 = vector.load %arg9[%c5_149, %c0_150, %c0_151] : memref<12x1x32xf32, #tpu.memory_space<vmem>>, vector<1x1x32xf32>
    %240 = vector.shape_cast %239 : vector<1x1x32xf32> to vector<1x32xf32>
    %cst_152 = arith.constant dense<0.000000e+00> : vector<16xf32>
    %241 = vector.multi_reduction <add>, %236, %cst_152 [1] : vector<16x32xf32> to vector<16xf32>
    %242 = vector.shape_cast %241 : vector<16xf32> to vector<16x1xf32>
    %cst_153 = arith.constant 3.200000e+01 : f32
    %243 = vector.broadcast %cst_153 : f32 to vector<16x1xf32>
    %244 = arith.divf %242, %243 : vector<16x1xf32>
    %245 = vector.broadcast %244 : vector<16x1xf32> to vector<16x32xf32>
    %246 = arith.subf %236, %245 : vector<16x32xf32>
    %247 = arith.mulf %246, %246 : vector<16x32xf32>
    %cst_154 = arith.constant dense<0.000000e+00> : vector<16xf32>
    %248 = vector.multi_reduction <add>, %247, %cst_154 [1] : vector<16x32xf32> to vector<16xf32>
    %249 = vector.shape_cast %248 : vector<16xf32> to vector<16x1xf32>
    %cst_155 = arith.constant 3.200000e+01 : f32
    %250 = vector.broadcast %cst_155 : f32 to vector<16x1xf32>
    %251 = arith.divf %249, %250 : vector<16x1xf32>
    %252 = vector.broadcast %244 : vector<16x1xf32> to vector<16x32xf32>
    %253 = arith.subf %236, %252 : vector<16x32xf32>
    %cst_156 = arith.constant 9.99999974E-6 : f32
    %254 = vector.broadcast %cst_156 : f32 to vector<16x1xf32>
    %255 = arith.addf %251, %254 : vector<16x1xf32>
    %256 = math.rsqrt %255 : vector<16x1xf32>
    %257 = vector.broadcast %256 : vector<16x1xf32> to vector<16x32xf32>
    %258 = arith.mulf %253, %257 : vector<16x32xf32>
    %259 = vector.broadcast %238 : vector<1x32xf32> to vector<16x32xf32>
    %260 = arith.mulf %258, %259 : vector<16x32xf32>
    %261 = vector.broadcast %240 : vector<1x32xf32> to vector<16x32xf32>
    %262 = arith.addf %260, %261 : vector<16x32xf32>
    %263 = vector.extract_strided_slice %262 {offsets = [0, 0], sizes = [8, 32], strides = [1, 1]} : vector<16x32xf32> to vector<8x32xf32>
    %264 = arith.truncf %263 : vector<8x32xf32> to vector<8x32xbf16>
    %c6 = arith.constant 6 : index
    %c0_157 = arith.constant 0 : index
    %c0_158 = arith.constant 0 : index
    %265 = vector.load %arg3[%c6, %c0_157, %c0_158] : memref<12x32x16xbf16, #tpu.memory_space<vmem>>, vector<1x32x16xbf16>
    %266 = vector.shape_cast %265 : vector<1x32x16xbf16> to vector<32x16xbf16>
    %cst_159 = arith.constant dense<0.000000e+00> : vector<8x16xf32>
    %267 = tpu.matmul %264, %266, %cst_159 {dimension_numbers = #tpu.dot_dimension_numbers<[1], [0], [0], [1], [0, 0, 1, 1], [], []>} : vector<8x32xbf16>, vector<32x16xbf16>, vector<8x16xf32> -> vector<8x16xf32>
    %c6_160 = arith.constant 6 : index
    %c0_161 = arith.constant 0 : index
    %c0_162 = arith.constant 0 : index
    %268 = vector.load %arg4[%c6_160, %c0_161, %c0_162] : memref<12x1x16xf32, #tpu.memory_space<vmem>>, vector<1x1x16xf32>
    %269 = vector.shape_cast %268 : vector<1x1x16xf32> to vector<1x16xf32>
    %270 = vector.broadcast %269 : vector<1x16xf32> to vector<8x16xf32>
    %271 = arith.addf %267, %270 : vector<8x16xf32>
    %c7 = arith.constant 7 : index
    %c0_163 = arith.constant 0 : index
    %c0_164 = arith.constant 0 : index
    %272 = vector.load %arg3[%c7, %c0_163, %c0_164] : memref<12x32x16xbf16, #tpu.memory_space<vmem>>, vector<1x32x16xbf16>
    %273 = vector.shape_cast %272 : vector<1x32x16xbf16> to vector<32x16xbf16>
    %cst_165 = arith.constant dense<0.000000e+00> : vector<8x16xf32>
    %274 = tpu.matmul %264, %273, %cst_165 {dimension_numbers = #tpu.dot_dimension_numbers<[1], [0], [0], [1], [0, 0, 1, 1], [], []>} : vector<8x32xbf16>, vector<32x16xbf16>, vector<8x16xf32> -> vector<8x16xf32>
    %c7_166 = arith.constant 7 : index
    %c0_167 = arith.constant 0 : index
    %c0_168 = arith.constant 0 : index
    %275 = vector.load %arg4[%c7_166, %c0_167, %c0_168] : memref<12x1x16xf32, #tpu.memory_space<vmem>>, vector<1x1x16xf32>
    %276 = vector.shape_cast %275 : vector<1x1x16xf32> to vector<1x16xf32>
    %277 = vector.broadcast %276 : vector<1x16xf32> to vector<8x16xf32>
    %278 = arith.addf %274, %277 : vector<8x16xf32>
    %c8 = arith.constant 8 : index
    %c0_169 = arith.constant 0 : index
    %c0_170 = arith.constant 0 : index
    %279 = vector.load %arg3[%c8, %c0_169, %c0_170] : memref<12x32x16xbf16, #tpu.memory_space<vmem>>, vector<1x32x16xbf16>
    %280 = vector.shape_cast %279 : vector<1x32x16xbf16> to vector<32x16xbf16>
    %cst_171 = arith.constant dense<0.000000e+00> : vector<8x16xf32>
    %281 = tpu.matmul %264, %280, %cst_171 {dimension_numbers = #tpu.dot_dimension_numbers<[1], [0], [0], [1], [0, 0, 1, 1], [], []>} : vector<8x32xbf16>, vector<32x16xbf16>, vector<8x16xf32> -> vector<8x16xf32>
    %c8_172 = arith.constant 8 : index
    %c0_173 = arith.constant 0 : index
    %c0_174 = arith.constant 0 : index
    %282 = vector.load %arg4[%c8_172, %c0_173, %c0_174] : memref<12x1x16xf32, #tpu.memory_space<vmem>>, vector<1x1x16xf32>
    %283 = vector.shape_cast %282 : vector<1x1x16xf32> to vector<1x16xf32>
    %284 = vector.broadcast %283 : vector<1x16xf32> to vector<8x16xf32>
    %285 = arith.addf %281, %284 : vector<8x16xf32>
    %286 = arith.truncf %271 : vector<8x16xf32> to vector<8x16xbf16>
    %287 = arith.truncf %278 : vector<8x16xf32> to vector<8x16xbf16>
    %cst_175 = arith.constant dense<0.000000e+00> : vector<8x8xf32>
    %288 = tpu.matmul %286, %287, %cst_175 {dimension_numbers = #tpu.dot_dimension_numbers<[1], [1], [0], [0], [0, 0, 1, 0], [], []>} : vector<8x16xbf16>, vector<8x16xbf16>, vector<8x8xf32> -> vector<8x8xf32>
    %cst_176 = arith.constant -1.000000e+06 : f32
    %289 = vector.broadcast %cst_176 : f32 to vector<8x8xf32>
    %290 = arith.select %4, %288, %289 : vector<8x8xi1>, vector<8x8xf32>
    %cst_177 = arith.constant dense<0xFF800000> : vector<8xf32>
    %291 = vector.multi_reduction <maximumf>, %290, %cst_177 [1] : vector<8x8xf32> to vector<8xf32>
    %292 = vector.shape_cast %291 : vector<8xf32> to vector<8x1xf32>
    %293 = vector.broadcast %292 : vector<8x1xf32> to vector<8x8xf32>
    %294 = arith.subf %290, %293 : vector<8x8xf32>
    %295 = math.exp %294 : vector<8x8xf32>
    %cst_178 = arith.constant dense<0.000000e+00> : vector<8xf32>
    %296 = vector.multi_reduction <add>, %295, %cst_178 [1] : vector<8x8xf32> to vector<8xf32>
    %297 = vector.shape_cast %296 : vector<8xf32> to vector<8x1xf32>
    %298 = tpu.reciprocal %297 {approx = true} : vector<8x1xf32> -> vector<8x1xf32>
    %299 = vector.broadcast %298 : vector<8x1xf32> to vector<8x8xf32>
    %300 = arith.mulf %295, %299 : vector<8x8xf32>
    %301 = arith.truncf %300 : vector<8x8xf32> to vector<8x8xbf16>
    %302 = arith.truncf %285 : vector<8x16xf32> to vector<8x16xbf16>
    %cst_179 = arith.constant dense<0.000000e+00> : vector<8x16xf32>
    %303 = tpu.matmul %301, %302, %cst_179 {dimension_numbers = #tpu.dot_dimension_numbers<[1], [0], [0], [1], [0, 0, 1, 1], [], []>} : vector<8x8xbf16>, vector<8x16xbf16>, vector<8x16xf32> -> vector<8x16xf32>
    %304 = arith.truncf %303 : vector<8x16xf32> to vector<8x16xbf16>
    %c2_180 = arith.constant 2 : index
    %c0_181 = arith.constant 0 : index
    %c0_182 = arith.constant 0 : index
    %305 = vector.load %arg5[%c2_180, %c0_181, %c0_182] : memref<4x16x32xbf16, #tpu.memory_space<vmem>>, vector<1x16x32xbf16>
    %306 = vector.shape_cast %305 : vector<1x16x32xbf16> to vector<16x32xbf16>
    %cst_183 = arith.constant dense<0.000000e+00> : vector<8x32xf32>
    %307 = tpu.matmul %304, %306, %cst_183 {dimension_numbers = #tpu.dot_dimension_numbers<[1], [0], [0], [1], [0, 0, 1, 1], [], []>} : vector<8x16xbf16>, vector<16x32xbf16>, vector<8x32xf32> -> vector<8x32xf32>
    %c9 = arith.constant 9 : index
    %c0_184 = arith.constant 0 : index
    %c0_185 = arith.constant 0 : index
    %308 = vector.load %arg3[%c9, %c0_184, %c0_185] : memref<12x32x16xbf16, #tpu.memory_space<vmem>>, vector<1x32x16xbf16>
    %309 = vector.shape_cast %308 : vector<1x32x16xbf16> to vector<32x16xbf16>
    %cst_186 = arith.constant dense<0.000000e+00> : vector<8x16xf32>
    %310 = tpu.matmul %264, %309, %cst_186 {dimension_numbers = #tpu.dot_dimension_numbers<[1], [0], [0], [1], [0, 0, 1, 1], [], []>} : vector<8x32xbf16>, vector<32x16xbf16>, vector<8x16xf32> -> vector<8x16xf32>
    %c9_187 = arith.constant 9 : index
    %c0_188 = arith.constant 0 : index
    %c0_189 = arith.constant 0 : index
    %311 = vector.load %arg4[%c9_187, %c0_188, %c0_189] : memref<12x1x16xf32, #tpu.memory_space<vmem>>, vector<1x1x16xf32>
    %312 = vector.shape_cast %311 : vector<1x1x16xf32> to vector<1x16xf32>
    %313 = vector.broadcast %312 : vector<1x16xf32> to vector<8x16xf32>
    %314 = arith.addf %310, %313 : vector<8x16xf32>
    %c10 = arith.constant 10 : index
    %c0_190 = arith.constant 0 : index
    %c0_191 = arith.constant 0 : index
    %315 = vector.load %arg3[%c10, %c0_190, %c0_191] : memref<12x32x16xbf16, #tpu.memory_space<vmem>>, vector<1x32x16xbf16>
    %316 = vector.shape_cast %315 : vector<1x32x16xbf16> to vector<32x16xbf16>
    %cst_192 = arith.constant dense<0.000000e+00> : vector<8x16xf32>
    %317 = tpu.matmul %264, %316, %cst_192 {dimension_numbers = #tpu.dot_dimension_numbers<[1], [0], [0], [1], [0, 0, 1, 1], [], []>} : vector<8x32xbf16>, vector<32x16xbf16>, vector<8x16xf32> -> vector<8x16xf32>
    %c10_193 = arith.constant 10 : index
    %c0_194 = arith.constant 0 : index
    %c0_195 = arith.constant 0 : index
    %318 = vector.load %arg4[%c10_193, %c0_194, %c0_195] : memref<12x1x16xf32, #tpu.memory_space<vmem>>, vector<1x1x16xf32>
    %319 = vector.shape_cast %318 : vector<1x1x16xf32> to vector<1x16xf32>
    %320 = vector.broadcast %319 : vector<1x16xf32> to vector<8x16xf32>
    %321 = arith.addf %317, %320 : vector<8x16xf32>
    %c11 = arith.constant 11 : index
    %c0_196 = arith.constant 0 : index
    %c0_197 = arith.constant 0 : index
    %322 = vector.load %arg3[%c11, %c0_196, %c0_197] : memref<12x32x16xbf16, #tpu.memory_space<vmem>>, vector<1x32x16xbf16>
    %323 = vector.shape_cast %322 : vector<1x32x16xbf16> to vector<32x16xbf16>
    %cst_198 = arith.constant dense<0.000000e+00> : vector<8x16xf32>
    %324 = tpu.matmul %264, %323, %cst_198 {dimension_numbers = #tpu.dot_dimension_numbers<[1], [0], [0], [1], [0, 0, 1, 1], [], []>} : vector<8x32xbf16>, vector<32x16xbf16>, vector<8x16xf32> -> vector<8x16xf32>
    %c11_199 = arith.constant 11 : index
    %c0_200 = arith.constant 0 : index
    %c0_201 = arith.constant 0 : index
    %325 = vector.load %arg4[%c11_199, %c0_200, %c0_201] : memref<12x1x16xf32, #tpu.memory_space<vmem>>, vector<1x1x16xf32>
    %326 = vector.shape_cast %325 : vector<1x1x16xf32> to vector<1x16xf32>
    %327 = vector.broadcast %326 : vector<1x16xf32> to vector<8x16xf32>
    %328 = arith.addf %324, %327 : vector<8x16xf32>
    %329 = arith.truncf %314 : vector<8x16xf32> to vector<8x16xbf16>
    %330 = arith.truncf %321 : vector<8x16xf32> to vector<8x16xbf16>
    %cst_202 = arith.constant dense<0.000000e+00> : vector<8x8xf32>
    %331 = tpu.matmul %329, %330, %cst_202 {dimension_numbers = #tpu.dot_dimension_numbers<[1], [1], [0], [0], [0, 0, 1, 0], [], []>} : vector<8x16xbf16>, vector<8x16xbf16>, vector<8x8xf32> -> vector<8x8xf32>
    %cst_203 = arith.constant -1.000000e+06 : f32
    %332 = vector.broadcast %cst_203 : f32 to vector<8x8xf32>
    %333 = arith.select %4, %331, %332 : vector<8x8xi1>, vector<8x8xf32>
    %cst_204 = arith.constant dense<0xFF800000> : vector<8xf32>
    %334 = vector.multi_reduction <maximumf>, %333, %cst_204 [1] : vector<8x8xf32> to vector<8xf32>
    %335 = vector.shape_cast %334 : vector<8xf32> to vector<8x1xf32>
    %336 = vector.broadcast %335 : vector<8x1xf32> to vector<8x8xf32>
    %337 = arith.subf %333, %336 : vector<8x8xf32>
    %338 = math.exp %337 : vector<8x8xf32>
    %cst_205 = arith.constant dense<0.000000e+00> : vector<8xf32>
    %339 = vector.multi_reduction <add>, %338, %cst_205 [1] : vector<8x8xf32> to vector<8xf32>
    %340 = vector.shape_cast %339 : vector<8xf32> to vector<8x1xf32>
    %341 = tpu.reciprocal %340 {approx = true} : vector<8x1xf32> -> vector<8x1xf32>
    %342 = vector.broadcast %341 : vector<8x1xf32> to vector<8x8xf32>
    %343 = arith.mulf %338, %342 : vector<8x8xf32>
    %344 = arith.truncf %343 : vector<8x8xf32> to vector<8x8xbf16>
    %345 = arith.truncf %328 : vector<8x16xf32> to vector<8x16xbf16>
    %cst_206 = arith.constant dense<0.000000e+00> : vector<8x16xf32>
    %346 = tpu.matmul %344, %345, %cst_206 {dimension_numbers = #tpu.dot_dimension_numbers<[1], [0], [0], [1], [0, 0, 1, 1], [], []>} : vector<8x8xbf16>, vector<8x16xbf16>, vector<8x16xf32> -> vector<8x16xf32>
    %347 = arith.truncf %346 : vector<8x16xf32> to vector<8x16xbf16>
    %c3_207 = arith.constant 3 : index
    %c0_208 = arith.constant 0 : index
    %c0_209 = arith.constant 0 : index
    %348 = vector.load %arg5[%c3_207, %c0_208, %c0_209] : memref<4x16x32xbf16, #tpu.memory_space<vmem>>, vector<1x16x32xbf16>
    %349 = vector.shape_cast %348 : vector<1x16x32xbf16> to vector<16x32xbf16>
    %cst_210 = arith.constant dense<0.000000e+00> : vector<8x32xf32>
    %350 = tpu.matmul %347, %349, %cst_210 {dimension_numbers = #tpu.dot_dimension_numbers<[1], [0], [0], [1], [0, 0, 1, 1], [], []>} : vector<8x16xbf16>, vector<16x32xbf16>, vector<8x32xf32> -> vector<8x32xf32>
    %351 = arith.addf %307, %350 : vector<8x32xf32>
    %352 = vector.extract_strided_slice %262 {offsets = [8, 0], sizes = [8, 32], strides = [1, 1]} : vector<16x32xf32> to vector<8x32xf32>
    %353 = arith.truncf %352 : vector<8x32xf32> to vector<8x32xbf16>
    %c6_211 = arith.constant 6 : index
    %c0_212 = arith.constant 0 : index
    %c0_213 = arith.constant 0 : index
    %354 = vector.load %arg3[%c6_211, %c0_212, %c0_213] : memref<12x32x16xbf16, #tpu.memory_space<vmem>>, vector<1x32x16xbf16>
    %355 = vector.shape_cast %354 : vector<1x32x16xbf16> to vector<32x16xbf16>
    %cst_214 = arith.constant dense<0.000000e+00> : vector<8x16xf32>
    %356 = tpu.matmul %353, %355, %cst_214 {dimension_numbers = #tpu.dot_dimension_numbers<[1], [0], [0], [1], [0, 0, 1, 1], [], []>} : vector<8x32xbf16>, vector<32x16xbf16>, vector<8x16xf32> -> vector<8x16xf32>
    %c6_215 = arith.constant 6 : index
    %c0_216 = arith.constant 0 : index
    %c0_217 = arith.constant 0 : index
    %357 = vector.load %arg4[%c6_215, %c0_216, %c0_217] : memref<12x1x16xf32, #tpu.memory_space<vmem>>, vector<1x1x16xf32>
    %358 = vector.shape_cast %357 : vector<1x1x16xf32> to vector<1x16xf32>
    %359 = vector.broadcast %358 : vector<1x16xf32> to vector<8x16xf32>
    %360 = arith.addf %356, %359 : vector<8x16xf32>
    %c7_218 = arith.constant 7 : index
    %c0_219 = arith.constant 0 : index
    %c0_220 = arith.constant 0 : index
    %361 = vector.load %arg3[%c7_218, %c0_219, %c0_220] : memref<12x32x16xbf16, #tpu.memory_space<vmem>>, vector<1x32x16xbf16>
    %362 = vector.shape_cast %361 : vector<1x32x16xbf16> to vector<32x16xbf16>
    %cst_221 = arith.constant dense<0.000000e+00> : vector<8x16xf32>
    %363 = tpu.matmul %353, %362, %cst_221 {dimension_numbers = #tpu.dot_dimension_numbers<[1], [0], [0], [1], [0, 0, 1, 1], [], []>} : vector<8x32xbf16>, vector<32x16xbf16>, vector<8x16xf32> -> vector<8x16xf32>
    %c7_222 = arith.constant 7 : index
    %c0_223 = arith.constant 0 : index
    %c0_224 = arith.constant 0 : index
    %364 = vector.load %arg4[%c7_222, %c0_223, %c0_224] : memref<12x1x16xf32, #tpu.memory_space<vmem>>, vector<1x1x16xf32>
    %365 = vector.shape_cast %364 : vector<1x1x16xf32> to vector<1x16xf32>
    %366 = vector.broadcast %365 : vector<1x16xf32> to vector<8x16xf32>
    %367 = arith.addf %363, %366 : vector<8x16xf32>
    %c8_225 = arith.constant 8 : index
    %c0_226 = arith.constant 0 : index
    %c0_227 = arith.constant 0 : index
    %368 = vector.load %arg3[%c8_225, %c0_226, %c0_227] : memref<12x32x16xbf16, #tpu.memory_space<vmem>>, vector<1x32x16xbf16>
    %369 = vector.shape_cast %368 : vector<1x32x16xbf16> to vector<32x16xbf16>
    %cst_228 = arith.constant dense<0.000000e+00> : vector<8x16xf32>
    %370 = tpu.matmul %353, %369, %cst_228 {dimension_numbers = #tpu.dot_dimension_numbers<[1], [0], [0], [1], [0, 0, 1, 1], [], []>} : vector<8x32xbf16>, vector<32x16xbf16>, vector<8x16xf32> -> vector<8x16xf32>
    %c8_229 = arith.constant 8 : index
    %c0_230 = arith.constant 0 : index
    %c0_231 = arith.constant 0 : index
    %371 = vector.load %arg4[%c8_229, %c0_230, %c0_231] : memref<12x1x16xf32, #tpu.memory_space<vmem>>, vector<1x1x16xf32>
    %372 = vector.shape_cast %371 : vector<1x1x16xf32> to vector<1x16xf32>
    %373 = vector.broadcast %372 : vector<1x16xf32> to vector<8x16xf32>
    %374 = arith.addf %370, %373 : vector<8x16xf32>
    %375 = arith.truncf %360 : vector<8x16xf32> to vector<8x16xbf16>
    %376 = arith.truncf %367 : vector<8x16xf32> to vector<8x16xbf16>
    %cst_232 = arith.constant dense<0.000000e+00> : vector<8x8xf32>
    %377 = tpu.matmul %375, %376, %cst_232 {dimension_numbers = #tpu.dot_dimension_numbers<[1], [1], [0], [0], [0, 0, 1, 0], [], []>} : vector<8x16xbf16>, vector<8x16xbf16>, vector<8x8xf32> -> vector<8x8xf32>
    %cst_233 = arith.constant -1.000000e+06 : f32
    %378 = vector.broadcast %cst_233 : f32 to vector<8x8xf32>
    %379 = arith.select %7, %377, %378 : vector<8x8xi1>, vector<8x8xf32>
    %cst_234 = arith.constant dense<0xFF800000> : vector<8xf32>
    %380 = vector.multi_reduction <maximumf>, %379, %cst_234 [1] : vector<8x8xf32> to vector<8xf32>
    %381 = vector.shape_cast %380 : vector<8xf32> to vector<8x1xf32>
    %382 = vector.broadcast %381 : vector<8x1xf32> to vector<8x8xf32>
    %383 = arith.subf %379, %382 : vector<8x8xf32>
    %384 = math.exp %383 : vector<8x8xf32>
    %cst_235 = arith.constant dense<0.000000e+00> : vector<8xf32>
    %385 = vector.multi_reduction <add>, %384, %cst_235 [1] : vector<8x8xf32> to vector<8xf32>
    %386 = vector.shape_cast %385 : vector<8xf32> to vector<8x1xf32>
    %387 = tpu.reciprocal %386 {approx = true} : vector<8x1xf32> -> vector<8x1xf32>
    %388 = vector.broadcast %387 : vector<8x1xf32> to vector<8x8xf32>
    %389 = arith.mulf %384, %388 : vector<8x8xf32>
    %390 = arith.truncf %389 : vector<8x8xf32> to vector<8x8xbf16>
    %391 = arith.truncf %374 : vector<8x16xf32> to vector<8x16xbf16>
    %cst_236 = arith.constant dense<0.000000e+00> : vector<8x16xf32>
    %392 = tpu.matmul %390, %391, %cst_236 {dimension_numbers = #tpu.dot_dimension_numbers<[1], [0], [0], [1], [0, 0, 1, 1], [], []>} : vector<8x8xbf16>, vector<8x16xbf16>, vector<8x16xf32> -> vector<8x16xf32>
    %393 = arith.truncf %392 : vector<8x16xf32> to vector<8x16xbf16>
    %c2_237 = arith.constant 2 : index
    %c0_238 = arith.constant 0 : index
    %c0_239 = arith.constant 0 : index
    %394 = vector.load %arg5[%c2_237, %c0_238, %c0_239] : memref<4x16x32xbf16, #tpu.memory_space<vmem>>, vector<1x16x32xbf16>
    %395 = vector.shape_cast %394 : vector<1x16x32xbf16> to vector<16x32xbf16>
    %cst_240 = arith.constant dense<0.000000e+00> : vector<8x32xf32>
    %396 = tpu.matmul %393, %395, %cst_240 {dimension_numbers = #tpu.dot_dimension_numbers<[1], [0], [0], [1], [0, 0, 1, 1], [], []>} : vector<8x16xbf16>, vector<16x32xbf16>, vector<8x32xf32> -> vector<8x32xf32>
    %c9_241 = arith.constant 9 : index
    %c0_242 = arith.constant 0 : index
    %c0_243 = arith.constant 0 : index
    %397 = vector.load %arg3[%c9_241, %c0_242, %c0_243] : memref<12x32x16xbf16, #tpu.memory_space<vmem>>, vector<1x32x16xbf16>
    %398 = vector.shape_cast %397 : vector<1x32x16xbf16> to vector<32x16xbf16>
    %cst_244 = arith.constant dense<0.000000e+00> : vector<8x16xf32>
    %399 = tpu.matmul %353, %398, %cst_244 {dimension_numbers = #tpu.dot_dimension_numbers<[1], [0], [0], [1], [0, 0, 1, 1], [], []>} : vector<8x32xbf16>, vector<32x16xbf16>, vector<8x16xf32> -> vector<8x16xf32>
    %c9_245 = arith.constant 9 : index
    %c0_246 = arith.constant 0 : index
    %c0_247 = arith.constant 0 : index
    %400 = vector.load %arg4[%c9_245, %c0_246, %c0_247] : memref<12x1x16xf32, #tpu.memory_space<vmem>>, vector<1x1x16xf32>
    %401 = vector.shape_cast %400 : vector<1x1x16xf32> to vector<1x16xf32>
    %402 = vector.broadcast %401 : vector<1x16xf32> to vector<8x16xf32>
    %403 = arith.addf %399, %402 : vector<8x16xf32>
    %c10_248 = arith.constant 10 : index
    %c0_249 = arith.constant 0 : index
    %c0_250 = arith.constant 0 : index
    %404 = vector.load %arg3[%c10_248, %c0_249, %c0_250] : memref<12x32x16xbf16, #tpu.memory_space<vmem>>, vector<1x32x16xbf16>
    %405 = vector.shape_cast %404 : vector<1x32x16xbf16> to vector<32x16xbf16>
    %cst_251 = arith.constant dense<0.000000e+00> : vector<8x16xf32>
    %406 = tpu.matmul %353, %405, %cst_251 {dimension_numbers = #tpu.dot_dimension_numbers<[1], [0], [0], [1], [0, 0, 1, 1], [], []>} : vector<8x32xbf16>, vector<32x16xbf16>, vector<8x16xf32> -> vector<8x16xf32>
    %c10_252 = arith.constant 10 : index
    %c0_253 = arith.constant 0 : index
    %c0_254 = arith.constant 0 : index
    %407 = vector.load %arg4[%c10_252, %c0_253, %c0_254] : memref<12x1x16xf32, #tpu.memory_space<vmem>>, vector<1x1x16xf32>
    %408 = vector.shape_cast %407 : vector<1x1x16xf32> to vector<1x16xf32>
    %409 = vector.broadcast %408 : vector<1x16xf32> to vector<8x16xf32>
    %410 = arith.addf %406, %409 : vector<8x16xf32>
    %c11_255 = arith.constant 11 : index
    %c0_256 = arith.constant 0 : index
    %c0_257 = arith.constant 0 : index
    %411 = vector.load %arg3[%c11_255, %c0_256, %c0_257] : memref<12x32x16xbf16, #tpu.memory_space<vmem>>, vector<1x32x16xbf16>
    %412 = vector.shape_cast %411 : vector<1x32x16xbf16> to vector<32x16xbf16>
    %cst_258 = arith.constant dense<0.000000e+00> : vector<8x16xf32>
    %413 = tpu.matmul %353, %412, %cst_258 {dimension_numbers = #tpu.dot_dimension_numbers<[1], [0], [0], [1], [0, 0, 1, 1], [], []>} : vector<8x32xbf16>, vector<32x16xbf16>, vector<8x16xf32> -> vector<8x16xf32>
    %c11_259 = arith.constant 11 : index
    %c0_260 = arith.constant 0 : index
    %c0_261 = arith.constant 0 : index
    %414 = vector.load %arg4[%c11_259, %c0_260, %c0_261] : memref<12x1x16xf32, #tpu.memory_space<vmem>>, vector<1x1x16xf32>
    %415 = vector.shape_cast %414 : vector<1x1x16xf32> to vector<1x16xf32>
    %416 = vector.broadcast %415 : vector<1x16xf32> to vector<8x16xf32>
    %417 = arith.addf %413, %416 : vector<8x16xf32>
    %418 = arith.truncf %403 : vector<8x16xf32> to vector<8x16xbf16>
    %419 = arith.truncf %410 : vector<8x16xf32> to vector<8x16xbf16>
    %cst_262 = arith.constant dense<0.000000e+00> : vector<8x8xf32>
    %420 = tpu.matmul %418, %419, %cst_262 {dimension_numbers = #tpu.dot_dimension_numbers<[1], [1], [0], [0], [0, 0, 1, 0], [], []>} : vector<8x16xbf16>, vector<8x16xbf16>, vector<8x8xf32> -> vector<8x8xf32>
    %cst_263 = arith.constant -1.000000e+06 : f32
    %421 = vector.broadcast %cst_263 : f32 to vector<8x8xf32>
    %422 = arith.select %7, %420, %421 : vector<8x8xi1>, vector<8x8xf32>
    %cst_264 = arith.constant dense<0xFF800000> : vector<8xf32>
    %423 = vector.multi_reduction <maximumf>, %422, %cst_264 [1] : vector<8x8xf32> to vector<8xf32>
    %424 = vector.shape_cast %423 : vector<8xf32> to vector<8x1xf32>
    %425 = vector.broadcast %424 : vector<8x1xf32> to vector<8x8xf32>
    %426 = arith.subf %422, %425 : vector<8x8xf32>
    %427 = math.exp %426 : vector<8x8xf32>
    %cst_265 = arith.constant dense<0.000000e+00> : vector<8xf32>
    %428 = vector.multi_reduction <add>, %427, %cst_265 [1] : vector<8x8xf32> to vector<8xf32>
    %429 = vector.shape_cast %428 : vector<8xf32> to vector<8x1xf32>
    %430 = tpu.reciprocal %429 {approx = true} : vector<8x1xf32> -> vector<8x1xf32>
    %431 = vector.broadcast %430 : vector<8x1xf32> to vector<8x8xf32>
    %432 = arith.mulf %427, %431 : vector<8x8xf32>
    %433 = arith.truncf %432 : vector<8x8xf32> to vector<8x8xbf16>
    %434 = arith.truncf %417 : vector<8x16xf32> to vector<8x16xbf16>
    %cst_266 = arith.constant dense<0.000000e+00> : vector<8x16xf32>
    %435 = tpu.matmul %433, %434, %cst_266 {dimension_numbers = #tpu.dot_dimension_numbers<[1], [0], [0], [1], [0, 0, 1, 1], [], []>} : vector<8x8xbf16>, vector<8x16xbf16>, vector<8x16xf32> -> vector<8x16xf32>
    %436 = arith.truncf %435 : vector<8x16xf32> to vector<8x16xbf16>
    %c3_267 = arith.constant 3 : index
    %c0_268 = arith.constant 0 : index
    %c0_269 = arith.constant 0 : index
    %437 = vector.load %arg5[%c3_267, %c0_268, %c0_269] : memref<4x16x32xbf16, #tpu.memory_space<vmem>>, vector<1x16x32xbf16>
    %438 = vector.shape_cast %437 : vector<1x16x32xbf16> to vector<16x32xbf16>
    %cst_270 = arith.constant dense<0.000000e+00> : vector<8x32xf32>
    %439 = tpu.matmul %436, %438, %cst_270 {dimension_numbers = #tpu.dot_dimension_numbers<[1], [0], [0], [1], [0, 0, 1, 1], [], []>} : vector<8x16xbf16>, vector<16x32xbf16>, vector<8x32xf32> -> vector<8x32xf32>
    %440 = arith.addf %396, %439 : vector<8x32xf32>
    %441 = tpu.concatenate %351, %440 in 0 : vector<8x32xf32>, vector<8x32xf32> -> vector<16x32xf32>
    %442 = arith.addf %262, %441 : vector<16x32xf32>
    %c6_271 = arith.constant 6 : index
    %c0_272 = arith.constant 0 : index
    %c0_273 = arith.constant 0 : index
    %443 = vector.load %arg9[%c6_271, %c0_272, %c0_273] : memref<12x1x32xf32, #tpu.memory_space<vmem>>, vector<1x1x32xf32>
    %444 = vector.shape_cast %443 : vector<1x1x32xf32> to vector<1x32xf32>
    %445 = vector.broadcast %444 : vector<1x32xf32> to vector<16x32xf32>
    %446 = arith.addf %442, %445 : vector<16x32xf32>
    %c7_274 = arith.constant 7 : index
    %c0_275 = arith.constant 0 : index
    %c0_276 = arith.constant 0 : index
    %447 = vector.load %arg9[%c7_274, %c0_275, %c0_276] : memref<12x1x32xf32, #tpu.memory_space<vmem>>, vector<1x1x32xf32>
    %448 = vector.shape_cast %447 : vector<1x1x32xf32> to vector<1x32xf32>
    %c8_277 = arith.constant 8 : index
    %c0_278 = arith.constant 0 : index
    %c0_279 = arith.constant 0 : index
    %449 = vector.load %arg9[%c8_277, %c0_278, %c0_279] : memref<12x1x32xf32, #tpu.memory_space<vmem>>, vector<1x1x32xf32>
    %450 = vector.shape_cast %449 : vector<1x1x32xf32> to vector<1x32xf32>
    %cst_280 = arith.constant dense<0.000000e+00> : vector<16xf32>
    %451 = vector.multi_reduction <add>, %446, %cst_280 [1] : vector<16x32xf32> to vector<16xf32>
    %452 = vector.shape_cast %451 : vector<16xf32> to vector<16x1xf32>
    %cst_281 = arith.constant 3.200000e+01 : f32
    %453 = vector.broadcast %cst_281 : f32 to vector<16x1xf32>
    %454 = arith.divf %452, %453 : vector<16x1xf32>
    %455 = vector.broadcast %454 : vector<16x1xf32> to vector<16x32xf32>
    %456 = arith.subf %446, %455 : vector<16x32xf32>
    %457 = arith.mulf %456, %456 : vector<16x32xf32>
    %cst_282 = arith.constant dense<0.000000e+00> : vector<16xf32>
    %458 = vector.multi_reduction <add>, %457, %cst_282 [1] : vector<16x32xf32> to vector<16xf32>
    %459 = vector.shape_cast %458 : vector<16xf32> to vector<16x1xf32>
    %cst_283 = arith.constant 3.200000e+01 : f32
    %460 = vector.broadcast %cst_283 : f32 to vector<16x1xf32>
    %461 = arith.divf %459, %460 : vector<16x1xf32>
    %462 = vector.broadcast %454 : vector<16x1xf32> to vector<16x32xf32>
    %463 = arith.subf %446, %462 : vector<16x32xf32>
    %cst_284 = arith.constant 9.99999974E-6 : f32
    %464 = vector.broadcast %cst_284 : f32 to vector<16x1xf32>
    %465 = arith.addf %461, %464 : vector<16x1xf32>
    %466 = math.rsqrt %465 : vector<16x1xf32>
    %467 = vector.broadcast %466 : vector<16x1xf32> to vector<16x32xf32>
    %468 = arith.mulf %463, %467 : vector<16x32xf32>
    %469 = vector.broadcast %448 : vector<1x32xf32> to vector<16x32xf32>
    %470 = arith.mulf %468, %469 : vector<16x32xf32>
    %471 = vector.broadcast %450 : vector<1x32xf32> to vector<16x32xf32>
    %472 = arith.addf %470, %471 : vector<16x32xf32>
    %473 = arith.truncf %472 : vector<16x32xf32> to vector<16x32xbf16>
    %c1_285 = arith.constant 1 : index
    %c0_286 = arith.constant 0 : index
    %c0_287 = arith.constant 0 : index
    %474 = vector.load %arg6[%c1_285, %c0_286, %c0_287] : memref<2x32x64xbf16, #tpu.memory_space<vmem>>, vector<1x32x64xbf16>
    %475 = vector.shape_cast %474 : vector<1x32x64xbf16> to vector<32x64xbf16>
    %cst_288 = arith.constant dense<0.000000e+00> : vector<16x64xf32>
    %476 = tpu.matmul %473, %475, %cst_288 {dimension_numbers = #tpu.dot_dimension_numbers<[1], [0], [0], [1], [0, 0, 1, 1], [], []>} : vector<16x32xbf16>, vector<32x64xbf16>, vector<16x64xf32> -> vector<16x64xf32>
    %c1_289 = arith.constant 1 : index
    %c0_290 = arith.constant 0 : index
    %c0_291 = arith.constant 0 : index
    %477 = vector.load %arg7[%c1_289, %c0_290, %c0_291] : memref<2x1x64xf32, #tpu.memory_space<vmem>>, vector<1x1x64xf32>
    %478 = vector.shape_cast %477 : vector<1x1x64xf32> to vector<1x64xf32>
    %479 = vector.broadcast %478 : vector<1x64xf32> to vector<16x64xf32>
    %480 = arith.addf %476, %479 : vector<16x64xf32>
    %cst_292 = arith.constant 0.000000e+00 : f32
    %481 = vector.broadcast %cst_292 : f32 to vector<16x64xf32>
    %482 = arith.maximumf %480, %481 : vector<16x64xf32>
    %483 = arith.truncf %482 : vector<16x64xf32> to vector<16x64xbf16>
    %c1_293 = arith.constant 1 : index
    %c0_294 = arith.constant 0 : index
    %c0_295 = arith.constant 0 : index
    %484 = vector.load %arg8[%c1_293, %c0_294, %c0_295] : memref<2x64x32xbf16, #tpu.memory_space<vmem>>, vector<1x64x32xbf16>
    %485 = vector.shape_cast %484 : vector<1x64x32xbf16> to vector<64x32xbf16>
    %cst_296 = arith.constant dense<0.000000e+00> : vector<16x32xf32>
    %486 = tpu.matmul %483, %485, %cst_296 {dimension_numbers = #tpu.dot_dimension_numbers<[1], [0], [0], [1], [0, 0, 1, 1], [], []>} : vector<16x64xbf16>, vector<64x32xbf16>, vector<16x32xf32> -> vector<16x32xf32>
    %c9_297 = arith.constant 9 : index
    %c0_298 = arith.constant 0 : index
    %c0_299 = arith.constant 0 : index
    %487 = vector.load %arg9[%c9_297, %c0_298, %c0_299] : memref<12x1x32xf32, #tpu.memory_space<vmem>>, vector<1x1x32xf32>
    %488 = vector.shape_cast %487 : vector<1x1x32xf32> to vector<1x32xf32>
    %489 = vector.broadcast %488 : vector<1x32xf32> to vector<16x32xf32>
    %490 = arith.addf %486, %489 : vector<16x32xf32>
    %491 = arith.addf %472, %490 : vector<16x32xf32>
    %c10_300 = arith.constant 10 : index
    %c0_301 = arith.constant 0 : index
    %c0_302 = arith.constant 0 : index
    %492 = vector.load %arg9[%c10_300, %c0_301, %c0_302] : memref<12x1x32xf32, #tpu.memory_space<vmem>>, vector<1x1x32xf32>
    %493 = vector.shape_cast %492 : vector<1x1x32xf32> to vector<1x32xf32>
    %c11_303 = arith.constant 11 : index
    %c0_304 = arith.constant 0 : index
    %c0_305 = arith.constant 0 : index
    %494 = vector.load %arg9[%c11_303, %c0_304, %c0_305] : memref<12x1x32xf32, #tpu.memory_space<vmem>>, vector<1x1x32xf32>
    %495 = vector.shape_cast %494 : vector<1x1x32xf32> to vector<1x32xf32>
    %cst_306 = arith.constant dense<0.000000e+00> : vector<16xf32>
    %496 = vector.multi_reduction <add>, %491, %cst_306 [1] : vector<16x32xf32> to vector<16xf32>
    %497 = vector.shape_cast %496 : vector<16xf32> to vector<16x1xf32>
    %cst_307 = arith.constant 3.200000e+01 : f32
    %498 = vector.broadcast %cst_307 : f32 to vector<16x1xf32>
    %499 = arith.divf %497, %498 : vector<16x1xf32>
    %500 = vector.broadcast %499 : vector<16x1xf32> to vector<16x32xf32>
    %501 = arith.subf %491, %500 : vector<16x32xf32>
    %502 = arith.mulf %501, %501 : vector<16x32xf32>
    %cst_308 = arith.constant dense<0.000000e+00> : vector<16xf32>
    %503 = vector.multi_reduction <add>, %502, %cst_308 [1] : vector<16x32xf32> to vector<16xf32>
    %504 = vector.shape_cast %503 : vector<16xf32> to vector<16x1xf32>
    %cst_309 = arith.constant 3.200000e+01 : f32
    %505 = vector.broadcast %cst_309 : f32 to vector<16x1xf32>
    %506 = arith.divf %504, %505 : vector<16x1xf32>
    %507 = vector.broadcast %499 : vector<16x1xf32> to vector<16x32xf32>
    %508 = arith.subf %491, %507 : vector<16x32xf32>
    %cst_310 = arith.constant 9.99999974E-6 : f32
    %509 = vector.broadcast %cst_310 : f32 to vector<16x1xf32>
    %510 = arith.addf %506, %509 : vector<16x1xf32>
    %511 = math.rsqrt %510 : vector<16x1xf32>
    %512 = vector.broadcast %511 : vector<16x1xf32> to vector<16x32xf32>
    %513 = arith.mulf %508, %512 : vector<16x32xf32>
    %514 = vector.broadcast %493 : vector<1x32xf32> to vector<16x32xf32>
    %515 = arith.mulf %513, %514 : vector<16x32xf32>
    %516 = vector.broadcast %495 : vector<1x32xf32> to vector<16x32xf32>
    %517 = arith.addf %515, %516 : vector<16x32xf32>
    %c0_311 = arith.constant 0 : index
    %c0_312 = arith.constant 0 : index
    %518 = vector.load %arg14[%c0_311, %c0_312] : memref<16x32xf32, #tpu.memory_space<vmem>>, vector<16x32xf32>
    tpu.vector_store %arg14[%c0_311, %c0_312], %517 {strides = array<i32>} : memref<16x32xf32, #tpu.memory_space<vmem>>, vector<16x32xf32>,
    %519 = arith.truncf %517 : vector<16x32xf32> to vector<16x32xbf16>
    %520 = tpu.iota {dimensions = array<i32: 1>} : vector<6x16xi32>
    %c0_313 = arith.constant 0 : index
    %c0_314 = arith.constant 0 : index
    %521 = vector.load %arg1[%c0_313, %c0_314] : memref<6x1xi32, #tpu.memory_space<vmem>>, vector<6x1xi32>
    %522 = vector.broadcast %521 : vector<6x1xi32> to vector<6x16xi32>
    %523 = arith.cmpi eq, %520, %522 : vector<6x16xi32>
    %cst_315 = arith.constant 1.000000e+00 : f32
    %cst_316 = arith.constant 0.000000e+00 : f32
    %524 = vector.broadcast %cst_315 : f32 to vector<6x16xf32>
    %525 = vector.broadcast %cst_316 : f32 to vector<6x16xf32>
    %526 = arith.select %523, %524, %525 : vector<6x16xi1>, vector<6x16xf32>
    %527 = arith.truncf %526 : vector<6x16xf32> to vector<6x16xbf16>
    %cst_317 = arith.constant dense<0.000000e+00> : vector<6x32xf32>
    %528 = tpu.matmul %527, %519, %cst_317 {dimension_numbers = #tpu.dot_dimension_numbers<[1], [0], [0], [1], [0, 0, 1, 1], [], []>} : vector<6x16xbf16>, vector<16x32xbf16>, vector<6x32xf32> -> vector<6x32xf32>
    %529 = arith.truncf %528 : vector<6x32xf32> to vector<6x32xbf16>
    %c0_318 = arith.constant 0 : index
    %c0_319 = arith.constant 0 : index
    %c0_320 = arith.constant 0 : index
    %530 = vector.load %arg10[%c0_318, %c0_319, %c0_320] : memref<2x32x32xbf16, #tpu.memory_space<vmem>>, vector<1x32x32xbf16>
    %531 = vector.shape_cast %530 : vector<1x32x32xbf16> to vector<32x32xbf16>
    %cst_321 = arith.constant dense<0.000000e+00> : vector<6x32xf32>
    %532 = tpu.matmul %529, %531, %cst_321 {dimension_numbers = #tpu.dot_dimension_numbers<[1], [0], [0], [1], [0, 0, 1, 1], [], []>} : vector<6x32xbf16>, vector<32x32xbf16>, vector<6x32xf32> -> vector<6x32xf32>
    %c0_322 = arith.constant 0 : index
    %c0_323 = arith.constant 0 : index
    %c0_324 = arith.constant 0 : index
    %533 = vector.load %arg12[%c0_322, %c0_323, %c0_324] : memref<4x1x32xf32, #tpu.memory_space<vmem>>, vector<1x1x32xf32>
    %534 = vector.shape_cast %533 : vector<1x1x32xf32> to vector<1x32xf32>
    %535 = vector.broadcast %534 : vector<1x32xf32> to vector<6x32xf32>
    %536 = arith.addf %532, %535 : vector<6x32xf32>
    %cst_325 = arith.constant 0.000000e+00 : f32
    %537 = vector.broadcast %cst_325 : f32 to vector<6x32xf32>
    %538 = arith.maximumf %536, %537 : vector<6x32xf32>
    %c1_326 = arith.constant 1 : index
    %c0_327 = arith.constant 0 : index
    %c0_328 = arith.constant 0 : index
    %539 = vector.load %arg12[%c1_326, %c0_327, %c0_328] : memref<4x1x32xf32, #tpu.memory_space<vmem>>, vector<1x1x32xf32>
    %540 = vector.shape_cast %539 : vector<1x1x32xf32> to vector<1x32xf32>
    %c2_329 = arith.constant 2 : index
    %c0_330 = arith.constant 0 : index
    %c0_331 = arith.constant 0 : index
    %541 = vector.load %arg12[%c2_329, %c0_330, %c0_331] : memref<4x1x32xf32, #tpu.memory_space<vmem>>, vector<1x1x32xf32>
    %542 = vector.shape_cast %541 : vector<1x1x32xf32> to vector<1x32xf32>
    %cst_332 = arith.constant dense<0.000000e+00> : vector<6xf32>
    %543 = vector.multi_reduction <add>, %538, %cst_332 [1] : vector<6x32xf32> to vector<6xf32>
    %544 = vector.shape_cast %543 : vector<6xf32> to vector<6x1xf32>
    %cst_333 = arith.constant 3.200000e+01 : f32
    %545 = vector.broadcast %cst_333 : f32 to vector<6x1xf32>
    %546 = arith.divf %544, %545 : vector<6x1xf32>
    %547 = vector.broadcast %546 : vector<6x1xf32> to vector<6x32xf32>
    %548 = arith.subf %538, %547 : vector<6x32xf32>
    %549 = arith.mulf %548, %548 : vector<6x32xf32>
    %cst_334 = arith.constant dense<0.000000e+00> : vector<6xf32>
    %550 = vector.multi_reduction <add>, %549, %cst_334 [1] : vector<6x32xf32> to vector<6xf32>
    %551 = vector.shape_cast %550 : vector<6xf32> to vector<6x1xf32>
    %cst_335 = arith.constant 3.200000e+01 : f32
    %552 = vector.broadcast %cst_335 : f32 to vector<6x1xf32>
    %553 = arith.divf %551, %552 : vector<6x1xf32>
    %554 = vector.broadcast %546 : vector<6x1xf32> to vector<6x32xf32>
    %555 = arith.subf %538, %554 : vector<6x32xf32>
    %cst_336 = arith.constant 9.99999974E-6 : f32
    %556 = vector.broadcast %cst_336 : f32 to vector<6x1xf32>
    %557 = arith.addf %553, %556 : vector<6x1xf32>
    %558 = math.rsqrt %557 : vector<6x1xf32>
    %559 = vector.broadcast %558 : vector<6x1xf32> to vector<6x32xf32>
    %560 = arith.mulf %555, %559 : vector<6x32xf32>
    %561 = vector.broadcast %540 : vector<1x32xf32> to vector<6x32xf32>
    %562 = arith.mulf %560, %561 : vector<6x32xf32>
    %563 = vector.broadcast %542 : vector<1x32xf32> to vector<6x32xf32>
    %564 = arith.addf %562, %563 : vector<6x32xf32>
    %565 = arith.truncf %564 : vector<6x32xf32> to vector<6x32xbf16>
    %c0_337 = arith.constant 0 : index
    %c0_338 = arith.constant 0 : index
    %c0_339 = arith.constant 0 : index
    %566 = vector.load %arg11[%c0_337, %c0_338, %c0_339] : memref<2x32x128xbf16, #tpu.memory_space<vmem>>, vector<1x32x128xbf16>
    %567 = vector.shape_cast %566 : vector<1x32x128xbf16> to vector<32x128xbf16>
    %cst_340 = arith.constant dense<0.000000e+00> : vector<6x128xf32>
    %568 = tpu.matmul %565, %567, %cst_340 {dimension_numbers = #tpu.dot_dimension_numbers<[1], [0], [0], [1], [0, 0, 1, 1], [], []>} : vector<6x32xbf16>, vector<32x128xbf16>, vector<6x128xf32> -> vector<6x128xf32>
    %c0_341 = arith.constant 0 : index
    %c0_342 = arith.constant 0 : index
    %c0_343 = arith.constant 0 : index
    %569 = vector.load %arg13[%c0_341, %c0_342, %c0_343] : memref<2x1x128xf32, #tpu.memory_space<vmem>>, vector<1x1x128xf32>
    %570 = vector.shape_cast %569 : vector<1x1x128xf32> to vector<1x128xf32>
    %571 = vector.broadcast %570 : vector<1x128xf32> to vector<6x128xf32>
    %572 = arith.addf %568, %571 : vector<6x128xf32>
    %c0_344 = arith.constant 0 : index
    %c0_345 = arith.constant 0 : index
    %573 = vector.load %arg15[%c0_344, %c0_345] : memref<6x128xf32, #tpu.memory_space<vmem>>, vector<6x128xf32>
    tpu.vector_store %arg15[%c0_344, %c0_345], %572 {strides = array<i32>} : memref<6x128xf32, #tpu.memory_space<vmem>>, vector<6x128xf32>,
    %574 = tpu.iota {dimensions = array<i32: 1>} : vector<2x16xi32>
    %575 = tpu.iota {dimensions = array<i32: 0>} : vector<2x16xi32>
    %c8_i32 = arith.constant 8 : i32
    %576 = vector.broadcast %c8_i32 : i32 to vector<2x16xi32>
    %577 = arith.muli %575, %576 : vector<2x16xi32>
    %578 = arith.cmpi eq, %574, %577 : vector<2x16xi32>
    %cst_346 = arith.constant 1.000000e+00 : f32
    %cst_347 = arith.constant 0.000000e+00 : f32
    %579 = vector.broadcast %cst_346 : f32 to vector<2x16xf32>
    %580 = vector.broadcast %cst_347 : f32 to vector<2x16xf32>
    %581 = arith.select %578, %579, %580 : vector<2x16xi1>, vector<2x16xf32>
    %582 = arith.truncf %581 : vector<2x16xf32> to vector<2x16xbf16>
    %cst_348 = arith.constant dense<0.000000e+00> : vector<2x32xf32>
    %583 = tpu.matmul %582, %519, %cst_348 {dimension_numbers = #tpu.dot_dimension_numbers<[1], [0], [0], [1], [0, 0, 1, 1], [], []>} : vector<2x16xbf16>, vector<16x32xbf16>, vector<2x32xf32> -> vector<2x32xf32>
    %584 = arith.truncf %583 : vector<2x32xf32> to vector<2x32xbf16>
    %c1_349 = arith.constant 1 : index
    %c0_350 = arith.constant 0 : index
    %c0_351 = arith.constant 0 : index
    %585 = vector.load %arg10[%c1_349, %c0_350, %c0_351] : memref<2x32x32xbf16, #tpu.memory_space<vmem>>, vector<1x32x32xbf16>
    %586 = vector.shape_cast %585 : vector<1x32x32xbf16> to vector<32x32xbf16>
    %cst_352 = arith.constant dense<0.000000e+00> : vector<2x32xf32>
    %587 = tpu.matmul %584, %586, %cst_352 {dimension_numbers = #tpu.dot_dimension_numbers<[1], [0], [0], [1], [0, 0, 1, 1], [], []>} : vector<2x32xbf16>, vector<32x32xbf16>, vector<2x32xf32> -> vector<2x32xf32>
    %c3_353 = arith.constant 3 : index
    %c0_354 = arith.constant 0 : index
    %c0_355 = arith.constant 0 : index
    %588 = vector.load %arg12[%c3_353, %c0_354, %c0_355] : memref<4x1x32xf32, #tpu.memory_space<vmem>>, vector<1x1x32xf32>
    %589 = vector.shape_cast %588 : vector<1x1x32xf32> to vector<1x32xf32>
    %590 = vector.broadcast %589 : vector<1x32xf32> to vector<2x32xf32>
    %591 = arith.addf %587, %590 : vector<2x32xf32>
    %592 = math.tanh %591 : vector<2x32xf32>
    %593 = arith.truncf %592 : vector<2x32xf32> to vector<2x32xbf16>
    %c1_356 = arith.constant 1 : index
    %c0_357 = arith.constant 0 : index
    %c0_358 = arith.constant 0 : index
    %594 = vector.load %arg11[%c1_356, %c0_357, %c0_358] : memref<2x32x128xbf16, #tpu.memory_space<vmem>>, vector<1x32x128xbf16>
    %595 = vector.shape_cast %594 : vector<1x32x128xbf16> to vector<32x128xbf16>
    %cst_359 = arith.constant dense<0.000000e+00> : vector<2x128xf32>
    %596 = tpu.matmul %593, %595, %cst_359 {dimension_numbers = #tpu.dot_dimension_numbers<[1], [0], [0], [1], [0, 0, 1, 1], [], []>} : vector<2x32xbf16>, vector<32x128xbf16>, vector<2x128xf32> -> vector<2x128xf32>
    %c1_360 = arith.constant 1 : index
    %c0_361 = arith.constant 0 : index
    %c0_362 = arith.constant 0 : index
    %597 = vector.load %arg13[%c1_360, %c0_361, %c0_362] : memref<2x1x128xf32, #tpu.memory_space<vmem>>, vector<1x1x128xf32>
    %598 = vector.shape_cast %597 : vector<1x1x128xf32> to vector<1x128xf32>
    %599 = vector.broadcast %598 : vector<1x128xf32> to vector<2x128xf32>
    %600 = arith.addf %596, %599 : vector<2x128xf32>
    %c0_363 = arith.constant 0 : index
    %c0_364 = arith.constant 0 : index
    %601 = vector.load %arg16[%c0_363, %c0_364] : memref<2x128xf32, #tpu.memory_space<vmem>>, vector<2x128xf32>
    tpu.vector_store %arg16[%c0_363, %c0_364], %600 {strides = array<i32>} : memref<2x128xf32, #tpu.memory_space<vmem>>, vector<2x128xf32>,
    return
  }
}

</mosaic_0001>

<bundles_post_ra>
// kernel: bert_forward.1
= control target key start
LH: loop header
LB: loop body
LE: loop exit
PB: predicated region body
PF: predicated region fallthrough
CT: control target
= control target key end

     0   :  { %s5530_s0 = inlined_call_operand.vmem [shape: s32[2], index: 0, kind: input, shape index: {}]   ;;  %s5531_s1 = inlined_call_operand.vmem [shape: s32[6,1], index: 1, kind: input, shape index: {}]   ;;  %s5532_s2 = inlined_call_operand.vmem [shape: f32[16,32], index: 2, kind: input, shape index: {}]   ;;  %s5533_s3 = inlined_call_operand.vmem [shape: bf16[12,32,16], index: 3, kind: input, shape index: {}]   ;;  %s5534_s4 = inlined_call_operand.vmem [shape: f32[12,1,16], index: 4, kind: input, shape index: {}]   ;;  %s5535_s5 = inlined_call_operand.vmem [shape: bf16[4,16,32], index: 5, kind: input, shape index: {}]   ;;  %s5536_s6 = inlined_call_operand.vmem [shape: bf16[2,32,64], index: 6, kind: input, shape index: {}]   ;;  %s5537_s7 = inlined_call_operand.vmem [shape: f32[2,1,64], index: 7, kind: input, shape index: {}]   ;;  %s5538_s8 = inlined_call_operand.vmem [shape: bf16[2,64,32], index: 8, kind: input, shape index: {}]   ;;  %s5539_s9 = inlined_call_operand.vmem [shape: f32[12,1,32], index: 9, kind: input, shape index: {}]   ;;  %s5540_s10 = inlined_call_operand.vmem [shape: bf16[2,32,32], index: 10, kind: input, shape index: {}]   ;;  %s5541_s11 = inlined_call_operand.vmem [shape: bf16[2,32,128], index: 11, kind: input, shape index: {}]   ;;  %s5542_s12 = inlined_call_operand.vmem [shape: f32[4,1,32], index: 12, kind: input, shape index: {}]   ;;  %s5543_s13 = inlined_call_operand.vmem [shape: f32[2,1,128], index: 13, kind: input, shape index: {}]   ;;  %s5544_s14 = inlined_call_operand.hbm [shape: f32[16,32], index: 14, kind: output, shape index: {0}]   ;;  %s5545_s15 = inlined_call_operand.vmem [shape: f32[6,128], index: 15, kind: output, shape index: {1}]   ;;  %s5546_s16 = inlined_call_operand.hbm [shape: f32[2,128], index: 16, kind: output, shape index: {2}]  }
   0x1   :  { %5547 = sst [smem:[#allocation11_spill]] %s5530_s0 }
   0x2   :  { %22 = vsyncpa [#allocation4], 0 }
   0x3   :  { %23 = vsyncpa [#allocation3], 0 }
   0x4   :  { %24 = vsyncpa [#allocation7], 0  ;;  %s5548_s23 = sld [smem:[#allocation11_spill]] }
   0xa   :  { %s31_s24 = sshll.u32 %s5548_s23, 4  ;;  %s32_s24 = int_to_ptr.vmem [resolvable:$true] %s31_s24 }
   0xb   :  { %s4493_s25 = scalar_lea.vmem %s32_s24, 16  ;;  %p4498_p1 = scmp.lt.s32.totalorder %s32_s24, %s32_s24 }
   0xc   :  { %p4494_p0 = scmp.ne.s32.totalorder %s32_s24, %s4493_s25  ;;  %p4499_p2 = scmp.lt.s32.totalorder %s4493_s25, %s4493_s25 }
   0xe   :  { %p4500_p3 = por %p4499_p2, %p4498_p1 }
  0x10   :  { %p4501_p4 = pnand %p4500_p3, %p4494_p0 }
  0x12   :  { %4504 = shalt.err (!%p4501_p4)
}
  0x13   :  { %s4555_s26 = smov [#allocation2]  }
  0x14   :  { %34 = dma.vmem_to_smem %s32_s24, 16, %s4555_s26, [#allocation4]  }
  0x15   :  { %4549 = dma.done.wait [#allocation4], 16  }
  0x16   :  { %4550 = vsyncadd [#allocation4], 4294967280 }
  0x17   :  { %64 = sfence }
  0x18   :  { %v4654_v0 = vld [vmem:[%s5533_s3 + $0x10] sm:$0xff]   ;;  %v4556_v1 = vmov 0.0   ;;  %v4661_v2 = vld [vmem:[%s5533_s3 + $0x18] sm:$0xff]   ;;  %v4667_v3 = vld [vmem:[%s5533_s3] sm:$0xff]   ;;  %vm4557_vm0 = vmmov 0   ;;  %vm100_vm1 = vcmask 261120   ;;  %v68_v24 = vlaneseq }
  0x19   :  { %3972 = vmatprep.subr.bf16.mxu1 %v4556_v1  ;;  %3964 = vmatprep.subr.bf16.mxu0 %v4556_v1  ;;  %v4675_v4 = vld [vmem:[%s5532_s2] sm:$0xff]  ;;  %v4683_v5 = vld [vmem:[%s5533_s3 + $0x8] sm:$0xff]   ;;  %vm276_vm2 = vcmask 130048   ;;  %s70_s30 = sld [smem:[#allocation2]]  ;;  %vm324_vm4 = vcmask 64512   ;;  %vm341_vm5 = vcmask 1043456  }
  0x1a   :  { %3973 = vmatpush3.bf16.msra.mxu1 %v4654_v0  ;;  %3976 = vmatprep.mubr.msk.bf16.mxu1 %vm4557_vm0, %v4556_v1  ;;  %v4687_v6 = vpack.c.bf16 %v4675_v4, %v4675_v4  ;;  %v4705_v7 = vld [vmem:[%s5534_s4 + $0x1] ss:$0 sm:$0xff]  ;;  %v4711_v12 = vld [vmem:[%s5534_s4] ss:$0 sm:$0xff]  ;;  %v4728_v23 = vld [vmem:[%s5533_s3 + $0x28] sm:$0xff]   ;;  %v4738_v25 = vand.u32 127, %v68_v24 }
  0x1b   :  { %3974 = vmatprep.subr.bf16.mxu1 %v4556_v1  ;;  %3968 = vmatprep.mubr.msk.bf16.mxu0 %vm4557_vm0, %v4556_v1  ;;  %v4722_v22 = vld [vmem:[%s5533_s3 + $0x20] sm:$0xff]   ;;  %v4760_v47 = vld [vmem:[%s5533_s3 + $0x30] sm:$0xff]   ;;  %v4767_v48 = vld [vmem:[%s5533_s3 + $0x38] sm:$0xff]   ;;  %vm1510_vm7 = vcmask 523264   ;;  %vm3256_vm10 = vcmask 259072  }
  0x1c   :  { %3965 = vmatpush3.bf16.msra.mxu0 %v4667_v3  ;;  %v4752_v42 = vld [vmem:[%s5534_s4 + $0x2] ss:$0 sm:$0xff]  ;;  %v4785_v54 = vld [vmem:[%s5533_s3 + $0x48] sm:$0xff]   ;;  %v4801_v63 = vld [vmem:[%s5534_s4 + $0x4] ss:$0 sm:$0xff] }
  0x1d   :  { %3966 = vmatprep.subr.bf16.mxu0 %v4556_v1  ;;  %v4778_v52 = vld [vmem:[%s5533_s3 + $0x40] sm:$0xff]  }
  0x1e   :  { %3975 = vmatpush3.bf16.msra.mxu1 %v4661_v2 }
  0x1f   :  { %3988 = vmatprep.subr.bf16.mxu1 %v4556_v1  ;;  %v71_v26 = vstv %s70_s30 }
  0x20   :  { %3967 = vmatpush3.bf16.msra.mxu0 %v4683_v5  ;;  %vm4741_vm3 = vcmp.lt.s32.totalorder %v4738_v25, %v71_v26 }
  0x21   :  { %3977 = vmatmul.mubr.msk.bf16.vlgmr.msra.gmra.mrb[0].mxu1 %vm100_vm1, %v4687_v6  ;;  %3980 = vmatprep.subr.bf16.mxu0 %v4556_v1 }
  0x22   :  { %3990 = vmatprep.mubr.msk.bf16.mxu1 %vm4557_vm0, %v4556_v1 }
  0x23   :  { %3969 = vmatmul.mubr.msk.bf16.vlgmr.msra.gmra.mrb[0].mxu0 %vm100_vm1, %v4687_v6 }
  0x24   :  { %3984 = vmatprep.mubr.msk.bf16.mxu0 %vm4557_vm0, %v4556_v1  ;;  %3981 = vmatpush3.bf16.msra.mxu0 %v4722_v22 }
  0x25   :  { %3982 = vmatprep.subr.bf16.mxu0 %v4556_v1 }
  0x28   :  { %3983 = vmatpush3.bf16.msra.mxu0 %v4728_v23 }
  0x29   :  { %3994 = vmatprep.subr.bf16.mxu0 %v4556_v1 }
  0x2b   :  { %3985 = vmatmul.mubr.msk.bf16.vlgmr.msra.gmra.mrb[4].mxu0 %vm100_vm1, %v4687_v6 }
  0x2c   :  { %3996 = vmatprep.mubr.msk.bf16.mxu0 %vm4557_vm0, %v4556_v1 }
  0xf4   :  { %v203_v8 = vpop.f32.mrb[0].mxu1 }
  0xf5   :  { %v204_v9 = vadd.f32 %v4705_v7, %v203_v8  ;;  %v3978_v10 = vpop.f32.mrb[1].mxu1 }
  0xf6   :  { %v206_v11 = vpop.f32.mrb[2].mxu1  ;;  %v138_v13 = vpop.f32.mrb[0].mxu0 }
  0xf7   :  { %v275_v14 = vpack.c.bf16 %v204_v9, %v204_v9  ;;  %v3979_v15 = vpop.f32.mrb[3].mxu1  ;;  %v3970_v16 = vpop.f32.mrb[1].mxu0  ;;  %v139_v19 = vadd.f32 %v4711_v12, %v138_v13  ;;  %v4807_v13 = vld [vmem:[%s5534_s4 + $0x3] ss:$0 sm:$0xff] }
  0xf8   :  { %v141_v17 = vpop.f32.mrb[2].mxu0 }
  0xf9   :  { %v281_v18 = vsel %vm276_vm2, %v275_v14, 0  ;;  %v3971_v20 = vpop.f32.mrb[3].mxu0  ;;  %v274_v21 = vpack.c.bf16 %v139_v19, %v139_v19  ;;  %v4818_v19 = vld [vmem:[%s5533_s3 + $0x50] sm:$0xff]  }
  0xfa   :  { %3989 = vmatpush3.bf16.xpose.msra.mxu1 %v281_v18  ;;  %v4824_v20 = vld [vmem:[%s5533_s3 + $0x58] sm:$0xff]  }
  0xfb   :  { %4000 = vmatprep.subr.bf16.mxu1 %v4556_v1 }
  0xfe   :  { %v268_v39 = vpop.f32.mrb[4].mxu0 }
  0xff   :  { %v3986_v40 = vpop.f32.mrb[5].mxu0  ;;  %v269_v44 = vadd.f32 %v4752_v42, %v268_v39  ;;  %v4840_v39 = vld [vmem:[%s5534_s4 + $0x5] ss:$0 sm:$0xff] }
 0x100   :  { %v271_v41 = vpop.f32.mrb[6].mxu0 }
 0x101   :  { %3991 = vmatmul.mubr.msk.bf16.vlgmr.msra.gmra.mrb[4].mxu1 %vm276_vm2, %v274_v21  ;;  %v3987_v43 = vpop.f32.mrb[7].mxu0  ;;  %v337_v45 = vpack.c.bf16 %v269_v44, %v269_v44 }
 0x102   :  { %4004 = vmatprep.mubr.msk.bf16.mxu1 %vm4557_vm0, %v4556_v1  ;;  %4001 = vmatpush3.bf16.msra.mxu1 %v4760_v47 }
 0x103   :  { %v343_v46 = vsel %vm341_vm5, %v337_v45, 0  ;;  %4002 = vmatprep.subr.bf16.mxu1 %v4556_v1 }
 0x104   :  { %3995 = vmatpush3.bf16.msra.mxu0 %v343_v46 }
 0x105   :  { %4008 = vmatprep.subr.bf16.mxu0 %v4556_v1 }
 0x106   :  { %4003 = vmatpush3.bf16.msra.mxu1 %v4767_v48 }
 0x107   :  { %4016 = vmatprep.subr.bf16.mxu1 %v4556_v1 }
 0x109   :  { %4005 = vmatmul.mubr.msk.bf16.vlgmr.msra.gmra.mrb[8].mxu1 %vm100_vm1, %v4687_v6 }
 0x10a   :  { %4020 = vmatprep.mubr.msk.bf16.mxu1 %vm4557_vm0, %v4556_v1  ;;  %4017 = vmatpush3.bf16.msra.mxu1 %v4818_v19 }
 0x10b   :  { %4018 = vmatprep.subr.bf16.mxu1 %v4556_v1 }
 0x10e   :  { %4019 = vmatpush3.bf16.msra.mxu1 %v4824_v20 }
 0x10f   :  { %4030 = vmatprep.subr.bf16.mxu1 %v4556_v1 }
 0x111   :  { %4021 = vmatmul.mubr.msk.bf16.vlgmr.msra.gmra.mrb[12].mxu1 %vm100_vm1, %v4687_v6 }
 0x112   :  { %4032 = vmatprep.mubr.msk.bf16.mxu1 %vm4557_vm0, %v4556_v1 }
 0x1d4   :  { %v317_v28 = vpop.f32.mrb[4].mxu1 }
 0x1d5   :  { %v323_v29 = vsel %vm4741_vm3, %v317_v28, -1000000.0  ;;  %v3992_v30 = vpop.f32.mrb[5].mxu1 }
 0x1d6   :  { %v320_v31 = vpop.f32.mrb[6].mxu1  ;;  %v325_v32 = vsel %vm324_vm4, %v323_v29, -inf }
 0x1d7   :  { %326 = vmax.xlane.f32.xlu0 %v325_v32  ;;  %v3993_v33 = vpop.f32.mrb[7].mxu1 }
 0x1dc   :  { %v447_v55 = vpop.f32.mrb[8].mxu1 }
 0x1dd   :  { %v4006_v56 = vpop.f32.mrb[9].mxu1  ;;  %v448_v17 = vadd.f32 %v4807_v13, %v447_v55  ;;  %v4867_v55 = vld [vmem:[%s5532_s2 + $0x8] sm:$0xff]  ;;  %s3576_s2 = sld [smem:[#allocation2 + $0x1]] }
 0x1de   :  { %v450_v57 = vpop.f32.mrb[10].mxu1  ;;  %v4872_v56 = vld [vmem:[%s5535_s5 + $0x8] sm:$0xff]  }
 0x1df   :  { %v4007_v58 = vpop.f32.mrb[11].mxu1  ;;  %v583_v18 = vpack.c.bf16 %v448_v17, %v448_v17 }
 0x264   :  { %v327_v34 = vpop.xlane.xlu0 %326 }
 0x265   :  { %v328_v35 = vsub.f32 %v323_v29, %v327_v34 }
 0x267   :  { %v329_v36 = vmul.f32 1.442695, %v328_v35 }
 0x269   :  { %4441 = vpow2.f32 %v329_v36  ;;  %v577_v36 = vpop.f32.mrb[12].mxu1 }
 0x26a   :  { %v578_v41 = vadd.f32 %v4840_v39, %v577_v36 }
 0x26c   :  { %v644_v43 = vpack.c.bf16 %v578_v41, %v578_v41 }
 0x26e   :  { %v649_v44 = vsel %vm341_vm5, %v644_v43, 0 }
 0x26f   :  { %4031 = vmatpush3.bf16.msra.mxu1 %v649_v44 }
 0x270   :  { %4042 = vmatprep.subr.bf16.mxu1 %v4556_v1 }
 0x273   :  { %v4442_v37 = vpop.eup %4441 }
 0x274   :  { %v331_v38 = vsel %vm324_vm4, %v4442_v37, 0.0 }
 0x275   :  { %332 = vadd.xlane.f32.xlu0 %v331_v38 }
 0x302   :  { %v333_v49 = vpop.xlane.xlu0 %332 }
 0x303   :  { %4443 = vrcp.f32 %v333_v49 }
 0x30d   :  { %v4444_v50 = vpop.eup %4443 }
 0x30e   :  { %v335_v51 = vmul.f32 %v4444_v50, %v4442_v37  ;;  %v4022_v37 = vpop.f32.mrb[13].mxu1  ;;  %v4848_v50 = vld [vmem:[%s5535_s5] sm:$0xff]  }
 0x30f   :  { %v580_v38 = vpop.f32.mrb[14].mxu1 }
 0x310   :  { %v336_v53 = vpack.c.bf16 %v335_v51, %v335_v51  ;;  %v4023_v40 = vpop.f32.mrb[15].mxu1 }
 0x312   :  { %3997 = vmatmul.mubr.msk.bf16.vlgmr.msra.gmra.mrb[8].mxu0 %vm324_vm4, %v336_v53 }
 0x313   :  { %4009 = vmatpush3.bf16.msra.mxu0 %v4778_v52  ;;  %4012 = vmatprep.mubr.msk.bf16.mxu0 %vm4557_vm0, %v4556_v1 }
 0x314   :  { %4010 = vmatprep.subr.bf16.mxu0 %v4556_v1 }
 0x317   :  { %4011 = vmatpush3.bf16.msra.mxu0 %v4785_v54 }
 0x318   :  { %4024 = vmatprep.subr.bf16.mxu0 %v4556_v1 }
 0x31a   :  { %4013 = vmatmul.mubr.msk.bf16.vlgmr.msra.gmra.mrb[12].mxu0 %vm100_vm1, %v4687_v6 }
 0x31b   :  { %4026 = vmatprep.mubr.msk.bf16.mxu0 %vm4557_vm0, %v4556_v1 }
 0x3e5   :  { %v4796_v59 = vpop.f32.mrb[8].mxu0 }
 0x3e6   :  { %v3998_v60 = vpop.f32.mrb[9].mxu0  ;;  %v385_v53 = vpack.c.bf16 %v4796_v59, %v4796_v59 }
 0x3e7   :  { %v382_v61 = vpop.f32.mrb[10].mxu0 }
 0x3e8   :  { %v3999_v62 = vpop.f32.mrb[11].mxu0 }
 0x3ed   :  { %v512_v8 = vpop.f32.mrb[12].mxu0 }
 0x3ee   :  { %v513_v9 = vadd.f32 %v4801_v63, %v512_v8  ;;  %v4014_v10 = vpop.f32.mrb[13].mxu0 }
 0x3ef   :  { %v515_v11 = vpop.f32.mrb[14].mxu0 }
 0x3f0   :  { %v584_v14 = vpack.c.bf16 %v513_v9, %v513_v9  ;;  %v4015_v15 = vpop.f32.mrb[15].mxu0 }
 0x3f2   :  { %v589_v16 = vsel %vm276_vm2, %v584_v14, 0 }
 0x3f3   :  { %4025 = vmatpush3.bf16.xpose.msra.mxu0 %v589_v16 }
 0x3f4   :  { %4036 = vmatprep.subr.bf16.mxu0 %v4556_v1 }
 0x3fa   :  { %4027 = vmatmul.mubr.msk.bf16.vlgmr.msra.gmra.mrb[16].mxu0 %vm276_vm2, %v583_v18 }
 0x3fb   :  { %4038 = vmatprep.mubr.msk.bf16.mxu0 %vm4557_vm0, %v4556_v1  ;;  %4037 = vmatpush3.bf16.msra.mxu0 %v4872_v56 }
 0x3fc   :  { %4048 = vmatprep.subr.bf16.mxu0 %v4556_v1 }
 0x4cd   :  { %v625_v21 = vpop.f32.mrb[16].mxu0 }
 0x4ce   :  { %v631_v26 = vsel %vm4741_vm3, %v625_v21, -1000000.0  ;;  %v4028_v28 = vpop.f32.mrb[17].mxu0 }
 0x4cf   :  { %v628_v29 = vpop.f32.mrb[18].mxu0  ;;  %v632_v30 = vsel %vm324_vm4, %v631_v26, -inf }
 0x4d0   :  { %633 = vmax.xlane.f32.xlu1 %v632_v30  ;;  %v4029_v31 = vpop.f32.mrb[19].mxu0 }
 0x55d   :  { %v634_v32 = vpop.xlane.xlu1 %633 }
 0x55e   :  { %v635_v33 = vsub.f32 %v631_v26, %v634_v32 }
 0x560   :  { %v636_v34 = vmul.f32 1.442695, %v635_v33 }
 0x562   :  { %4445 = vpow2.f32 %v636_v34 }
 0x56c   :  { %v4446_v35 = vpop.eup %4445 }
 0x56d   :  { %v638_v6 = vsel %vm324_vm4, %v4446_v35, 0.0 }
 0x56e   :  { %639 = vadd.xlane.f32.xlu1 %v638_v6 }
 0x5fb   :  { %v640_v45 = vpop.xlane.xlu1 %639 }
 0x5fc   :  { %4447 = vrcp.f32 %v640_v45 }
 0x606   :  { %v4448_v46 = vpop.eup %4447 }
 0x607   :  { %v642_v49 = vmul.f32 %v4448_v46, %v4446_v35 }
 0x609   :  { %v643_v51 = vpack.c.bf16 %v642_v49, %v642_v49 }
 0x60b   :  { %4033 = vmatmul.mubr.msk.bf16.vlgmr.msra.gmra.mrb[16].mxu1 %vm324_vm4, %v643_v51 }
 0x60c   :  { %4043 = vmatpush3.bf16.msra.mxu1 %v4848_v50  ;;  %4044 = vmatprep.mubr.msk.bf16.mxu1 %vm4557_vm0, %v4556_v1 }
 0x60d   :  { %4056 = vmatprep.subr.bf16.mxu1 %v4556_v1 }
 0x613   :  { %4045 = vmatmul.mubr.msk.bf16.vlgmr.msra.gmra.mrb[20].mxu1 %vm276_vm2, %v385_v53 }
 0x614   :  { %4057 = vmatpush3.bf16.msra.mxu1 %v4654_v0  ;;  %4060 = vmatprep.mubr.msk.bf16.mxu1 %vm4557_vm0, %v4556_v1  ;;  %v4876_v0 = vpack.c.bf16 %v4867_v55, %v4867_v55 }
 0x615   :  { %4058 = vmatprep.subr.bf16.mxu1 %v4556_v1 }
 0x618   :  { %4059 = vmatpush3.bf16.msra.mxu1 %v4661_v2 }
 0x619   :  { %4072 = vmatprep.subr.bf16.mxu1 %v4556_v1 }
 0x61b   :  { %4061 = vmatmul.mubr.msk.bf16.vlgmr.msra.gmra.mrb[24].mxu1 %vm100_vm1, %v4876_v0 }
 0x61c   :  { %4074 = vmatprep.mubr.msk.bf16.mxu1 %vm4557_vm0, %v4556_v1 }
 0x6de   :  { %v685_v2 = vpop.f32.mrb[16].mxu1 }
 0x6df   :  { %v691_v57 = vpack.c.bf16 %v685_v2, %v685_v2  ;;  %v4034_v58 = vpop.f32.mrb[17].mxu1 }
 0x6e0   :  { %v688_v59 = vpop.f32.mrb[18].mxu1 }
 0x6e1   :  { %v4035_v60 = vpop.f32.mrb[19].mxu1  ;;  %4039 = vmatmul.mubr.msk.bf16.vlgmr.msra.gmra.mrb[20].mxu0 %vm276_vm2, %v691_v57 }
 0x6e2   :  { %4049 = vmatpush3.bf16.msra.mxu0 %v4667_v3  ;;  %4052 = vmatprep.mubr.msk.bf16.mxu0 %vm4557_vm0, %v4556_v1 }
 0x6e3   :  { %4050 = vmatprep.subr.bf16.mxu0 %v4556_v1 }
 0x6e6   :  { %v787_v61 = vpop.f32.mrb[20].mxu1  ;;  %4051 = vmatpush3.bf16.msra.mxu0 %v4683_v5 }
 0x6e7   :  { %v4046_v62 = vpop.f32.mrb[21].mxu1  ;;  %4064 = vmatprep.subr.bf16.mxu0 %v4556_v1 }
 0x6e8   :  { %v790_v8 = vpop.f32.mrb[22].mxu1 }
 0x6e9   :  { %v4047_v9 = vpop.f32.mrb[23].mxu1  ;;  %4053 = vmatmul.mubr.msk.bf16.vlgmr.msra.gmra.mrb[24].mxu0 %vm100_vm1, %v4876_v0 }
 0x6ea   :  { %4065 = vmatpush3.bf16.msra.mxu0 %v4722_v22  ;;  %4068 = vmatprep.mubr.msk.bf16.mxu0 %vm4557_vm0, %v4556_v1 }
 0x6eb   :  { %4066 = vmatprep.subr.bf16.mxu0 %v4556_v1 }
 0x6ee   :  { %4067 = vmatpush3.bf16.msra.mxu0 %v4728_v23  ;;  %v871_v3 = vpop.f32.mrb[24].mxu1 }
 0x6ef   :  { %4078 = vmatprep.subr.bf16.mxu0 %v4556_v1  ;;  %v872_v5 = vadd.f32 %v4705_v7, %v871_v3  ;;  %v4062_v10 = vpop.f32.mrb[25].mxu1 }
 0x6f0   :  { %v874_v22 = vpop.f32.mrb[26].mxu1 }
 0x6f1   :  { %4069 = vmatmul.mubr.msk.bf16.vlgmr.msra.gmra.mrb[28].mxu0 %vm100_vm1, %v4876_v0  ;;  %v918_v11 = vpack.c.bf16 %v872_v5, %v872_v5  ;;  %v4063_v14 = vpop.f32.mrb[27].mxu1 }
 0x6f2   :  { %4080 = vmatprep.mubr.msk.bf16.mxu0 %vm4557_vm0, %v4556_v1 }
 0x6f3   :  { %v923_v15 = vsel %vm276_vm2, %v918_v11, 0 }
 0x6f4   :  { %4073 = vmatpush3.bf16.xpose.msra.mxu1 %v923_v15 }
 0x6f5   :  { %4084 = vmatprep.subr.bf16.mxu1 %v4556_v1 }
 0x7b4   :  { %v738_v23 = vpop.f32.mrb[20].mxu0 }
 0x7b5   :  { %v4906_v16 = vadd.f32 %v787_v61, %v738_v23  ;;  %v4040_v17 = vpop.f32.mrb[21].mxu0 }
 0x7b6   :  { %v741_v18 = vpop.f32.mrb[22].mxu0 }
 0x7b7   :  { %v4041_v21 = vpop.f32.mrb[23].mxu0 }
 0x7bc   :  { %v831_v26 = vpop.f32.mrb[24].mxu0 }
 0x7bd   :  { %v832_v28 = vadd.f32 %v4711_v12, %v831_v26  ;;  %v4054_v29 = vpop.f32.mrb[25].mxu0  ;;  %v74_v12 = vstv %s3576_s2 }
 0x7be   :  { %v834_v7 = vpop.f32.mrb[26].mxu0  ;;  %vm4929_vm6 = vcmp.lt.s32.totalorder %v4738_v25, %v74_v12 }
 0x7bf   :  { %v917_v30 = vpack.c.bf16 %v832_v28, %v832_v28  ;;  %v4055_v31 = vpop.f32.mrb[27].mxu0 }
 0x7c1   :  { %4075 = vmatmul.mubr.msk.bf16.vlgmr.msra.gmra.mrb[28].mxu1 %vm276_vm2, %v917_v30 }
 0x7c2   :  { %4085 = vmatpush3.bf16.msra.mxu1 %v4760_v47  ;;  %4088 = vmatprep.mubr.msk.bf16.mxu1 %vm4557_vm0, %v4556_v1 }
 0x7c3   :  { %4086 = vmatprep.subr.bf16.mxu1 %v4556_v1 }
 0x7c4   :  { %v911_v40 = vpop.f32.mrb[28].mxu0 }
 0x7c5   :  { %v4070_v41 = vpop.f32.mrb[29].mxu0  ;;  %v912_v45 = vadd.f32 %v4752_v42, %v911_v40 }
 0x7c6   :  { %4087 = vmatpush3.bf16.msra.mxu1 %v4767_v48  ;;  %v914_v43 = vpop.f32.mrb[30].mxu0 }
 0x7c7   :  { %4100 = vmatprep.subr.bf16.mxu1 %v4556_v1  ;;  %v4071_v44 = vpop.f32.mrb[31].mxu0  ;;  %v978_v46 = vpack.c.bf16 %v912_v45, %v912_v45 }
 0x7c9   :  { %4089 = vmatmul.mubr.msk.bf16.vlgmr.msra.gmra.mrb[32].mxu1 %vm100_vm1, %v4876_v0  ;;  %v983_v49 = vsel %vm341_vm5, %v978_v46, 0 }
 0x7ca   :  { %4101 = vmatpush3.bf16.msra.mxu1 %v4818_v19  ;;  %4104 = vmatprep.mubr.msk.bf16.mxu1 %vm4557_vm0, %v4556_v1 }
 0x7cb   :  { %4102 = vmatprep.subr.bf16.mxu1 %v4556_v1  ;;  %4079 = vmatpush3.bf16.msra.mxu0 %v983_v49 }
 0x7cc   :  { %4092 = vmatprep.subr.bf16.mxu0 %v4556_v1 }
 0x7ce   :  { %4103 = vmatpush3.bf16.msra.mxu1 %v4824_v20 }
 0x7cf   :  { %4114 = vmatprep.subr.bf16.mxu1 %v4556_v1 }
 0x7d1   :  { %4105 = vmatmul.mubr.msk.bf16.vlgmr.msra.gmra.mrb[36].mxu1 %vm100_vm1, %v4876_v0 }
 0x7d2   :  { %4116 = vmatprep.mubr.msk.bf16.mxu1 %vm4557_vm0, %v4556_v1 }
 0x894   :  { %v959_v48 = vpop.f32.mrb[28].mxu1 }
 0x895   :  { %v965_v19 = vsel %vm4929_vm6, %v959_v48, -1000000.0  ;;  %v4076_v20 = vpop.f32.mrb[29].mxu1 }
 0x896   :  { %v962_v32 = vpop.f32.mrb[30].mxu1  ;;  %v966_v33 = vsel %vm324_vm4, %v965_v19, -inf }
 0x897   :  { %967 = vmax.xlane.f32.xlu0 %v966_v33  ;;  %v4077_v34 = vpop.f32.mrb[31].mxu1 }
 0x89c   :  { %v1060_v42 = vpop.f32.mrb[32].mxu1 }
 0x89d   :  { %v4090_v58 = vpop.f32.mrb[33].mxu1  ;;  %v1061_v11 = vadd.f32 %v4807_v13, %v1060_v42  ;;  %v3648_v13 = vld [vmem:[%s5539_s9] ss:$0 sm:$0xff] }
 0x89e   :  { %v1063_v59 = vpop.f32.mrb[34].mxu1 }
 0x89f   :  { %v4091_v60 = vpop.f32.mrb[35].mxu1  ;;  %v1146_v14 = vpack.c.bf16 %v1061_v11, %v1061_v11  ;;  %v4410_v11 = vld [vmem:[%s5538_s8 + $0x8] sm:$0xff]  }
 0x8a4   :  { %v1140_v32 = vpop.f32.mrb[36].mxu1 }
 0x8a5   :  { %v4106_v33 = vpop.f32.mrb[37].mxu1 }
 0x8a6   :  { %v1143_v34 = vpop.f32.mrb[38].mxu1 }
 0x924   :  { %v968_v35 = vpop.xlane.xlu0 %967 }
 0x925   :  { %v969_v6 = vsub.f32 %v965_v19, %v968_v35  ;;  %v4107_v35 = vpop.f32.mrb[39].mxu1 }
 0x927   :  { %v970_v36 = vmul.f32 1.442695, %v969_v6  ;;  %v1141_v6 = vadd.f32 %v4840_v39, %v1140_v32 }
 0x929   :  { %4449 = vpow2.f32 %v970_v36  ;;  %v1207_v36 = vpack.c.bf16 %v1141_v6, %v1141_v6 }
 0x933   :  { %v4450_v37 = vpop.eup %4449 }
 0x934   :  { %v972_v38 = vsel %vm324_vm4, %v4450_v37, 0.0 }
 0x935   :  { %973 = vadd.xlane.f32.xlu1 %v972_v38 }
 0x9c2   :  { %v974_v51 = vpop.xlane.xlu1 %973 }
 0x9c3   :  { %4451 = vrcp.f32 %v974_v51 }
 0x9cd   :  { %v4452_v53 = vpop.eup %4451 }
 0x9ce   :  { %v976_v2 = vmul.f32 %v4452_v53, %v4450_v37  ;;  %v1212_v37 = vsel %vm341_vm5, %v1207_v36, 0 }
 0x9cf   :  { %4115 = vmatpush3.bf16.msra.mxu1 %v1212_v37 }
 0x9d0   :  { %v977_v57 = vpack.c.bf16 %v976_v2, %v976_v2  ;;  %4126 = vmatprep.subr.bf16.mxu1 %v4556_v1 }
 0x9d2   :  { %4081 = vmatmul.mubr.msk.bf16.vlgmr.msra.gmra.mrb[32].mxu0 %vm324_vm4, %v977_v57 }
 0x9d3   :  { %4093 = vmatpush3.bf16.msra.mxu0 %v4778_v52  ;;  %4096 = vmatprep.mubr.msk.bf16.mxu0 %vm4557_vm0, %v4556_v1 }
 0x9d4   :  { %4094 = vmatprep.subr.bf16.mxu0 %v4556_v1 }
 0x9d7   :  { %4095 = vmatpush3.bf16.msra.mxu0 %v4785_v54 }
 0x9d8   :  { %4108 = vmatprep.subr.bf16.mxu0 %v4556_v1 }
 0x9da   :  { %4097 = vmatmul.mubr.msk.bf16.vlgmr.msra.gmra.mrb[36].mxu0 %vm100_vm1, %v4876_v0 }
 0x9db   :  { %4110 = vmatprep.mubr.msk.bf16.mxu0 %vm4557_vm0, %v4556_v1 }
 0xaa5   :  { %v4951_v52 = vpop.f32.mrb[32].mxu0 }
 0xaa6   :  { %v4082_v61 = vpop.f32.mrb[33].mxu0  ;;  %v1025_v39 = vpack.c.bf16 %v4951_v52, %v4951_v52 }
 0xaa7   :  { %v1022_v62 = vpop.f32.mrb[34].mxu0 }
 0xaa8   :  { %v4083_v8 = vpop.f32.mrb[35].mxu0 }
 0xaad   :  { %v1100_v9 = vpop.f32.mrb[36].mxu0 }
 0xaae   :  { %v1101_v54 = vadd.f32 %v4801_v63, %v1100_v9  ;;  %v4098_v3 = vpop.f32.mrb[37].mxu0  ;;  %v1341_v63 = vadd.f32 %v4906_v16, %v4675_v4 }
 0xaaf   :  { %v1103_v5 = vpop.f32.mrb[38].mxu0 }
 0xab0   :  { %v1147_v10 = vpack.c.bf16 %v1101_v54, %v1101_v54  ;;  %v4099_v22 = vpop.f32.mrb[39].mxu0  ;;  %v1350_v21 = vadd.f32 %v3648_v13, %v1341_v63 }
 0xab1   :  { %v4407_v22 = vld [vmem:[%s5536_s6] sm:$0xff]  }
 0xab2   :  { %v1152_v0 = vsel %vm276_vm2, %v1147_v10, 0  ;;  %v1356_v28 = vsel %vm100_vm1, %v1350_v21, 0.0 }
 0xab3   :  { %4109 = vmatpush3.bf16.xpose.msra.mxu0 %v1152_v0  ;;  %v4409_v0 = vld [vmem:[%s5538_s8] sm:$0xff]  }
 0xab4   :  { %4120 = vmatprep.subr.bf16.mxu0 %v4556_v1 }
 0xaba   :  { %4111 = vmatmul.mubr.msk.bf16.vlgmr.msra.gmra.mrb[40].mxu0 %vm276_vm2, %v1146_v14 }
 0xabb   :  { %4121 = vmatpush3.bf16.msra.mxu0 %v4872_v56  ;;  %4122 = vmatprep.mubr.msk.bf16.mxu0 %vm4557_vm0, %v4556_v1 }
 0xabc   :  { %4132 = vmatprep.subr.bf16.mxu0 %v4556_v1 }
 0xb8d   :  { %v1188_v15 = vpop.f32.mrb[40].mxu0 }
 0xb8e   :  { %v1194_v23 = vsel %vm4929_vm6, %v1188_v15, -1000000.0  ;;  %v4112_v17 = vpop.f32.mrb[41].mxu0 }
 0xb8f   :  { %v1191_v18 = vpop.f32.mrb[42].mxu0  ;;  %v1195_v56 = vsel %vm324_vm4, %v1194_v23, -inf }
 0xb90   :  { %1196 = vmax.xlane.f32.xlu0 %v1195_v56  ;;  %v4113_v26 = vpop.f32.mrb[43].mxu0 }
 0xb94   :  { %1357 = vadd.xlane.f32.xlu0 %v1356_v28 }
 0xc1d   :  { %v1197_v29 = vpop.xlane.xlu0 %1196 }
 0xc1e   :  { %v1198_v4 = vsub.f32 %v1194_v23, %v1197_v29 }
 0xc20   :  { %v1199_v16 = vmul.f32 1.442695, %v1198_v4  ;;  %v3652_v4 = vld [vmem:[%s5539_s9 + $0x2] ss:$0 sm:$0xff] }
 0xc21   :  { %v1358_v7 = vpop.xlane.xlu0 %1357 }
 0xc22   :  { %4453 = vpow2.f32 %v1199_v16  ;;  %v1363_v30 = vmul.f32 0.03125, %v1358_v7 }
 0xc24   :  { %v4971_v31 = vsub.f32 %v1350_v21, %v1363_v30  ;;  %v3651_v21 = vld [vmem:[%s5539_s9 + $0x1] ss:$0 sm:$0xff] }
 0xc26   :  { %v1367_v12 = vmul.f32 %v4971_v31, %v4971_v31 }
 0xc28   :  { %v1369_v48 = vsel %vm100_vm1, %v1367_v12, 0.0 }
 0xc29   :  { %1370 = vadd.xlane.f32.xlu0 %v1369_v48  ;;  %v4412_v48 = vld [vmem:[%s5538_s8 + $0x18] sm:$0xff]  }
 0xc2c   :  { %v4454_v19 = vpop.eup %4453 }
 0xc2d   :  { %v1201_v20 = vsel %vm324_vm4, %v4454_v19, 0.0 }
 0xc2e   :  { %1202 = vadd.xlane.f32.xlu1 %v1201_v20 }
 0xcb6   :  { %v1371_v14 = vpop.xlane.xlu0 %1370 }
 0xcb7   :  { %v1375_v63 = vmul.f32 0.03125, %v1371_v14  ;;  %v5121_v14 = vld [vmem:[%s5534_s4 + $0x8] ss:$0 sm:$0xff] }
 0xcbb   :  { %v1203_v38 = vpop.xlane.xlu1 %1202 }
 0xcbc   :  { %4455 = vrcp.f32 %v1203_v38 }
 0xcc6   :  { %v4456_v40 = vpop.eup %4455 }
 0xcc7   :  { %v1205_v41 = vmul.f32 %v4456_v40, %v4454_v19  ;;  %v3653_v19 = vld [vmem:[%s5537_s7] ss:$0 sm:$0xff]  ;;  %v3658_v40 = vld [vmem:[%s5539_s9 + $0x3] ss:$0 sm:$0xff] }
 0xcc9   :  { %v1206_v43 = vpack.c.bf16 %v1205_v41, %v1205_v41 }
 0xccb   :  { %4117 = vmatmul.mubr.msk.bf16.vlgmr.msra.gmra.mrb[40].mxu1 %vm324_vm4, %v1206_v43 }
 0xccc   :  { %4127 = vmatpush3.bf16.msra.mxu1 %v4848_v50  ;;  %4128 = vmatprep.mubr.msk.bf16.mxu1 %vm4557_vm0, %v4556_v1 }
 0xccd   :  { %4140 = vmatprep.subr.bf16.mxu1 %v4556_v1 }
 0xcd3   :  { %4129 = vmatmul.mubr.msk.bf16.vlgmr.msra.gmra.mrb[44].mxu1 %vm276_vm2, %v1025_v39 }
 0xcd4   :  { %4148 = vmatprep.mubr.msk.bf16.mxu1 %vm4557_vm0, %v4556_v1  ;;  %4141 = vmatpush3.bf16.msra.mxu1 %v4409_v0 }
 0xcd5   :  { %4142 = vmatprep.subr.bf16.mxu1 %v4556_v1 }
 0xcd8   :  { %4143 = vmatpush3.bf16.msra.mxu1 %v4410_v11  ;;  %v5105_v11 = vld [vmem:[%s5533_s3 + $0x78] sm:$0xff]  }
 0xcd9   :  { %4144 = vmatprep.subr.bf16.mxu1 %v4556_v1 }
 0xd9e   :  { %v1248_v44 = vpop.f32.mrb[40].mxu1 }
 0xd9f   :  { %v1254_v45 = vpack.c.bf16 %v1248_v44, %v1248_v44  ;;  %v4118_v46 = vpop.f32.mrb[41].mxu1 }
 0xda0   :  { %v1251_v49 = vpop.f32.mrb[42].mxu1 }
 0xda1   :  { %v4119_v51 = vpop.f32.mrb[43].mxu1  ;;  %4123 = vmatmul.mubr.msk.bf16.vlgmr.msra.gmra.mrb[44].mxu0 %vm276_vm2, %v1254_v45 }
 0xda2   :  { %4136 = vmatprep.mubr.msk.bf16.mxu0 %vm4557_vm0, %v4556_v1  ;;  %4133 = vmatpush3.bf16.msra.mxu0 %v4407_v22 }
 0xda3   :  { %4134 = vmatprep.subr.bf16.mxu0 %v4556_v1 }
 0xda6   :  { %v1335_v50 = vpop.f32.mrb[44].mxu1 }
 0xda7   :  { %v4130_v53 = vpop.f32.mrb[45].mxu1 }
 0xda8   :  { %v1338_v2 = vpop.f32.mrb[46].mxu1 }
 0xda9   :  { %v4131_v57 = vpop.f32.mrb[47].mxu1 }
 0xe74   :  { %v1292_v42 = vpop.f32.mrb[44].mxu0 }
 0xe75   :  { %v1336_v58 = vadd.f32 %v1335_v50, %v1292_v42  ;;  %v4124_v59 = vpop.f32.mrb[45].mxu0 }
 0xe76   :  { %v1295_v60 = vpop.f32.mrb[46].mxu0  ;;  %v5054_v59 = vld [vmem:[%s5533_s3 + $0x80] sm:$0xff]  }
 0xe77   :  { %v1342_v52 = vadd.f32 %v1336_v58, %v4867_v55  ;;  %v4125_v61 = vpop.f32.mrb[47].mxu0  ;;  %v4408_v55 = vld [vmem:[%s5536_s6 + $0x8] sm:$0xff]   ;;  %v5049_v58 = vld [vmem:[%s5533_s3 + $0x60] sm:$0xff]  }
 0xe78   :  { %4135 = vmatpush3.bf16.msra.mxu0 %v4408_v55  ;;  %v5063_v60 = vld [vmem:[%s5533_s3 + $0x68] sm:$0xff]   ;;  %v5091_v55 = vld [vmem:[%s5533_s3 + $0x70] sm:$0xff]  }
 0xe79   :  { %v1351_v62 = vadd.f32 %v3648_v13, %v1342_v52  ;;  %4152 = vmatprep.subr.bf16.mxu0 %v4556_v1  ;;  %v1377_v13 = vadd.f32 1e-05, %v1375_v63  ;;  %v5068_v52 = vld [vmem:[%s5533_s3 + $0x88] sm:$0xff]  }
 0xe7b   :  { %v1359_v8 = vsel %vm100_vm1, %v1351_v62, 0.0  ;;  %4457 = vrsqrt.f32 %v1377_v13 }
 0xe7c   :  { %1360 = vadd.xlane.f32.xlu1 %v1359_v8 }
 0xe85   :  { %v4458_v18 = vpop.eup %4457 }
 0xe86   :  { %v1381_v56 = vmul.f32 %v4458_v18, %v4971_v31  ;;  %v4411_v31 = vld [vmem:[%s5538_s8 + $0x10] sm:$0xff]  }
 0xe87   :  { %4145 = vmatpush3.bf16.msra.mxu1 %v4411_v31 }
 0xe88   :  { %v1389_v28 = vmul.f32 %v3651_v21, %v1381_v56  ;;  %4146 = vmatprep.subr.bf16.mxu1 %v4556_v1 }
 0xe8a   :  { %v1397_v7 = vadd.f32 %v3652_v4, %v1389_v28 }
 0xe8b   :  { %4147 = vmatpush3.bf16.msra.mxu1 %v4412_v48 }
 0xe8c   :  { %4168 = vmatprep.subr.bf16.mxu1 %v4556_v1 }
 0xf09   :  { %v1361_v9 = vpop.xlane.xlu1 %1360 }
 0xf0a   :  { %v1364_v54 = vmul.f32 0.03125, %v1361_v9 }
 0xf0c   :  { %v1366_v3 = vsub.f32 %v1351_v62, %v1364_v54  ;;  %v5077_v54 = vld [vmem:[%s5539_s9 + $0x4] ss:$0 sm:$0xff] }
 0xf0e   :  { %v1368_v5 = vmul.f32 %v1366_v3, %v1366_v3 }
 0xf10   :  { %v1372_v10 = vsel %vm100_vm1, %v1368_v5, 0.0  ;;  %v5082_v5 = vld [vmem:[%s5539_s9 + $0x5] ss:$0 sm:$0xff] }
 0xf11   :  { %1373 = vadd.xlane.f32.xlu1 %v1372_v10 }
 0xf9e   :  { %v1374_v15 = vpop.xlane.xlu1 %1373 }
 0xf9f   :  { %v1376_v23 = vmul.f32 0.03125, %v1374_v15 }
 0xfa1   :  { %v1378_v17 = vadd.f32 1e-05, %v1376_v23 }
 0xfa3   :  { %4459 = vrsqrt.f32 %v1378_v17 }
 0xfad   :  { %v4460_v26 = vpop.eup %4459 }
 0xfae   :  { %v1382_v29 = vmul.f32 %v4460_v26, %v1366_v3 }
 0xfb0   :  { %v1390_v16 = vmul.f32 %v3651_v21, %v1382_v29 }
 0xfb2   :  { %v5019_v30 = vadd.f32 %v3652_v4, %v1390_v16  ;;  %v5128_v4 = vld [vmem:[%s5534_s4 + $0x7] ss:$0 sm:$0xff] }
 0xfb4   :  { %v1399_v12 = vpack.c.bf16 %v5019_v30, %v1397_v7 }
 0xfb6   :  { %4137 = vmatmul.mubr.msk.bf16.vlgmr.msra.gmra.mrb[48].mxu0 %vm100_vm1, %v1399_v12 }
 0xfb7   :  { %4156 = vmatprep.mubr.msk.bf16.mxu0 %vm4557_vm0, %v4556_v1  ;;  %4153 = vmatpush3.bf16.msra.mxu0 %v5049_v58 }
 0xfb8   :  { %4154 = vmatprep.subr.bf16.mxu0 %v4556_v1 }
 0xfbb   :  { %4155 = vmatpush3.bf16.msra.mxu0 %v5063_v60 }
 0xfbc   :  { %4160 = vmatprep.subr.bf16.mxu0 %v4556_v1 }
0x1089   :  { %v1460_v20 = vpop.f32.mrb[48].mxu0 }
0x108a   :  { %v1461_v32 = vadd.f32 %v3653_v19, %v1460_v20  ;;  %v4138_v33 = vpop.f32.mrb[49].mxu0  ;;  %v5135_v20 = vld [vmem:[%s5534_s4 + $0x6] ss:$0 sm:$0xff] }
0x108b   :  { %v1463_v34 = vpop.f32.mrb[50].mxu0 }
0x108c   :  { %v1464_v35 = vadd.f32 %v3653_v19, %v1463_v34  ;;  %v4139_v6 = vpop.f32.mrb[51].mxu0  ;;  %v1467_v36 = vmax.f32 %v1461_v32, 0.0  ;;  %v5143_v34 = vld [vmem:[%s5533_s3 + $0x90] sm:$0xff]  }
0x108d   :  { %v5150_v6 = vld [vmem:[%s5533_s3 + $0x98] sm:$0xff]  }
0x108e   :  { %v1468_v37 = vmax.f32 %v1464_v35, 0.0 }
0x1090   :  { %v1469_v38 = vpack.c.bf16 %v1468_v37, %v1467_v36  ;;  %v5159_v36 = vld [vmem:[%s5533_s3 + $0xb0] sm:$0xff]   ;;  %v5168_v37 = vld [vmem:[%s5533_s3 + $0xb8] sm:$0xff]  }
0x1092   :  { %4149 = vmatmul.mubr.msk.bf16.vlgmr.msra.gmra.mrb[48].mxu1 %vm1510_vm7, %v1469_v38 }
0x1093   :  { %4172 = vmatprep.mubr.msk.bf16.mxu1 %vm4557_vm0, %v4556_v1  ;;  %4169 = vmatpush3.bf16.msra.mxu1 %v5054_v59 }
0x1094   :  { %4170 = vmatprep.subr.bf16.mxu1 %v4556_v1 }
0x1097   :  { %4171 = vmatpush3.bf16.msra.mxu1 %v5068_v52 }
0x1098   :  { %4182 = vmatprep.subr.bf16.mxu1 %v4556_v1 }
0x1165   :  { %v1548_v41 = vpop.f32.mrb[48].mxu1 }
0x1166   :  { %v1549_v43 = vadd.f32 %v3658_v40, %v1548_v41  ;;  %v4150_v39 = vpop.f32.mrb[49].mxu1 }
0x1167   :  { %v1551_v44 = vpop.f32.mrb[50].mxu1 }
0x1168   :  { %v5042_v45 = vadd.f32 %v3658_v40, %v1551_v44  ;;  %v4151_v46 = vpop.f32.mrb[51].mxu1  ;;  %v1555_v49 = vadd.f32 %v1549_v43, %v1397_v7 }
0x116a   :  { %v1561_v51 = vsel %vm100_vm1, %v1555_v49, 0.0 }
0x116b   :  { %1562 = vadd.xlane.f32.xlu0 %v1561_v51 }
0x11f8   :  { %v1563_v50 = vpop.xlane.xlu0 %1562 }
0x11f9   :  { %v1567_v53 = vmul.f32 0.03125, %v1563_v50 }
0x11fb   :  { %v1569_v2 = vsub.f32 %v1555_v49, %v1567_v53  ;;  %v5185_v53 = vld [vmem:[%s5534_s4 + $0xb] ss:$0 sm:$0xff] }
0x11fd   :  { %v1571_v57 = vmul.f32 %v1569_v2, %v1569_v2 }
0x11ff   :  { %v1573_v42 = vsel %vm100_vm1, %v1571_v57, 0.0 }
0x1200   :  { %1574 = vadd.xlane.f32.xlu1 %v1573_v42 }
0x128d   :  { %v1575_v61 = vpop.xlane.xlu1 %1574 }
0x128e   :  { %v1579_v62 = vmul.f32 0.03125, %v1575_v61 }
0x1290   :  { %v1581_v8 = vadd.f32 1e-05, %v1579_v62 }
0x1292   :  { %4461 = vrsqrt.f32 %v1581_v8 }
0x129c   :  { %v4462_v9 = vpop.eup %4461 }
0x129d   :  { %v1585_v3 = vmul.f32 %v4462_v9, %v1569_v2 }
0x129f   :  { %v1593_v10 = vmul.f32 %v5077_v54, %v1585_v3 }
0x12a1   :  { %v5086_v22 = vadd.f32 %v5082_v5, %v1593_v10 }
0x12a3   :  { %v5095_v0 = vpack.c.bf16 %v5086_v22, %v5086_v22 }
0x12a5   :  { %4157 = vmatmul.mubr.msk.bf16.vlgmr.msra.gmra.mrb[52].mxu0 %vm100_vm1, %v5095_v0  ;;  %4173 = vmatmul.mubr.msk.bf16.vlgmr.msra.gmra.mrb[52].mxu1 %vm100_vm1, %v5095_v0 }
0x12a6   :  { %4161 = vmatpush3.bf16.msra.mxu0 %v5091_v55  ;;  %4164 = vmatprep.mubr.msk.bf16.mxu0 %vm4557_vm0, %v4556_v1 }
0x12a7   :  { %4162 = vmatprep.subr.bf16.mxu0 %v4556_v1  ;;  %4184 = vmatprep.mubr.msk.bf16.mxu1 %vm4557_vm0, %v4556_v1 }
0x12aa   :  { %4163 = vmatpush3.bf16.msra.mxu0 %v5105_v11 }
0x12ab   :  { %4176 = vmatprep.subr.bf16.mxu0 %v4556_v1 }
0x12ad   :  { %4165 = vmatmul.mubr.msk.bf16.vlgmr.msra.gmra.mrb[56].mxu0 %vm100_vm1, %v5095_v0 }
0x12ae   :  { %4178 = vmatprep.mubr.msk.bf16.mxu0 %vm4557_vm0, %v4556_v1 }
0x1378   :  { %v1666_v63 = vpop.f32.mrb[52].mxu0  ;;  %v1796_v13 = vpop.f32.mrb[52].mxu1 }
0x1379   :  { %v1797_v15 = vadd.f32 %v5121_v14, %v1796_v13  ;;  %v4158_v23 = vpop.f32.mrb[53].mxu0  ;;  %v4174_v17 = vpop.f32.mrb[53].mxu1  ;;  %v1667_v33 = vadd.f32 %v5135_v20, %v1666_v63 }
0x137a   :  { %v1669_v18 = vpop.f32.mrb[54].mxu0  ;;  %v1799_v56 = vpop.f32.mrb[54].mxu1 }
0x137b   :  { %v1863_v21 = vpack.c.bf16 %v1797_v15, %v1797_v15  ;;  %v4159_v26 = vpop.f32.mrb[55].mxu0  ;;  %v4175_v28 = vpop.f32.mrb[55].mxu1  ;;  %v1802_v35 = vpack.c.bf16 %v1667_v33, %v1667_v33  ;;  %v5194_v56 = vld [vmem:[%s5533_s3 + $0xa0] sm:$0xff]  }
0x137c   :  { %v5201_v26 = vld [vmem:[%s5533_s3 + $0xa8] sm:$0xff]  }
0x137d   :  { %v1868_v29 = vsel %vm341_vm5, %v1863_v21, 0 }
0x137e   :  { %4183 = vmatpush3.bf16.msra.mxu1 %v1868_v29 }
0x137f   :  { %4196 = vmatprep.subr.bf16.mxu1 %v4556_v1 }
0x1380   :  { %v1731_v16 = vpop.f32.mrb[56].mxu0 }
0x1381   :  { %v1732_v7 = vadd.f32 %v5128_v4, %v1731_v16  ;;  %v4166_v12 = vpop.f32.mrb[57].mxu0 }
0x1382   :  { %v1734_v31 = vpop.f32.mrb[58].mxu0  ;;  %v5215_v12 = vld [vmem:[%s5534_s4 + $0xa] ss:$0 sm:$0xff] }
0x1383   :  { %v1803_v48 = vpack.c.bf16 %v1732_v7, %v1732_v7  ;;  %v4167_v19 = vpop.f32.mrb[59].mxu0 }
0x1385   :  { %v1808_v32 = vsel %vm276_vm2, %v1803_v48, 0 }
0x1386   :  { %4177 = vmatpush3.bf16.xpose.msra.mxu0 %v1808_v32 }
0x1387   :  { %4188 = vmatprep.subr.bf16.mxu0 %v4556_v1 }
0x138d   :  { %4179 = vmatmul.mubr.msk.bf16.vlgmr.msra.gmra.mrb[60].mxu0 %vm276_vm2, %v1802_v35 }
0x138e   :  { %4189 = vmatpush3.bf16.msra.mxu0 %v5143_v34  ;;  %4192 = vmatprep.mubr.msk.bf16.mxu0 %vm4557_vm0, %v4556_v1 }
0x138f   :  { %4190 = vmatprep.subr.bf16.mxu0 %v4556_v1 }
0x1392   :  { %4191 = vmatpush3.bf16.msra.mxu0 %v5150_v6 }
0x1393   :  { %4204 = vmatprep.subr.bf16.mxu0 %v4556_v1 }
0x1395   :  { %4193 = vmatmul.mubr.msk.bf16.vlgmr.msra.gmra.mrb[64].mxu0 %vm100_vm1, %v5095_v0 }
0x1396   :  { %4205 = vmatpush3.bf16.msra.mxu0 %v5159_v36  ;;  %4208 = vmatprep.mubr.msk.bf16.mxu0 %vm4557_vm0, %v4556_v1 }
0x1397   :  { %4206 = vmatprep.subr.bf16.mxu0 %v4556_v1 }
0x139a   :  { %4207 = vmatpush3.bf16.msra.mxu0 %v5168_v37 }
0x139b   :  { %4218 = vmatprep.subr.bf16.mxu0 %v4556_v1 }
0x139d   :  { %4209 = vmatmul.mubr.msk.bf16.vlgmr.msra.gmra.mrb[68].mxu0 %vm100_vm1, %v5095_v0 }
0x139e   :  { %4220 = vmatprep.mubr.msk.bf16.mxu0 %vm4557_vm0, %v4556_v1 }
0x1460   :  { %v1844_v38 = vpop.f32.mrb[60].mxu0 }
0x1461   :  { %v1850_v40 = vsel %vm4741_vm3, %v1844_v38, -1000000.0  ;;  %v4180_v41 = vpop.f32.mrb[61].mxu0 }
0x1462   :  { %v1847_v43 = vpop.f32.mrb[62].mxu0  ;;  %v1851_v39 = vsel %vm324_vm4, %v1850_v40, -inf }
0x1463   :  { %1852 = vmax.xlane.f32.xlu0 %v1851_v39  ;;  %v4181_v44 = vpop.f32.mrb[63].mxu0 }
0x1468   :  { %v1973_v46 = vpop.f32.mrb[64].mxu0 }
0x1469   :  { %v4194_v49 = vpop.f32.mrb[65].mxu0 }
0x146a   :  { %v1976_v51 = vpop.f32.mrb[66].mxu0 }
0x146b   :  { %v4195_v50 = vpop.f32.mrb[67].mxu0 }
0x146c   :  { %v1556_v50 = vadd.f32 %v5042_v45, %v5019_v30 }
0x1470   :  { %v2103_v2 = vpop.f32.mrb[68].mxu0 }
0x1471   :  { %v2104_v57 = vadd.f32 %v5185_v53, %v2103_v2  ;;  %v4210_v42 = vpop.f32.mrb[69].mxu0  ;;  %v1564_v2 = vsel %vm100_vm1, %v1556_v50, 0.0 }
0x1472   :  { %v2106_v61 = vpop.f32.mrb[70].mxu0 }
0x1473   :  { %v2170_v62 = vpack.c.bf16 %v2104_v57, %v2104_v57  ;;  %v4211_v8 = vpop.f32.mrb[71].mxu0 }
0x1475   :  { %v2175_v9 = vsel %vm341_vm5, %v2170_v62, 0 }
0x1476   :  { %4219 = vmatpush3.bf16.msra.mxu0 %v2175_v9 }
0x1477   :  { %4230 = vmatprep.subr.bf16.mxu0 %v4556_v1 }
0x14f0   :  { %v1853_v3 = vpop.xlane.xlu0 %1852 }
0x14f1   :  { %v1854_v10 = vsub.f32 %v1850_v40, %v1853_v3 }
0x14f3   :  { %v1855_v63 = vmul.f32 1.442695, %v1854_v10 }
0x14f5   :  { %4463 = vpow2.f32 %v1855_v63 }
0x14ff   :  { %v4464_v13 = vpop.eup %4463 }
0x1500   :  { %v1857_v15 = vsel %vm324_vm4, %v4464_v13, 0.0 }
0x1501   :  { %1858 = vadd.xlane.f32.xlu1 %v1857_v15 }
0x158e   :  { %v1859_v23 = vpop.xlane.xlu1 %1858 }
0x158f   :  { %4465 = vrcp.f32 %v1859_v23 }
0x1599   :  { %v4466_v17 = vpop.eup %4465 }
0x159a   :  { %v1861_v18 = vmul.f32 %v4466_v17, %v4464_v13 }
0x159c   :  { %v1862_v21 = vpack.c.bf16 %v1861_v18, %v1861_v18  ;;  %v5240_v18 = vld [vmem:[%s5535_s5 + $0x10] sm:$0xff]  }
0x159e   :  { %4185 = vmatmul.mubr.msk.bf16.vlgmr.msra.gmra.mrb[56].mxu1 %vm324_vm4, %v1862_v21 }
0x159f   :  { %4197 = vmatpush3.bf16.msra.mxu1 %v5194_v56  ;;  %4200 = vmatprep.mubr.msk.bf16.mxu1 %vm4557_vm0, %v4556_v1 }
0x15a0   :  { %4198 = vmatprep.subr.bf16.mxu1 %v4556_v1 }
0x15a3   :  { %4199 = vmatpush3.bf16.msra.mxu1 %v5201_v26 }
0x15a4   :  { %4212 = vmatprep.subr.bf16.mxu1 %v4556_v1 }
0x15a6   :  { %4201 = vmatmul.mubr.msk.bf16.vlgmr.msra.gmra.mrb[60].mxu1 %vm100_vm1, %v5095_v0  ;;  %v5221_v0 = vld [vmem:[%s5534_s4 + $0x9] ss:$0 sm:$0xff] }
0x15a7   :  { %4214 = vmatprep.mubr.msk.bf16.mxu1 %vm4557_vm0, %v4556_v1  ;;  %v1974_v40 = vadd.f32 %v5221_v0, %v1973_v46 }
0x15a9   :  { %v2109_v41 = vpack.c.bf16 %v1974_v40, %v1974_v40 }
0x1671   :  { %v1904_v28 = vpop.f32.mrb[56].mxu1 }
0x1672   :  { %v4186_v29 = vpop.f32.mrb[57].mxu1 }
0x1673   :  { %v1907_v16 = vpop.f32.mrb[58].mxu1 }
0x1674   :  { %v4187_v7 = vpop.f32.mrb[59].mxu1 }
0x1675   :  { %v1910_v7 = vpack.c.bf16 %v1904_v28, %v1904_v28 }
0x1679   :  { %v2038_v31 = vpop.f32.mrb[60].mxu1 }
0x167a   :  { %v2039_v48 = vadd.f32 %v5215_v12, %v2038_v31  ;;  %v4202_v19 = vpop.f32.mrb[61].mxu1 }
0x167b   :  { %v2041_v32 = vpop.f32.mrb[62].mxu1 }
0x167c   :  { %v2110_v33 = vpack.c.bf16 %v2039_v48, %v2039_v48  ;;  %v4203_v35 = vpop.f32.mrb[63].mxu1 }
0x167e   :  { %v2115_v38 = vsel %vm276_vm2, %v2110_v33, 0 }
0x167f   :  { %4213 = vmatpush3.bf16.xpose.msra.mxu1 %v2115_v38 }
0x1680   :  { %4224 = vmatprep.subr.bf16.mxu1 %v4556_v1 }
0x1686   :  { %4215 = vmatmul.mubr.msk.bf16.vlgmr.msra.gmra.mrb[64].mxu1 %vm276_vm2, %v2109_v41 }
0x1687   :  { %4226 = vmatprep.mubr.msk.bf16.mxu1 %vm4557_vm0, %v4556_v1 }
0x1759   :  { %v2151_v43 = vpop.f32.mrb[64].mxu1 }
0x175a   :  { %v2157_v39 = vsel %vm4741_vm3, %v2151_v43, -1000000.0  ;;  %v4216_v44 = vpop.f32.mrb[65].mxu1 }
0x175b   :  { %v2154_v49 = vpop.f32.mrb[66].mxu1  ;;  %v2158_v51 = vsel %vm324_vm4, %v2157_v39, -inf }
0x175c   :  { %2159 = vmax.xlane.f32.xlu0 %v2158_v51  ;;  %v4217_v46 = vpop.f32.mrb[67].mxu1 }
0x1760   :  { %1565 = vadd.xlane.f32.xlu0 %v1564_v2 }
0x17e9   :  { %v2160_v57 = vpop.xlane.xlu0 %2159 }
0x17ea   :  { %v2161_v42 = vsub.f32 %v2157_v39, %v2160_v57 }
0x17ec   :  { %v2162_v61 = vmul.f32 1.442695, %v2161_v42 }
0x17ed   :  { %v1566_v62 = vpop.xlane.xlu0 %1565 }
0x17ee   :  { %4467 = vpow2.f32 %v2162_v61  ;;  %v1568_v8 = vmul.f32 0.03125, %v1566_v62 }
0x17f0   :  { %v1570_v27 = vsub.f32 %v1556_v50, %v1568_v8 }
0x17f2   :  { %v1572_v10 = vmul.f32 %v1570_v27, %v1570_v27 }
0x17f4   :  { %v1576_v63 = vsel %vm100_vm1, %v1572_v10, 0.0 }
0x17f8   :  { %v4468_v9 = vpop.eup %4467 }
0x17f9   :  { %v2164_v3 = vsel %vm324_vm4, %v4468_v9, 0.0 }
0x17fa   :  { %2165 = vadd.xlane.f32.xlu1 %v2164_v3 }
0x17fe   :  { %1577 = vadd.xlane.f32.xlu1 %v1576_v63 }
0x1887   :  { %v2166_v30 = vpop.xlane.xlu1 %2165 }
0x1888   :  { %4469 = vrcp.f32 %v2166_v30 }
0x188b   :  { %v1578_v45 = vpop.xlane.xlu1 %1577 }
0x188c   :  { %v1580_v13 = vmul.f32 0.03125, %v1578_v45 }
0x188e   :  { %v1582_v15 = vadd.f32 1e-05, %v1580_v13 }
0x1890   :  { %4471 = vrsqrt.f32 %v1582_v15 }
0x1892   :  { %v4470_v23 = vpop.eup %4469 }
0x1893   :  { %v2168_v17 = vmul.f32 %v4470_v23, %v4468_v9 }
0x1895   :  { %v2169_v21 = vpack.c.bf16 %v2168_v17, %v2168_v17 }
0x1897   :  { %4221 = vmatmul.mubr.msk.bf16.vlgmr.msra.gmra.mrb[72].mxu0 %vm324_vm4, %v2169_v21 }
0x1898   :  { %4231 = vmatpush3.bf16.msra.mxu0 %v5240_v18  ;;  %4232 = vmatprep.mubr.msk.bf16.mxu0 %vm4557_vm0, %v4556_v1 }
0x1899   :  { %4244 = vmatprep.subr.bf16.mxu0 %v4556_v1 }
0x189a   :  { %v4472_v29 = vpop.eup %4471 }
0x189b   :  { %v1586_v16 = vmul.f32 %v4472_v29, %v1570_v27 }
0x189d   :  { %v1594_v31 = vmul.f32 %v5077_v54, %v1586_v16  ;;  %v5269_v54 = vld [vmem:[%s5535_s5 + $0x18] sm:$0xff]  }
0x189e   :  { %4225 = vmatpush3.bf16.msra.mxu1 %v5269_v54 }
0x189f   :  { %4233 = vmatmul.mubr.msk.bf16.vlgmr.msra.gmra.mrb[76].mxu0 %vm276_vm2, %v1910_v7  ;;  %v5253_v48 = vadd.f32 %v5082_v5, %v1594_v31  ;;  %4236 = vmatprep.subr.bf16.mxu1 %v4556_v1 }
0x18a0   :  { %4245 = vmatpush3.bf16.msra.mxu0 %v5091_v55  ;;  %4248 = vmatprep.mubr.msk.bf16.mxu0 %vm4557_vm0, %v4556_v1 }
0x18a1   :  { %4246 = vmatprep.subr.bf16.mxu0 %v4556_v1  ;;  %v5259_v19 = vpack.c.bf16 %v5253_v48, %v5253_v48 }
0x18a4   :  { %4247 = vmatpush3.bf16.msra.mxu0 %v5105_v11 }
0x18a5   :  { %4260 = vmatprep.subr.bf16.mxu0 %v4556_v1 }
0x18a7   :  { %4249 = vmatmul.mubr.msk.bf16.vlgmr.msra.gmra.mrb[80].mxu0 %vm100_vm1, %v5259_v19 }
0x18a8   :  { %4262 = vmatprep.mubr.msk.bf16.mxu0 %vm4557_vm0, %v4556_v1 }
0x196a   :  { %v2211_v5 = vpop.f32.mrb[72].mxu0 }
0x196b   :  { %v2217_v55 = vpack.c.bf16 %v2211_v5, %v2211_v5  ;;  %v4222_v11 = vpop.f32.mrb[73].mxu0 }
0x196c   :  { %v2214_v28 = vpop.f32.mrb[74].mxu0 }
0x196d   :  { %v4223_v32 = vpop.f32.mrb[75].mxu0  ;;  %4227 = vmatmul.mubr.msk.bf16.vlgmr.msra.gmra.mrb[68].mxu1 %vm276_vm2, %v2217_v55 }
0x196e   :  { %4237 = vmatpush3.bf16.msra.mxu1 %v5049_v58  ;;  %4240 = vmatprep.mubr.msk.bf16.mxu1 %vm4557_vm0, %v4556_v1 }
0x196f   :  { %4238 = vmatprep.subr.bf16.mxu1 %v4556_v1 }
0x1972   :  { %v2313_v33 = vpop.f32.mrb[76].mxu0  ;;  %4239 = vmatpush3.bf16.msra.mxu1 %v5063_v60 }
0x1973   :  { %v4234_v35 = vpop.f32.mrb[77].mxu0  ;;  %4252 = vmatprep.subr.bf16.mxu1 %v4556_v1 }
0x1974   :  { %v2316_v38 = vpop.f32.mrb[78].mxu0 }
0x1975   :  { %v4235_v40 = vpop.f32.mrb[79].mxu0  ;;  %4241 = vmatmul.mubr.msk.bf16.vlgmr.msra.gmra.mrb[72].mxu1 %vm100_vm1, %v5259_v19 }
0x1976   :  { %4253 = vmatpush3.bf16.msra.mxu1 %v5054_v59  ;;  %4256 = vmatprep.mubr.msk.bf16.mxu1 %vm4557_vm0, %v4556_v1 }
0x1977   :  { %4254 = vmatprep.subr.bf16.mxu1 %v4556_v1 }
0x197a   :  { %v2397_v58 = vpop.f32.mrb[80].mxu0  ;;  %4255 = vmatpush3.bf16.msra.mxu1 %v5068_v52 }
0x197b   :  { %v2398_v60 = vadd.f32 %v5128_v4, %v2397_v58  ;;  %v4250_v41 = vpop.f32.mrb[81].mxu0  ;;  %4266 = vmatprep.subr.bf16.mxu1 %v4556_v1 }
0x197c   :  { %v2400_v43 = vpop.f32.mrb[82].mxu0 }
0x197d   :  { %v2444_v39 = vpack.c.bf16 %v2398_v60, %v2398_v60  ;;  %v4251_v44 = vpop.f32.mrb[83].mxu0  ;;  %4257 = vmatmul.mubr.msk.bf16.vlgmr.msra.gmra.mrb[76].mxu1 %vm100_vm1, %v5259_v19 }
0x197e   :  { %4268 = vmatprep.mubr.msk.bf16.mxu1 %vm4557_vm0, %v4556_v1 }
0x197f   :  { %v2449_v59 = vsel %vm276_vm2, %v2444_v39, 0 }
0x1980   :  { %4261 = vmatpush3.bf16.xpose.msra.mxu0 %v2449_v59 }
0x1981   :  { %4272 = vmatprep.subr.bf16.mxu0 %v4556_v1 }
0x1a40   :  { %v2264_v52 = vpop.f32.mrb[68].mxu1 }
0x1a41   :  { %v5295_v49 = vadd.f32 %v2313_v33, %v2264_v52  ;;  %v4228_v4 = vpop.f32.mrb[69].mxu1 }
0x1a42   :  { %v2267_v51 = vpop.f32.mrb[70].mxu1 }
0x1a43   :  { %v4229_v50 = vpop.f32.mrb[71].mxu1 }
0x1a44   :  { %v3747_v50 = vld [vmem:[%s5539_s9 + $0x6] ss:$0 sm:$0xff] }
0x1a48   :  { %v2357_v46 = vpop.f32.mrb[72].mxu1 }
0x1a49   :  { %v2358_v2 = vadd.f32 %v5135_v20, %v2357_v46  ;;  %v4242_v57 = vpop.f32.mrb[73].mxu1 }
0x1a4a   :  { %v2360_v42 = vpop.f32.mrb[74].mxu1 }
0x1a4b   :  { %v2443_v61 = vpack.c.bf16 %v2358_v2, %v2358_v2  ;;  %v4243_v62 = vpop.f32.mrb[75].mxu1 }
0x1a4d   :  { %4263 = vmatmul.mubr.msk.bf16.vlgmr.msra.gmra.mrb[84].mxu0 %vm276_vm2, %v2443_v61 }
0x1a4e   :  { %4273 = vmatpush3.bf16.msra.mxu0 %v5143_v34  ;;  %4276 = vmatprep.mubr.msk.bf16.mxu0 %vm4557_vm0, %v4556_v1 }
0x1a4f   :  { %4274 = vmatprep.subr.bf16.mxu0 %v4556_v1 }
0x1a50   :  { %v2437_v8 = vpop.f32.mrb[76].mxu1 }
0x1a51   :  { %v2438_v27 = vadd.f32 %v5121_v14, %v2437_v8  ;;  %v4258_v9 = vpop.f32.mrb[77].mxu1 }
0x1a52   :  { %v2440_v3 = vpop.f32.mrb[78].mxu1  ;;  %4275 = vmatpush3.bf16.msra.mxu0 %v5150_v6 }
0x1a53   :  { %v2504_v20 = vpack.c.bf16 %v2438_v27, %v2438_v27  ;;  %v4259_v10 = vpop.f32.mrb[79].mxu1  ;;  %4288 = vmatprep.subr.bf16.mxu0 %v4556_v1 }
0x1a55   :  { %v2509_v63 = vsel %vm341_vm5, %v2504_v20, 0  ;;  %4277 = vmatmul.mubr.msk.bf16.vlgmr.msra.gmra.mrb[88].mxu0 %vm100_vm1, %v5259_v19 }
0x1a56   :  { %4267 = vmatpush3.bf16.msra.mxu1 %v2509_v63  ;;  %4289 = vmatpush3.bf16.msra.mxu0 %v5159_v36 }
0x1a57   :  { %4290 = vmatprep.subr.bf16.mxu0 %v4556_v1  ;;  %4292 = vmatprep.mubr.msk.bf16.mxu0 %vm4557_vm0, %v4556_v1 }
0x1a58   :  { %4280 = vmatprep.subr.bf16.mxu1 %v4556_v1 }
0x1a5a   :  { %4291 = vmatpush3.bf16.msra.mxu0 %v5168_v37 }
0x1a5b   :  { %4302 = vmatprep.subr.bf16.mxu0 %v4556_v1 }
0x1a5d   :  { %4293 = vmatmul.mubr.msk.bf16.vlgmr.msra.gmra.mrb[92].mxu0 %vm100_vm1, %v5259_v19 }
0x1a5e   :  { %4304 = vmatprep.mubr.msk.bf16.mxu0 %vm4557_vm0, %v4556_v1 }
0x1b20   :  { %v2485_v14 = vpop.f32.mrb[84].mxu0 }
0x1b21   :  { %v2491_v34 = vsel %vm4929_vm6, %v2485_v14, -1000000.0  ;;  %v4264_v6 = vpop.f32.mrb[85].mxu0 }
0x1b22   :  { %v2488_v36 = vpop.f32.mrb[86].mxu0  ;;  %v2492_v30 = vsel %vm324_vm4, %v2491_v34, -inf }
0x1b23   :  { %2493 = vmax.xlane.f32.xlu0 %v2492_v30  ;;  %v4265_v45 = vpop.f32.mrb[87].mxu0 }
0x1b28   :  { %v2586_v13 = vpop.f32.mrb[88].mxu0 }
0x1b29   :  { %v4278_v37 = vpop.f32.mrb[89].mxu0  ;;  %v2587_v51 = vadd.f32 %v5221_v0, %v2586_v13 }
0x1b2a   :  { %v2589_v15 = vpop.f32.mrb[90].mxu0 }
0x1b2b   :  { %v4279_v23 = vpop.f32.mrb[91].mxu0 }
0x1b30   :  { %v2666_v17 = vpop.f32.mrb[92].mxu0 }
0x1b31   :  { %v2667_v21 = vadd.f32 %v5185_v53, %v2666_v17  ;;  %v4294_v29 = vpop.f32.mrb[93].mxu0 }
0x1b32   :  { %v2669_v16 = vpop.f32.mrb[94].mxu0 }
0x1b33   :  { %v2733_v7 = vpack.c.bf16 %v2667_v21, %v2667_v21  ;;  %v4295_v31 = vpop.f32.mrb[95].mxu0 }
0x1b35   :  { %v2738_v5 = vsel %vm341_vm5, %v2733_v7, 0 }
0x1b36   :  { %4303 = vmatpush3.bf16.msra.mxu0 %v2738_v5 }
0x1b37   :  { %4314 = vmatprep.subr.bf16.mxu0 %v4556_v1 }
0x1bb0   :  { %v2494_v55 = vpop.xlane.xlu0 %2493 }
0x1bb1   :  { %v2495_v11 = vsub.f32 %v2491_v34, %v2494_v55 }
0x1bb3   :  { %v2496_v28 = vmul.f32 1.442695, %v2495_v11 }
0x1bb5   :  { %4473 = vpow2.f32 %v2496_v28 }
0x1bbf   :  { %v4474_v32 = vpop.eup %4473 }
0x1bc0   :  { %v2498_v33 = vsel %vm324_vm4, %v4474_v32, 0.0 }
0x1bc1   :  { %2499 = vadd.xlane.f32.xlu1 %v2498_v33 }
0x1c4e   :  { %v2500_v35 = vpop.xlane.xlu1 %2499 }
0x1c4f   :  { %4475 = vrcp.f32 %v2500_v35 }
0x1c59   :  { %v4476_v53 = vpop.eup %4475 }
0x1c5a   :  { %v2502_v38 = vmul.f32 %v4476_v53, %v4474_v32 }
0x1c5c   :  { %v2503_v40 = vpack.c.bf16 %v2502_v38, %v2502_v38 }
0x1c5e   :  { %4269 = vmatmul.mubr.msk.bf16.vlgmr.msra.gmra.mrb[80].mxu1 %vm324_vm4, %v2503_v40 }
0x1c5f   :  { %4281 = vmatpush3.bf16.msra.mxu1 %v5194_v56  ;;  %4284 = vmatprep.mubr.msk.bf16.mxu1 %vm4557_vm0, %v4556_v1 }
0x1c60   :  { %4282 = vmatprep.subr.bf16.mxu1 %v4556_v1 }
0x1c63   :  { %4283 = vmatpush3.bf16.msra.mxu1 %v5201_v26 }
0x1c64   :  { %4296 = vmatprep.subr.bf16.mxu1 %v4556_v1 }
0x1c66   :  { %4285 = vmatmul.mubr.msk.bf16.vlgmr.msra.gmra.mrb[84].mxu1 %vm100_vm1, %v5259_v19  ;;  %v2672_v19 = vpack.c.bf16 %v2587_v51, %v2587_v51  ;;  %v3750_v51 = vld [vmem:[%s5539_s9 + $0x7] ss:$0 sm:$0xff] }
0x1c67   :  { %4298 = vmatprep.mubr.msk.bf16.mxu1 %vm4557_vm0, %v4556_v1 }
0x1d31   :  { %v2545_v58 = vpop.f32.mrb[80].mxu1 }
0x1d32   :  { %v4270_v60 = vpop.f32.mrb[81].mxu1  ;;  %v2551_v30 = vpack.c.bf16 %v2545_v58, %v2545_v58  ;;  %v4427_v58 = vld [vmem:[%s5536_s6 + $0x10] sm:$0xff]  }
0x1d33   :  { %v2548_v41 = vpop.f32.mrb[82].mxu1  ;;  %v4429_v60 = vld [vmem:[%s5538_s8 + $0x20] sm:$0xff]  }
0x1d34   :  { %v4271_v43 = vpop.f32.mrb[83].mxu1  ;;  %v4430_v41 = vld [vmem:[%s5538_s8 + $0x28] sm:$0xff]  }
0x1d39   :  { %v2626_v56 = vpop.f32.mrb[84].mxu1 }
0x1d3a   :  { %v2627_v39 = vadd.f32 %v5215_v12, %v2626_v56  ;;  %v4286_v44 = vpop.f32.mrb[85].mxu1  ;;  %v2867_v12 = vadd.f32 %v5295_v49, %v5086_v22 }
0x1d3b   :  { %v2629_v59 = vpop.f32.mrb[86].mxu1 }
0x1d3c   :  { %v2673_v52 = vpack.c.bf16 %v2627_v39, %v2627_v39  ;;  %v4287_v4 = vpop.f32.mrb[87].mxu1  ;;  %v2877_v42 = vadd.f32 %v3747_v50, %v2867_v12 }
0x1d3e   :  { %v2678_v26 = vsel %vm276_vm2, %v2673_v52, 0  ;;  %v2883_v62 = vsel %vm100_vm1, %v2877_v42, 0.0 }
0x1d3f   :  { %4297 = vmatpush3.bf16.xpose.msra.mxu1 %v2678_v26 }
0x1d40   :  { %4308 = vmatprep.subr.bf16.mxu1 %v4556_v1 }
0x1d46   :  { %4299 = vmatmul.mubr.msk.bf16.vlgmr.msra.gmra.mrb[88].mxu1 %vm276_vm2, %v2672_v19 }
0x1d47   :  { %4309 = vmatpush3.bf16.msra.mxu1 %v5269_v54  ;;  %4310 = vmatprep.mubr.msk.bf16.mxu1 %vm4557_vm0, %v4556_v1 }
0x1d48   :  { %4320 = vmatprep.subr.bf16.mxu1 %v4556_v1 }
0x1e19   :  { %v2714_v0 = vpop.f32.mrb[88].mxu1 }
0x1e1a   :  { %v2720_v46 = vsel %vm4929_vm6, %v2714_v0, -1000000.0  ;;  %v4300_v2 = vpop.f32.mrb[89].mxu1  ;;  %v3751_v0 = vld [vmem:[%s5539_s9 + $0x8] ss:$0 sm:$0xff] }
0x1e1b   :  { %v2717_v57 = vpop.f32.mrb[90].mxu1  ;;  %v2721_v54 = vsel %vm324_vm4, %v2720_v46, -inf }
0x1e1c   :  { %2722 = vmax.xlane.f32.xlu0 %v2721_v54  ;;  %v4301_v61 = vpop.f32.mrb[91].mxu1 }
0x1e1d   :  { %v4432_v61 = vld [vmem:[%s5538_s8 + $0x38] sm:$0xff]  }
0x1e20   :  { %2884 = vadd.xlane.f32.xlu0 %v2883_v62  ;;  %v3757_v62 = vld [vmem:[%s5537_s7 + $0x1] ss:$0 sm:$0xff] }
0x1ea9   :  { %v2723_v8 = vpop.xlane.xlu0 %2722 }
0x1eaa   :  { %v2724_v22 = vsub.f32 %v2720_v46, %v2723_v8 }
0x1eac   :  { %v2725_v49 = vmul.f32 1.442695, %v2724_v22 }
0x1ead   :  { %v2885_v27 = vpop.xlane.xlu0 %2884 }
0x1eae   :  { %4477 = vpow2.f32 %v2725_v49  ;;  %v2889_v9 = vmul.f32 0.03125, %v2885_v27 }
0x1eb0   :  { %v5356_v3 = vsub.f32 %v2877_v42, %v2889_v9  ;;  %v4431_v42 = vld [vmem:[%s5538_s8 + $0x30] sm:$0xff]  }
0x1eb2   :  { %v2893_v47 = vmul.f32 %v5356_v3, %v5356_v3 }
0x1eb4   :  { %v2895_v20 = vsel %vm100_vm1, %v2893_v47, 0.0 }
0x1eb5   :  { %2896 = vadd.xlane.f32.xlu0 %v2895_v20 }
0x1eb8   :  { %v4478_v10 = vpop.eup %4477 }
0x1eb9   :  { %v2727_v63 = vsel %vm324_vm4, %v4478_v10, 0.0 }
0x1eba   :  { %2728 = vadd.xlane.f32.xlu1 %v2727_v63  ;;  %v3770_v63 = vld [vmem:[%s5539_s9 + $0x9] ss:$0 sm:$0xff] }
0x1f42   :  { %v2897_v43 = vpop.xlane.xlu0 %2896 }
0x1f43   :  { %v2901_v56 = vmul.f32 0.03125, %v2897_v43 }
0x1f45   :  { %v2903_v39 = vadd.f32 1e-05, %v2901_v56 }
0x1f47   :  { %v2729_v14 = vpop.xlane.xlu1 %2728 }
0x1f48   :  { %4479 = vrcp.f32 %v2729_v14 }
0x1f49   :  { %4481 = vrsqrt.f32 %v2903_v39  ;;  %v3779_v39 = vld [vmem:[%s5539_s9 + $0xb] ss:$0 sm:$0xff] }
0x1f52   :  { %v4480_v34 = vpop.eup %4479 }
0x1f53   :  { %v2731_v6 = vmul.f32 %v4480_v34, %v4478_v10  ;;  %v4482_v4 = vpop.eup %4481 }
0x1f54   :  { %v2907_v26 = vmul.f32 %v4482_v4, %v5356_v3 }
0x1f55   :  { %v2732_v36 = vpack.c.bf16 %v2731_v6, %v2731_v6 }
0x1f56   :  { %v2915_v12 = vmul.f32 %v3750_v51, %v2907_v26 }
0x1f57   :  { %4305 = vmatmul.mubr.msk.bf16.vlgmr.msra.gmra.mrb[96].mxu0 %vm324_vm4, %v2732_v36 }
0x1f58   :  { %4315 = vmatpush3.bf16.msra.mxu0 %v5240_v18  ;;  %4316 = vmatprep.mubr.msk.bf16.mxu0 %vm4557_vm0, %v4556_v1  ;;  %v2923_v2 = vadd.f32 %v3751_v0, %v2915_v12 }
0x1f59   :  { %4328 = vmatprep.subr.bf16.mxu0 %v4556_v1 }
0x1f5f   :  { %4317 = vmatmul.mubr.msk.bf16.vlgmr.msra.gmra.mrb[100].mxu0 %vm276_vm2, %v2551_v30 }
0x1f60   :  { %4336 = vmatprep.mubr.msk.bf16.mxu0 %vm4557_vm0, %v4556_v1  ;;  %4329 = vmatpush3.bf16.msra.mxu0 %v4429_v60  ;;  %v3778_v60 = vld [vmem:[%s5539_s9 + $0xa] ss:$0 sm:$0xff] }
0x1f61   :  { %4330 = vmatprep.subr.bf16.mxu0 %v4556_v1 }
0x1f64   :  { %4331 = vmatpush3.bf16.msra.mxu0 %v4430_v41 }
0x1f65   :  { %4332 = vmatprep.subr.bf16.mxu0 %v4556_v1 }
0x1f68   :  { %4333 = vmatpush3.bf16.msra.mxu0 %v4431_v42 }
0x1f69   :  { %4334 = vmatprep.subr.bf16.mxu0 %v4556_v1 }
0x1f6c   :  { %4335 = vmatpush3.bf16.msra.mxu0 %v4432_v61  ;;  %v3353_v61 = vshrl.u32 %v68_v24, 7 }
0x1f6d   :  { %4354 = vmatprep.subr.bf16.mxu0 %v4556_v1 }
0x202a   :  { %v2774_v45 = vpop.f32.mrb[96].mxu0 }
0x202b   :  { %v2780_v13 = vpack.c.bf16 %v2774_v45, %v2774_v45  ;;  %v4306_v37 = vpop.f32.mrb[97].mxu0 }
0x202c   :  { %v2777_v15 = vpop.f32.mrb[98].mxu0 }
0x202d   :  { %v4307_v23 = vpop.f32.mrb[99].mxu0  ;;  %4311 = vmatmul.mubr.msk.bf16.vlgmr.msra.gmra.mrb[92].mxu1 %vm276_vm2, %v2780_v13 }
0x202e   :  { %4324 = vmatprep.mubr.msk.bf16.mxu1 %vm4557_vm0, %v4556_v1  ;;  %4321 = vmatpush3.bf16.msra.mxu1 %v4427_v58 }
0x202f   :  { %4322 = vmatprep.subr.bf16.mxu1 %v4556_v1 }
0x2032   :  { %v2861_v18 = vpop.f32.mrb[100].mxu0 }
0x2033   :  { %v4318_v17 = vpop.f32.mrb[101].mxu0 }
0x2034   :  { %v2864_v21 = vpop.f32.mrb[102].mxu0 }
0x2035   :  { %v4319_v29 = vpop.f32.mrb[103].mxu0 }
0x2100   :  { %v2818_v16 = vpop.f32.mrb[92].mxu1 }
0x2101   :  { %v2862_v7 = vadd.f32 %v2861_v18, %v2818_v16  ;;  %v4312_v31 = vpop.f32.mrb[93].mxu1  ;;  %v4558_v18 = vmov 0  }
0x2102   :  { %v2821_v5 = vpop.f32.mrb[94].mxu1  ;;  %4392 = vset.pattern.permute.xlu0 %v4558_v18 }
0x2103   :  { %v2868_v55 = vadd.f32 %v2862_v7, %v5253_v48  ;;  %v4313_v11 = vpop.f32.mrb[95].mxu1  ;;  %v4428_v48 = vld [vmem:[%s5536_s6 + $0x18] sm:$0xff]  }
0x2104   :  { %4323 = vmatpush3.bf16.msra.mxu1 %v4428_v48 }
0x2105   :  { %v2878_v28 = vadd.f32 %v3747_v50, %v2868_v55  ;;  %4340 = vmatprep.subr.bf16.mxu1 %v4556_v1 }
0x2107   :  { %v2886_v32 = vsel %vm100_vm1, %v2878_v28, 0.0 }
0x2108   :  { %2887 = vadd.xlane.f32.xlu1 %v2886_v32  ;;  %v3134_v32 = vld [vmem:[%s5531_s1] sm:$0x3f] }
0x2195   :  { %v2888_v33 = vpop.xlane.xlu1 %2887 }
0x2196   :  { %v2890_v35 = vmul.f32 0.03125, %v2888_v33 }
0x2198   :  { %v2892_v53 = vsub.f32 %v2878_v28, %v2890_v35 }
0x219a   :  { %v2894_v38 = vmul.f32 %v2892_v53, %v2892_v53 }
0x219c   :  { %v2898_v40 = vsel %vm100_vm1, %v2894_v38, 0.0 }
0x219d   :  { %2899 = vadd.xlane.f32.xlu1 %v2898_v40 }
0x222a   :  { %v2900_v44 = vpop.xlane.xlu1 %2899 }
0x222b   :  { %v2902_v59 = vmul.f32 0.03125, %v2900_v44 }
0x222d   :  { %v2904_v52 = vadd.f32 1e-05, %v2902_v59 }
0x222f   :  { %4483 = vrsqrt.f32 %v2904_v52 }
0x2239   :  { %v4484_v19 = vpop.eup %4483 }
0x223a   :  { %v2908_v50 = vmul.f32 %v4484_v19, %v2892_v53 }
0x223c   :  { %v2916_v46 = vmul.f32 %v3750_v51, %v2908_v50  ;;  %v4433_v50 = vld [vmem:[%s5540_s10] sm:$0xff]  }
0x223e   :  { %v2924_v57 = vadd.f32 %v3751_v0, %v2916_v46  ;;  %v4434_v0 = vld [vmem:[%s5540_s10 + $0x8] sm:$0xff]  }
0x2240   :  { %v2925_v54 = vpack.c.bf16 %v2924_v57, %v2923_v2 }
0x2242   :  { %4325 = vmatmul.mubr.msk.bf16.vlgmr.msra.gmra.mrb[96].mxu1 %vm100_vm1, %v2925_v54 }
0x2243   :  { %4342 = vmatprep.mubr.msk.bf16.mxu1 %vm4557_vm0, %v4556_v1 }
0x2315   :  { %v2988_v8 = vpop.f32.mrb[96].mxu1 }
0x2316   :  { %v2989_v22 = vadd.f32 %v3757_v62, %v2988_v8  ;;  %v4326_v49 = vpop.f32.mrb[97].mxu1 }
0x2317   :  { %v2991_v27 = vpop.f32.mrb[98].mxu1  ;;  %v3781_v49 = vld [vmem:[%s5542_s12] ss:$0 sm:$0xff] }
0x2318   :  { %v2992_v9 = vadd.f32 %v3757_v62, %v2991_v27  ;;  %v4327_v3 = vpop.f32.mrb[99].mxu1  ;;  %v2995_v47 = vmax.f32 %v2989_v22, 0.0  ;;  %v3354_v62 = vmul.u32 8, %v3353_v61 }
0x231a   :  { %v2996_v20 = vmax.f32 %v2992_v9, 0.0  ;;  %vm3355_vm9 = vcmp.eq.s32.totalorder %v4738_v25, %v3354_v62 }
0x231b   :  { %v3356_v8 = vsel %vm3355_vm9, 1.0, %v4556_v1 }
0x231c   :  { %v2997_v10 = vpack.c.bf16 %v2996_v20, %v2995_v47  ;;  %v3357_v22 = vpack.c.bf16 %v3356_v8, %v3356_v8 }
0x231e   :  { %4337 = vmatmul.mubr.msk.bf16.vlgmr.msra.gmra.mrb[104].mxu0 %vm1510_vm7, %v2997_v10 }
0x231f   :  { %4358 = vmatprep.mubr.msk.bf16.mxu0 %vm4557_vm0, %v4556_v1 }
0x23f1   :  { %v3076_v14 = vpop.f32.mrb[104].mxu0 }
0x23f2   :  { %v3077_v34 = vadd.f32 %v3770_v63, %v3076_v14  ;;  %v4338_v6 = vpop.f32.mrb[105].mxu0 }
0x23f3   :  { %v3079_v36 = vpop.f32.mrb[106].mxu0 }
0x23f4   :  { %v3080_v30 = vadd.f32 %v3770_v63, %v3079_v36  ;;  %v4339_v45 = vpop.f32.mrb[107].mxu0  ;;  %v3083_v13 = vadd.f32 %v3077_v34, %v2923_v2  ;;  %v4435_v36 = vld [vmem:[%s5541_s11] sm:$0xff]  }
0x23f5   :  { %4355 = vmatpush3.bf16.msra.mxu0 %v4435_v36 }
0x23f6   :  { %v3089_v37 = vsel %vm100_vm1, %v3083_v13, 0.0  ;;  %v3084_v15 = vadd.f32 %v3080_v30, %v2924_v57  ;;  %v4436_v30 = vld [vmem:[%s5541_s11 + $0x8] sm:$0xff]   ;;  %4356 = vmatprep.subr.bf16.mxu0 %v4556_v1 }
0x23f7   :  { %3090 = vadd.xlane.f32.xlu0 %v3089_v37 }
0x23f8   :  { %v3092_v23 = vsel %vm100_vm1, %v3084_v15, 0.0 }
0x23f9   :  { %3093 = vadd.xlane.f32.xlu1 %v3092_v23  ;;  %4357 = vmatpush3.bf16.msra.mxu0 %v4436_v30 }
0x23fa   :  { %4368 = vmatprep.subr.bf16.mxu0 %v4556_v1 }
0x2484   :  { %v3091_v17 = vpop.xlane.xlu0 %3090 }
0x2485   :  { %v3095_v21 = vmul.f32 0.03125, %v3091_v17 }
0x2486   :  { %v3094_v29 = vpop.xlane.xlu1 %3093 }
0x2487   :  { %v3097_v16 = vsub.f32 %v3083_v13, %v3095_v21  ;;  %v3096_v7 = vmul.f32 0.03125, %v3094_v29  ;;  %v3787_v29 = vld [vmem:[%s5542_s12 + $0x1] ss:$0 sm:$0xff] }
0x2489   :  { %v3098_v31 = vsub.f32 %v3084_v15, %v3096_v7  ;;  %v3099_v5 = vmul.f32 %v3097_v16, %v3097_v16  ;;  %v3788_v7 = vld [vmem:[%s5542_s12 + $0x2] ss:$0 sm:$0xff] }
0x248b   :  { %v3101_v55 = vsel %vm100_vm1, %v3099_v5, 0.0  ;;  %v3100_v11 = vmul.f32 %v3098_v31, %v3098_v31 }
0x248c   :  { %3102 = vadd.xlane.f32.xlu0 %v3101_v55  ;;  %v4437_v55 = vld [vmem:[%s5540_s10 + $0x10] sm:$0xff]  }
0x248d   :  { %v3104_v28 = vsel %vm100_vm1, %v3100_v11, 0.0 }
0x248e   :  { %3105 = vadd.xlane.f32.xlu1 %v3104_v28  ;;  %v4438_v28 = vld [vmem:[%s5540_s10 + $0x18] sm:$0xff]  }
0x24a2   :  { %3136 = vperm.xlu0 %4392, %v3134_v32  }
0x2519   :  { %v3103_v33 = vpop.xlane.xlu0 %3102 }
0x251a   :  { %v3107_v35 = vmul.f32 0.03125, %v3103_v33  ;;  %v4439_v33 = vld [vmem:[%s5541_s11 + $0x10] sm:$0xff]  }
0x251b   :  { %v3106_v53 = vpop.xlane.xlu1 %3105 }
0x251c   :  { %v3109_v38 = vadd.f32 1e-05, %v3107_v35  ;;  %v3108_v40 = vmul.f32 0.03125, %v3106_v53  ;;  %v4440_v35 = vld [vmem:[%s5541_s11 + $0x18] sm:$0xff]   ;;  %v3789_v53 = vld [vmem:[%s5543_s13] ss:$0 sm:$0xff] }
0x251d   :  { %s4559_s11 = smov [#allocation5]  }
0x251e   :  { %4485 = vrsqrt.f32 %v3109_v38  ;;  %v3110_v58 = vadd.f32 1e-05, %v3108_v40  ;;  %s3546_s18 = sshll.u32 %s4559_s11, 4  ;;  %s3547_s18 = int_to_ptr.vmem [resolvable:$true] %s3546_s18 }
0x251f   :  { %s4505_s19 = scalar_lea.vmem %s3547_s18, 256  ;;  %p4510_p6 = scmp.lt.s32.totalorder %s3547_s18, %s3547_s18 }
0x2520   :  { %4487 = vrsqrt.f32 %v3110_v58  ;;  %p4506_p5 = scmp.ne.s32.totalorder %s3547_s18, %s4505_s19  ;;  %p4511_p7 = scmp.lt.s32.totalorder %s4505_s19, %s4505_s19 }
0x2521   :  { %v3137_v43 = vpop.permute.xlu0 %3136 }
0x2522   :  { %vm3138_vm8 = vcmp.eq.s32.totalorder %v4738_v25, %v3137_v43  ;;  %p4512_p8 = por %p4511_p7, %p4510_p6 }
0x2523   :  { %v3139_v26 = vsel %vm3138_vm8, 1.0, %v4556_v1 }
0x2524   :  { %v3140_v12 = vpack.c.bf16 %v3139_v26, %v3139_v26  ;;  %p4513_p9 = pnand %p4512_p8, %p4506_p5 }
0x2528   :  { %v4486_v48 = vpop.eup %4485 }
0x2529   :  { %v3113_v41 = vmul.f32 %v4486_v48, %v3097_v16 }
0x252a   :  { %v4488_v56 = vpop.eup %4487 }
0x252b   :  { %v3114_v44 = vmul.f32 %v4488_v56, %v3098_v31  ;;  %v3121_v59 = vmul.f32 %v3778_v60, %v3113_v41 }
0x252d   :  { %v3122_v52 = vmul.f32 %v3778_v60, %v3114_v44  ;;  %v3129_v4 = vadd.f32 %v3779_v39, %v3121_v59 }
0x252f   :  { %v3130_v51 = vadd.f32 %v3779_v39, %v3122_v52  ;;  %3131 = vst.msk [vmem:[#allocation5] sm:$0xff] %vm100_vm1, %v3129_v4 }
0x2531   :  { %v3133_v19 = vpack.c.bf16 %v3130_v51, %v3129_v4  ;;  %3132 = vst.msk [vmem:[#allocation5 + $0x8] sm:$0xff] %vm100_vm1, %v3130_v51 }
0x2533   :  { %4341 = vmatpush3.bf16.msra.mxu1 %v3133_v19 }
0x2534   :  { %4346 = vmatprep.subr.bf16.mxu1 %v4556_v1 }
0x2536   :  { %4343 = vmatmul.mubr.msk.bf16.vlgmr.msra.gmra.mrb[100].mxu1 %vm276_vm2, %v3140_v12 }
0x2537   :  { %4347 = vmatpush3.bf16.msra.mxu1 %v4433_v50  ;;  %4350 = vmatprep.mubr.msk.bf16.mxu1 %vm4557_vm0, %v4556_v1 }
0x2538   :  { %4348 = vmatprep.subr.bf16.mxu1 %v4556_v1 }
0x253b   :  { %4349 = vmatpush3.bf16.msra.mxu1 %v4434_v0 }
0x253c   :  { %4362 = vmatprep.subr.bf16.mxu1 %v4556_v1 }
0x2609   :  { %v3178_v46 = vpop.f32.mrb[100].mxu1 }
0x260a   :  { %v3184_v2 = vpack.c.bf16 %v3178_v46, %v3178_v46  ;;  %v4344_v57 = vpop.f32.mrb[101].mxu1 }
0x260b   :  { %v3181_v54 = vpop.f32.mrb[102].mxu1 }
0x260c   :  { %4351 = vmatmul.mubr.msk.bf16.vlgmr.msra.gmra.mrb[104].mxu1 %vm100_vm1, %v3184_v2  ;;  %v4345_v42 = vpop.f32.mrb[103].mxu1 }
0x260d   :  { %4363 = vmatpush3.bf16.msra.mxu1 %v3133_v19  ;;  %4364 = vmatprep.mubr.msk.bf16.mxu1 %vm4557_vm0, %v4556_v1 }
0x260e   :  { %4376 = vmatprep.subr.bf16.mxu1 %v4556_v1 }
0x2614   :  { %4365 = vmatmul.mubr.msk.bf16.vlgmr.msra.gmra.mrb[108].mxu1 %vm276_vm2, %v3357_v22 }
0x2615   :  { %4380 = vmatprep.mubr.msk.bf16.mxu1 %vm4557_vm0, %v4556_v1  ;;  %4377 = vmatpush3.bf16.msra.mxu1 %v4439_v33 }
0x2616   :  { %4378 = vmatprep.subr.bf16.mxu1 %v4556_v1 }
0x2619   :  { %4379 = vmatpush3.bf16.msra.mxu1 %v4440_v35 }
0x26df   :  { %v3245_v27 = vpop.f32.mrb[104].mxu1 }
0x26e0   :  { %v3246_v9 = vadd.f32 %v3781_v49, %v3245_v27  ;;  %v4352_v3 = vpop.f32.mrb[105].mxu1 }
0x26e1   :  { %v3248_v47 = vpop.f32.mrb[106].mxu1 }
0x26e2   :  { %v3251_v24 = vmax.f32 %v3246_v9, 0.0  ;;  %v4353_v20 = vpop.f32.mrb[107].mxu1 }
0x26e4   :  { %v3257_v25 = vsel %vm3256_vm10, %v3251_v24, 0.0 }
0x26e5   :  { %3258 = vadd.xlane.f32.xlu1 %v3257_v25 }
0x26e7   :  { %v3395_v45 = vpop.f32.mrb[108].mxu1 }
0x26e8   :  { %v4366_v13 = vpop.f32.mrb[109].mxu1  ;;  %v3401_v32 = vpack.c.bf16 %v3395_v45, %v3395_v45 }
0x26e9   :  { %v3398_v37 = vpop.f32.mrb[110].mxu1 }
0x26ea   :  { %v4367_v15 = vpop.f32.mrb[111].mxu1 }
0x2772   :  { %v3259_v10 = vpop.xlane.xlu1 %3258 }
0x2773   :  { %v3260_v63 = vmul.f32 0.03125, %v3259_v10 }
0x2775   :  { %v3261_v14 = vsub.f32 %v3251_v24, %v3260_v63 }
0x2777   :  { %v3262_v34 = vmul.f32 %v3261_v14, %v3261_v14 }
0x2779   :  { %v3263_v6 = vsel %vm3256_vm10, %v3262_v34, 0.0 }
0x277a   :  { %3264 = vadd.xlane.f32.xlu1 %v3263_v6 }
0x2807   :  { %v3265_v23 = vpop.xlane.xlu1 %3264 }
0x2808   :  { %v3266_v18 = vmul.f32 0.03125, %v3265_v23 }
0x280a   :  { %v3267_v17 = vadd.f32 1e-05, %v3266_v18 }
0x280c   :  { %4489 = vrsqrt.f32 %v3267_v17 }
0x2816   :  { %v4490_v21 = vpop.eup %4489 }
0x2817   :  { %v3269_v16 = vmul.f32 %v4490_v21, %v3261_v14 }
0x2819   :  { %v3276_v31 = vmul.f32 %v3787_v29, %v3269_v16 }
0x281b   :  { %v3283_v5 = vadd.f32 %v3788_v7, %v3276_v31 }
0x281d   :  { %v3284_v11 = vpack.c.bf16 %v3283_v5, %v3283_v5 }
0x281f   :  { %4359 = vmatmul.mubr.msk.bf16.vlgmr.msra.gmra.mrb[108].mxu0 %vm100_vm1, %v3284_v11 }
0x2820   :  { %4369 = vmatpush3.bf16.msra.mxu0 %v4437_v55  ;;  %4372 = vmatprep.mubr.msk.bf16.mxu0 %vm4557_vm0, %v4556_v1 }
0x2821   :  { %4370 = vmatprep.subr.bf16.mxu0 %v4556_v1  ;;  %v3799_v1 = vld [vmem:[%s5542_s12 + $0x3] ss:$0 sm:$0xff] }
0x2824   :  { %4371 = vmatpush3.bf16.msra.mxu0 %v4438_v28 }
0x2827   :  { %4373 = vmatmul.mubr.msk.bf16.vlgmr.msra.gmra.mrb[112].mxu0 %vm100_vm1, %v3401_v32 }
0x28f2   :  { %v3345_v38 = vpop.f32.mrb[108].mxu0 }
0x28f3   :  { %v3346_v40 = vadd.f32 %v3789_v53, %v3345_v38  ;;  %v4360_v58 = vpop.f32.mrb[109].mxu0 }
0x28f4   :  { %v3348_v48 = vpop.f32.mrb[110].mxu0 }
0x28f5   :  { %3351 = vst [vmem:[%s5545_s15] sm:$0x3f] %v3346_v40  ;;  %v4361_v60 = vpop.f32.mrb[111].mxu0 }
0x28fa   :  { %v3464_v41 = vpop.f32.mrb[112].mxu0 }
0x28fb   :  { %v3465_v43 = vadd.f32 %v3799_v1, %v3464_v41  ;;  %v4374_v56 = vpop.f32.mrb[113].mxu0 }
0x28fc   :  { %v3467_v39 = vpop.f32.mrb[114].mxu0 }
0x28fd   :  { %4491 = vtanh.f32 %v3465_v43  ;;  %v4375_v44 = vpop.f32.mrb[115].mxu0 }
0x2907   :  { %v4492_v59 = vpop.eup %4491 }
0x2908   :  { %v3471_v52 = vpack.c.bf16 %v4492_v59, %v4492_v59 }
0x290a   :  { %4381 = vmatmul.mubr.msk.bf16.vlgmr.msra.gmra.mrb[112].mxu1 %vm100_vm1, %v3471_v52 }
0x290b   :  { %4516 = shalt.err (!%p4513_p9)
}
0x290c   :  { %s4517_s20 = scalar_lea.hbm %s5544_s14, 256 }
0x290d   :  { %p4518_p10 = scmp.ne.s32.totalorder %s5544_s14, %s4517_s20  ;;  %p4521_p11 = scmp.lt.u32.totalorder %s4517_s20, %s5544_s14 }
0x290f   :  { %p4523_p12 = pnand %p4521_p11, %p4518_p10 }
0x2911   :  { %4526 = shalt.err (!%p4523_p12)
}
0x2912   :  { %s4560_s23 = smov 128   ;;  %s4561_s24 = smov 8   ;;  %v3808_v4 = vld [vmem:[%s5543_s13 + $0x1] ss:$0 sm:$0xff] }
0x2913   :  { %3552 = dma.vmem_to_hbm [thread:$0]  %s3547_s18, 256, %s5544_s14, [#allocation3], %s4560_s23, %s4560_s23, %s4561_s24  }
0x2914   :  { %s4562_s8 = smov [#allocation6]  }
0x2915   :  { %s3561_s5 = sshll.u32 %s4562_s8, 4  ;;  %s3562_s5 = int_to_ptr.vmem [resolvable:$true] %s3561_s5 }
0x2916   :  { %s4527_s7 = scalar_lea.vmem %s3562_s5, 32  ;;  %p4532_p0 = scmp.lt.s32.totalorder %s3562_s5, %s3562_s5 }
0x2917   :  { %p4528_p13 = scmp.ne.s32.totalorder %s3562_s5, %s4527_s7  ;;  %p4533_p1 = scmp.lt.s32.totalorder %s4527_s7, %s4527_s7 }
0x2919   :  { %p4534_p2 = por %p4533_p1, %p4532_p0 }
0x291b   :  { %p4535_p3 = pnand %p4534_p2, %p4528_p13 }
0x29dd   :  { %v3534_v26 = vpop.f32.mrb[112].mxu1 }
0x29de   :  { %v3535_v51 = vadd.f32 %v3808_v4, %v3534_v26  ;;  %v4382_v19 = vpop.f32.mrb[113].mxu1 }
0x29df   :  { %v3537_v12 = vpop.f32.mrb[114].mxu1 }
0x29e0   :  { %3540 = vst [vmem:[#allocation6] sm:$0x3] %v3535_v51  ;;  %v4383_v50 = vpop.f32.mrb[115].mxu1 }
0x29e1   :  { %4538 = shalt.err (!%p4535_p3)
}
0x29e2   :  { %s4539_s13 = scalar_lea.hbm %s5546_s16, 32 }
0x29e3   :  { %p4540_p4 = scmp.ne.s32.totalorder %s5546_s16, %s4539_s13  ;;  %p4543_p5 = scmp.lt.u32.totalorder %s4539_s13, %s5546_s16 }
0x29e5   :  { %p4545_p6 = pnand %p4543_p5, %p4540_p4 }
0x29e7   :  { %4548 = shalt.err (!%p4545_p6)
}
0x29e8   :  { %3564 = dma.vmem_to_hbm [thread:$0]  %s3562_s5, 32, %s5546_s16, [#allocation7]  }
0x29e9   :  { %4551 = dma.done.wait [#allocation3], 256  }
0x29ea   :  { %4552 = vsyncadd [#allocation3], 4294967040 }
0x29eb   :  { %4553 = dma.done.wait [#allocation7], 32  }
0x29ec   :  { %4554 = vsyncadd [#allocation7], 4294967264 }
0x29ed   :  { %3573 = vsyncpa [#allocation3], 1 }
0x29ee   :  { %3574 = vsyncpa [#allocation7], 1 }
0x29ef   :  { %3575 = vsyncpa [#allocation4], 1 }

</bundles_post_ra>
